<compile_context>
chip_gen: v7x
topology: tpu7x:2x2x1
jax: 0.10.0
libtpu: 0.0.40
codegen_flags: <defaults>
</compile_context>

<pallas_src>
import functools

import jax
import jax.numpy as jnp
import numpy as np
from jax.experimental import pallas as pl
from jax.experimental.pallas import tpu as pltpu

EPS = 1e-5  # PyTorch BatchNorm2d default eps


def _fold_bn(gamma, beta, mean, var):
    scale = gamma / jnp.sqrt(var + EPS)
    return scale, beta - mean * scale


# ----------------------------------------------------------------------------
# Kernel 1: fused BN1+ReLU1 -> 1x1 conv (chunked matmul over the virtual concat)
#           -> BN2+ReLU2 epilogue.   Row-tiled over M spatial positions.
# ----------------------------------------------------------------------------
def _bottleneck_kernel(*refs, nchunks):
    xs = refs[0:nchunks]                      # feature chunks (TM, C_j)
    s1s = refs[nchunks:2 * nchunks]           # (1, C_j)
    b1s = refs[2 * nchunks:3 * nchunks]       # (1, C_j)
    w1s = refs[3 * nchunks:4 * nchunks]       # (C_j, Cmid) bf16
    s2 = refs[4 * nchunks]                    # (1, Cmid)
    b2 = refs[4 * nchunks + 1]                # (1, Cmid)
    o_ref = refs[4 * nchunks + 2]             # (TM, Cmid) bf16

    acc = None
    for j in range(nchunks):
        a = jnp.maximum(
            xs[j][...].astype(jnp.float32) * s1s[j][...] + b1s[j][...], 0.0)
        d = jnp.dot(a.astype(jnp.bfloat16), w1s[j][...],
                    preferred_element_type=jnp.float32)
        acc = d if acc is None else acc + d
    # Fused next-stage BN2 + ReLU2 (so padding with zeros later is exact).
    z = jnp.maximum(acc * s2[...] + b2[...], 0.0)
    o_ref[...] = z.astype(o_ref.dtype)


def bottleneck_1x1(feats2d, s1, b1, w1, s2, b2, tm_max=256):
    M = feats2d[0].shape[0]
    cmid = w1.shape[1]
    nchunks = len(feats2d)
    widths = [int(f.shape[1]) for f in feats2d]
    offs = np.concatenate([[0], np.cumsum(widths)]).astype(int)

    s1s = [s1[None, offs[j]:offs[j + 1]] for j in range(nchunks)]
    b1s = [b1[None, offs[j]:offs[j + 1]] for j in range(nchunks)]
    w1s = [w1[offs[j]:offs[j + 1], :].astype(jnp.bfloat16) for j in range(nchunks)]

    tm = min(tm_max, M)
    in_specs = (
        [pl.BlockSpec((tm, cw), lambda i: (i, 0)) for cw in widths]        # features
        + [pl.BlockSpec((1, cw), lambda i: (0, 0)) for cw in widths]       # scale1
        + [pl.BlockSpec((1, cw), lambda i: (0, 0)) for cw in widths]       # bias1
        + [pl.BlockSpec((cw, cmid), lambda i: (0, 0)) for cw in widths]    # w1 chunks
        + [pl.BlockSpec((1, cmid), lambda i: (0, 0))] * 2                  # scale2, bias2
    )
    return pl.pallas_call(
        functools.partial(_bottleneck_kernel, nchunks=nchunks),
        out_shape=jax.ShapeDtypeStruct((M, cmid), jnp.bfloat16),
        grid=(pl.cdiv(M, tm),),
        in_specs=in_specs,
        out_specs=pl.BlockSpec((tm, cmid), lambda i: (i, 0)),
        compiler_params=pltpu.CompilerParams(dimension_semantics=("parallel",)),
    )(*feats2d, *s1s, *b1s, *w1s, s2[None, :], b2[None, :])


# ----------------------------------------------------------------------------
# Kernel 2: 3x3 conv, stride 1, zero padding 1 (input already ReLU'd, so the
# zero padding is exact).  One padded image stays resident in VMEM per grid
# step; output is produced in row blocks of TH rows.
# ----------------------------------------------------------------------------
def _conv3x3_kernel(ap_ref, w_ref, o_ref, *, th, w_out):
    rs = pl.multiple_of(pl.program_id(1) * th, th)   # first output row of block
    c = ap_ref.shape[-1]
    cout = o_ref.shape[-1]
    acc = jnp.zeros((th * w_out, cout), jnp.float32)
    for dy in range(3):
        # (th, Wp, C) window of the resident padded image: rows rs+dy .. rs+dy+th-1
        rows = ap_ref[0, pl.ds(rs + dy, th), :, :]
        for dx in range(3):
            win = rows[:, dx:dx + w_out, :].reshape(th * w_out, c)
            acc = acc + jnp.dot(win, w_ref[3 * dy + dx],
                                preferred_element_type=jnp.float32)
    o_ref[...] = acc.reshape(1, th, w_out, cout).astype(o_ref.dtype)


def _pick_row_tile(h, w):
    # Largest divisor of h such that the per-block matmul has a decent number of
    # rows while the output block stays small.
    target = max(8, 512 // max(w, 1))
    best = 1
    for t in range(1, h + 1):
        if h % t == 0 and t <= target:
            best = t
    return best


def conv3x3_same(act2d, n, h, w, w2_hwio):
    c = act2d.shape[-1]
    cout = w2_hwio.shape[-1]
    hp, wp = h + 2, w + 2
    ap = jnp.pad(act2d.reshape(n, h, w, c), ((0, 0), (1, 1), (1, 1), (0, 0)))
    w9 = w2_hwio.reshape(9, c, cout).astype(jnp.bfloat16)
    th = _pick_row_tile(h, w)
    out = pl.pallas_call(
        functools.partial(_conv3x3_kernel, th=th, w_out=w),
        out_shape=jax.ShapeDtypeStruct((n, h, w, cout), jnp.bfloat16),
        grid=(n, h // th),
        in_specs=[pl.BlockSpec((1, hp, wp, c), lambda i, r: (i, 0, 0, 0)),
                  pl.BlockSpec((9, c, cout), lambda i, r: (0, 0, 0))],
        out_specs=pl.BlockSpec((1, th, w, cout), lambda i, r: (i, r, 0, 0)),
        compiler_params=pltpu.CompilerParams(
            dimension_semantics=("parallel", "parallel")),
    )(ap, w9)
    return out.reshape(n * h * w, cout)


# ----------------------------------------------------------------------------
# DenseLayer / DenseBlock forward
# ----------------------------------------------------------------------------
def dense_layer_forward(feats2d, spatial, p):
    n, h, w = spatial
    s1, b1 = _fold_bn(p["gamma1"], p["beta1"], p["mean1"], p["var1"])
    s2, b2 = _fold_bn(p["gamma2"], p["beta2"], p["mean2"], p["var2"])
    # (M, Cmid) bf16, already relu2(norm2(conv1(relu1(norm1(concat)))))
    bottleneck = bottleneck_1x1(feats2d, s1, b1, p["w1"], s2, b2)
    return conv3x3_same(bottleneck, n, h, w, p["w2"])     # drop_rate == 0.0


@jax.jit
def dense_block_forward(x_nchw, layer_params):
    n, c0, h, w = x_nchw.shape
    x2d = jnp.transpose(x_nchw, (0, 2, 3, 1)).reshape(n * h * w, c0)
    feats = [x2d]
    for p in layer_params:
        feats.append(dense_layer_forward(feats, (n, h, w), p))
    out2d = jnp.concatenate([f.astype(jnp.float32) for f in feats], axis=-1)
    return jnp.transpose(out2d.reshape(n, h, w, -1), (0, 3, 1, 2))   # NCHW


# ----------------------------------------------------------------------------
# Deterministic parameter init (shapes from the PyTorch __init__)
# ----------------------------------------------------------------------------
def init_params(key, num_layers, num_input_features, bn_size, growth_rate):
    params = []
    for i in range(num_layers):
        c_in = num_input_features + i * growth_rate
        c_mid = bn_size * growth_rate
        ks = jax.random.split(jax.random.fold_in(key, i), 10)
        p = dict(
            gamma1=jax.random.uniform(ks[0], (c_in,), minval=0.8, maxval=1.2),
            beta1=0.1 * jax.random.normal(ks[1], (c_in,)),
            mean1=0.1 * jax.random.normal(ks[2], (c_in,)),
            var1=jax.random.uniform(ks[3], (c_in,), minval=0.5, maxval=1.5),
            w1=0.1 * jax.random.normal(ks[4], (c_in, c_mid)),               # 1x1 conv
            gamma2=jax.random.uniform(ks[5], (c_mid,), minval=0.8, maxval=1.2),
            beta2=0.1 * jax.random.normal(ks[6], (c_mid,)),
            mean2=0.1 * jax.random.normal(ks[7], (c_mid,)),
            var2=jax.random.uniform(ks[8], (c_mid,), minval=0.5, maxval=1.5),
            w2=0.1 * jax.random.normal(ks[9], (3, 3, c_mid, growth_rate)),  # HWIO
        )
        params.append(jax.tree_util.tree_map(lambda a: a.astype(jnp.float32), p))
    return params


# ----------------------------------------------------------------------------
# Pure-JAX reference mirroring the kernel's bf16 matmul operands / feature storage
# ----------------------------------------------------------------------------
def reference_dense_block(x_nchw, layer_params):
    dn = ("NHWC", "HWIO", "NHWC")
    x = jnp.transpose(x_nchw, (0, 2, 3, 1))
    feats = [x]
    for p in layer_params:
        c = jnp.concatenate([f.astype(jnp.float32) for f in feats], axis=-1)
        s1, b1 = _fold_bn(p["gamma1"], p["beta1"], p["mean1"], p["var1"])
        a1 = jnp.maximum(c * s1 + b1, 0.0).astype(jnp.bfloat16)
        y = jax.lax.conv_general_dilated(
            a1, p["w1"][None, None].astype(jnp.bfloat16), (1, 1), "VALID",
            dimension_numbers=dn, preferred_element_type=jnp.float32)
        s2, b2 = _fold_bn(p["gamma2"], p["beta2"], p["mean2"], p["var2"])
        a2 = jnp.maximum(y * s2 + b2, 0.0).astype(jnp.bfloat16)
        z = jax.lax.conv_general_dilated(
            a2, p["w2"].astype(jnp.bfloat16), (1, 1), "SAME",
            dimension_numbers=dn, preferred_element_type=jnp.float32)
        feats.append(z.astype(jnp.bfloat16))
    out = jnp.concatenate([f.astype(jnp.float32) for f in feats], axis=-1)
    return jnp.transpose(out, (0, 3, 1, 2))


if __name__ == "__main__":
    num_layers, num_input_features, bn_size, growth_rate, drop_rate = 2, 8, 2, 8, 0.0
    N, H, W = 2, 16, 16

    key = jax.random.PRNGKey(0)
    kx, kp = jax.random.split(key)
    x = jax.random.normal(kx, (N, num_input_features, H, W), dtype=jnp.float32)  # NCHW
    params = init_params(kp, num_layers, num_input_features, bn_size, growth_rate)

    out = jax.block_until_ready(dense_block_forward(x, params))
    expected_c = num_input_features + num_layers * growth_rate
    assert out.shape == (N, expected_c, H, W), out.shape

    ref = jax.block_until_ready(reference_dense_block(x, params))
    np.testing.assert_allclose(np.asarray(out), np.asarray(ref), rtol=1e-2, atol=1e-2)

    print("KERNEL_OK")
</pallas_src>

<mosaic_0001>
module attributes {stable_mosaic.version = 11 : i64} {
  func.func @_bottleneck_kernel(%arg0: i32, %arg1: memref<256x8xf32, #tpu.memory_space<vmem>>, %arg2: memref<1x8xf32, #tpu.memory_space<vmem>>, %arg3: memref<1x8xf32, #tpu.memory_space<vmem>>, %arg4: memref<8x16xbf16, #tpu.memory_space<vmem>>, %arg5: memref<1x16xf32, #tpu.memory_space<vmem>>, %arg6: memref<1x16xf32, #tpu.memory_space<vmem>>, %arg7: memref<256x16xbf16, #tpu.memory_space<vmem>>) attributes {dimension_semantics = [#tpu.dimension_semantics<parallel>], iteration_bounds = array<i64: 2>, scalar_prefetch = 0 : i64, scratch_operands = 0 : i64, tpu.core_type = #tpu.core_type<tc>, window_params = [{transform_indices = @transform_0, window_bounds = array<i64: 256, 8>}, {pipeline_mode = #tpu.pipeline_mode<synchronous>, transform_indices = @transform_1, window_bounds = array<i64: 1, 8>}, {pipeline_mode = #tpu.pipeline_mode<synchronous>, transform_indices = @transform_2, window_bounds = array<i64: 1, 8>}, {pipeline_mode = #tpu.pipeline_mode<synchronous>, transform_indices = @transform_3, window_bounds = array<i64: 8, 16>}, {pipeline_mode = #tpu.pipeline_mode<synchronous>, transform_indices = @transform_4, window_bounds = array<i64: 1, 16>}, {pipeline_mode = #tpu.pipeline_mode<synchronous>, transform_indices = @transform_5, window_bounds = array<i64: 1, 16>}, {transform_indices = @transform_6, window_bounds = array<i64: 256, 16>}]} {
    %c0 = arith.constant 0 : index
    %c0_0 = arith.constant 0 : index
    %0 = vector.load %arg1[%c0, %c0_0] : memref<256x8xf32, #tpu.memory_space<vmem>>, vector<256x8xf32>
    %c0_1 = arith.constant 0 : index
    %c0_2 = arith.constant 0 : index
    %1 = vector.load %arg2[%c0_1, %c0_2] : memref<1x8xf32, #tpu.memory_space<vmem>>, vector<1x8xf32>
    %2 = vector.broadcast %1 : vector<1x8xf32> to vector<256x8xf32>
    %3 = arith.mulf %0, %2 : vector<256x8xf32>
    %c0_3 = arith.constant 0 : index
    %c0_4 = arith.constant 0 : index
    %4 = vector.load %arg3[%c0_3, %c0_4] : memref<1x8xf32, #tpu.memory_space<vmem>>, vector<1x8xf32>
    %5 = vector.broadcast %4 : vector<1x8xf32> to vector<256x8xf32>
    %6 = arith.addf %3, %5 : vector<256x8xf32>
    %cst = arith.constant 0.000000e+00 : f32
    %7 = vector.broadcast %cst : f32 to vector<256x8xf32>
    %8 = arith.maximumf %6, %7 : vector<256x8xf32>
    %9 = arith.truncf %8 : vector<256x8xf32> to vector<256x8xbf16>
    %c0_5 = arith.constant 0 : index
    %c0_6 = arith.constant 0 : index
    %10 = vector.load %arg4[%c0_5, %c0_6] : memref<8x16xbf16, #tpu.memory_space<vmem>>, vector<8x16xbf16>
    %cst_7 = arith.constant dense<0.000000e+00> : vector<256x16xf32>
    %11 = tpu.matmul %9, %10, %cst_7 {dimension_numbers = #tpu.dot_dimension_numbers<[1], [0], [0], [1], [0, 0, 1, 1], [], []>} : vector<256x8xbf16>, vector<8x16xbf16>, vector<256x16xf32> -> vector<256x16xf32>
    %c0_8 = arith.constant 0 : index
    %c0_9 = arith.constant 0 : index
    %12 = vector.load %arg5[%c0_8, %c0_9] : memref<1x16xf32, #tpu.memory_space<vmem>>, vector<1x16xf32>
    %13 = vector.broadcast %12 : vector<1x16xf32> to vector<256x16xf32>
    %14 = arith.mulf %11, %13 : vector<256x16xf32>
    %c0_10 = arith.constant 0 : index
    %c0_11 = arith.constant 0 : index
    %15 = vector.load %arg6[%c0_10, %c0_11] : memref<1x16xf32, #tpu.memory_space<vmem>>, vector<1x16xf32>
    %16 = vector.broadcast %15 : vector<1x16xf32> to vector<256x16xf32>
    %17 = arith.addf %14, %16 : vector<256x16xf32>
    %cst_12 = arith.constant 0.000000e+00 : f32
    %18 = vector.broadcast %cst_12 : f32 to vector<256x16xf32>
    %19 = arith.maximumf %17, %18 : vector<256x16xf32>
    %20 = arith.truncf %19 : vector<256x16xf32> to vector<256x16xbf16>
    %c0_13 = arith.constant 0 : index
    %c0_14 = arith.constant 0 : index
    %21 = vector.load %arg7[%c0_13, %c0_14] : memref<256x16xbf16, #tpu.memory_space<vmem>>, vector<256x16xbf16>
    tpu.vector_store %arg7[%c0_13, %c0_14], %20 {strides = array<i32>} : memref<256x16xbf16, #tpu.memory_space<vmem>>, vector<256x16xbf16>,
    return
  }
  func.func @transform_0(%arg0: i32) -> (i32, i32) {
    %c0_i32 = arith.constant 0 : i32
    %c0_i32_0 = arith.constant 0 : i32
    return %arg0, %c0_i32 : i32, i32
  }
  func.func @transform_1(%arg0: i32) -> (i32, i32) {
    %c0_i32 = arith.constant 0 : i32
    %c0_i32_0 = arith.constant 0 : i32
    %c0_i32_1 = arith.constant 0 : i32
    return %c0_i32, %c0_i32_0 : i32, i32
  }
  func.func @transform_2(%arg0: i32) -> (i32, i32) {
    %c0_i32 = arith.constant 0 : i32
    %c0_i32_0 = arith.constant 0 : i32
    %c0_i32_1 = arith.constant 0 : i32
    return %c0_i32, %c0_i32_0 : i32, i32
  }
  func.func @transform_3(%arg0: i32) -> (i32, i32) {
    %c0_i32 = arith.constant 0 : i32
    %c0_i32_0 = arith.constant 0 : i32
    %c0_i32_1 = arith.constant 0 : i32
    return %c0_i32, %c0_i32_0 : i32, i32
  }
  func.func @transform_4(%arg0: i32) -> (i32, i32) {
    %c0_i32 = arith.constant 0 : i32
    %c0_i32_0 = arith.constant 0 : i32
    %c0_i32_1 = arith.constant 0 : i32
    return %c0_i32, %c0_i32_0 : i32, i32
  }
  func.func @transform_5(%arg0: i32) -> (i32, i32) {
    %c0_i32 = arith.constant 0 : i32
    %c0_i32_0 = arith.constant 0 : i32
    %c0_i32_1 = arith.constant 0 : i32
    return %c0_i32, %c0_i32_0 : i32, i32
  }
  func.func @transform_6(%arg0: i32) -> (i32, i32) {
    %c0_i32 = arith.constant 0 : i32
    %c0_i32_0 = arith.constant 0 : i32
    return %arg0, %c0_i32 : i32, i32
  }
}

module attributes {stable_mosaic.version = 11 : i64} {
  func.func @_bottleneck_kernel(%arg0: i32, %arg1: memref<256x8xf32, #tpu.memory_space<vmem>>, %arg2: memref<256x8xbf16, #tpu.memory_space<vmem>>, %arg3: memref<1x8xf32, #tpu.memory_space<vmem>>, %arg4: memref<1x8xf32, #tpu.memory_space<vmem>>, %arg5: memref<1x8xf32, #tpu.memory_space<vmem>>, %arg6: memref<1x8xf32, #tpu.memory_space<vmem>>, %arg7: memref<8x16xbf16, #tpu.memory_space<vmem>>, %arg8: memref<8x16xbf16, #tpu.memory_space<vmem>>, %arg9: memref<1x16xf32, #tpu.memory_space<vmem>>, %arg10: memref<1x16xf32, #tpu.memory_space<vmem>>, %arg11: memref<256x16xbf16, #tpu.memory_space<vmem>>) attributes {dimension_semantics = [#tpu.dimension_semantics<parallel>], iteration_bounds = array<i64: 2>, scalar_prefetch = 0 : i64, scratch_operands = 0 : i64, tpu.core_type = #tpu.core_type<tc>, window_params = [{transform_indices = @transform_0, window_bounds = array<i64: 256, 8>}, {transform_indices = @transform_1, window_bounds = array<i64: 256, 8>}, {pipeline_mode = #tpu.pipeline_mode<synchronous>, transform_indices = @transform_2, window_bounds = array<i64: 1, 8>}, {pipeline_mode = #tpu.pipeline_mode<synchronous>, transform_indices = @transform_3, window_bounds = array<i64: 1, 8>}, {pipeline_mode = #tpu.pipeline_mode<synchronous>, transform_indices = @transform_4, window_bounds = array<i64: 1, 8>}, {pipeline_mode = #tpu.pipeline_mode<synchronous>, transform_indices = @transform_5, window_bounds = array<i64: 1, 8>}, {pipeline_mode = #tpu.pipeline_mode<synchronous>, transform_indices = @transform_6, window_bounds = array<i64: 8, 16>}, {pipeline_mode = #tpu.pipeline_mode<synchronous>, transform_indices = @transform_7, window_bounds = array<i64: 8, 16>}, {pipeline_mode = #tpu.pipeline_mode<synchronous>, transform_indices = @transform_8, window_bounds = array<i64: 1, 16>}, {pipeline_mode = #tpu.pipeline_mode<synchronous>, transform_indices = @transform_9, window_bounds = array<i64: 1, 16>}, {transform_indices = @transform_10, window_bounds = array<i64: 256, 16>}]} {
    %c0 = arith.constant 0 : index
    %c0_0 = arith.constant 0 : index
    %0 = vector.load %arg1[%c0, %c0_0] : memref<256x8xf32, #tpu.memory_space<vmem>>, vector<256x8xf32>
    %c0_1 = arith.constant 0 : index
    %c0_2 = arith.constant 0 : index
    %1 = vector.load %arg3[%c0_1, %c0_2] : memref<1x8xf32, #tpu.memory_space<vmem>>, vector<1x8xf32>
    %2 = vector.broadcast %1 : vector<1x8xf32> to vector<256x8xf32>
    %3 = arith.mulf %0, %2 : vector<256x8xf32>
    %c0_3 = arith.constant 0 : index
    %c0_4 = arith.constant 0 : index
    %4 = vector.load %arg5[%c0_3, %c0_4] : memref<1x8xf32, #tpu.memory_space<vmem>>, vector<1x8xf32>
    %5 = vector.broadcast %4 : vector<1x8xf32> to vector<256x8xf32>
    %6 = arith.addf %3, %5 : vector<256x8xf32>
    %cst = arith.constant 0.000000e+00 : f32
    %7 = vector.broadcast %cst : f32 to vector<256x8xf32>
    %8 = arith.maximumf %6, %7 : vector<256x8xf32>
    %9 = arith.truncf %8 : vector<256x8xf32> to vector<256x8xbf16>
    %c0_5 = arith.constant 0 : index
    %c0_6 = arith.constant 0 : index
    %10 = vector.load %arg7[%c0_5, %c0_6] : memref<8x16xbf16, #tpu.memory_space<vmem>>, vector<8x16xbf16>
    %cst_7 = arith.constant dense<0.000000e+00> : vector<256x16xf32>
    %11 = tpu.matmul %9, %10, %cst_7 {dimension_numbers = #tpu.dot_dimension_numbers<[1], [0], [0], [1], [0, 0, 1, 1], [], []>} : vector<256x8xbf16>, vector<8x16xbf16>, vector<256x16xf32> -> vector<256x16xf32>
    %c0_8 = arith.constant 0 : index
    %c0_9 = arith.constant 0 : index
    %12 = vector.load %arg2[%c0_8, %c0_9] : memref<256x8xbf16, #tpu.memory_space<vmem>>, vector<256x8xbf16>
    %13 = arith.extf %12 : vector<256x8xbf16> to vector<256x8xf32>
    %c0_10 = arith.constant 0 : index
    %c0_11 = arith.constant 0 : index
    %14 = vector.load %arg4[%c0_10, %c0_11] : memref<1x8xf32, #tpu.memory_space<vmem>>, vector<1x8xf32>
    %15 = vector.broadcast %14 : vector<1x8xf32> to vector<256x8xf32>
    %16 = arith.mulf %13, %15 : vector<256x8xf32>
    %c0_12 = arith.constant 0 : index
    %c0_13 = arith.constant 0 : index
    %17 = vector.load %arg6[%c0_12, %c0_13] : memref<1x8xf32, #tpu.memory_space<vmem>>, vector<1x8xf32>
    %18 = vector.broadcast %17 : vector<1x8xf32> to vector<256x8xf32>
    %19 = arith.addf %16, %18 : vector<256x8xf32>
    %cst_14 = arith.constant 0.000000e+00 : f32
    %20 = vector.broadcast %cst_14 : f32 to vector<256x8xf32>
    %21 = arith.maximumf %19, %20 : vector<256x8xf32>
    %22 = arith.truncf %21 : vector<256x8xf32> to vector<256x8xbf16>
    %c0_15 = arith.constant 0 : index
    %c0_16 = arith.constant 0 : index
    %23 = vector.load %arg8[%c0_15, %c0_16] : memref<8x16xbf16, #tpu.memory_space<vmem>>, vector<8x16xbf16>
    %cst_17 = arith.constant dense<0.000000e+00> : vector<256x16xf32>
    %24 = tpu.matmul %22, %23, %cst_17 {dimension_numbers = #tpu.dot_dimension_numbers<[1], [0], [0], [1], [0, 0, 1, 1], [], []>} : vector<256x8xbf16>, vector<8x16xbf16>, vector<256x16xf32> -> vector<256x16xf32>
    %25 = arith.addf %11, %24 : vector<256x16xf32>
    %c0_18 = arith.constant 0 : index
    %c0_19 = arith.constant 0 : index
    %26 = vector.load %arg9[%c0_18, %c0_19] : memref<1x16xf32, #tpu.memory_space<vmem>>, vector<1x16xf32>
    %27 = vector.broadcast %26 : vector<1x16xf32> to vector<256x16xf32>
    %28 = arith.mulf %25, %27 : vector<256x16xf32>
    %c0_20 = arith.constant 0 : index
    %c0_21 = arith.constant 0 : index
    %29 = vector.load %arg10[%c0_20, %c0_21] : memref<1x16xf32, #tpu.memory_space<vmem>>, vector<1x16xf32>
    %30 = vector.broadcast %29 : vector<1x16xf32> to vector<256x16xf32>
    %31 = arith.addf %28, %30 : vector<256x16xf32>
    %cst_22 = arith.constant 0.000000e+00 : f32
    %32 = vector.broadcast %cst_22 : f32 to vector<256x16xf32>
    %33 = arith.maximumf %31, %32 : vector<256x16xf32>
    %34 = arith.truncf %33 : vector<256x16xf32> to vector<256x16xbf16>
    %c0_23 = arith.constant 0 : index
    %c0_24 = arith.constant 0 : index
    %35 = vector.load %arg11[%c0_23, %c0_24] : memref<256x16xbf16, #tpu.memory_space<vmem>>, vector<256x16xbf16>
    tpu.vector_store %arg11[%c0_23, %c0_24], %34 {strides = array<i32>} : memref<256x16xbf16, #tpu.memory_space<vmem>>, vector<256x16xbf16>,
    return
  }
  func.func @transform_0(%arg0: i32) -> (i32, i32) {
    %c0_i32 = arith.constant 0 : i32
    %c0_i32_0 = arith.constant 0 : i32
    return %arg0, %c0_i32 : i32, i32
  }
  func.func @transform_1(%arg0: i32) -> (i32, i32) {
    %c0_i32 = arith.constant 0 : i32
    %c0_i32_0 = arith.constant 0 : i32
    return %arg0, %c0_i32 : i32, i32
  }
  func.func @transform_2(%arg0: i32) -> (i32, i32) {
    %c0_i32 = arith.constant 0 : i32
    %c0_i32_0 = arith.constant 0 : i32
    %c0_i32_1 = arith.constant 0 : i32
    return %c0_i32, %c0_i32_0 : i32, i32
  }
  func.func @transform_3(%arg0: i32) -> (i32, i32) {
    %c0_i32 = arith.constant 0 : i32
    %c0_i32_0 = arith.constant 0 : i32
    %c0_i32_1 = arith.constant 0 : i32
    return %c0_i32, %c0_i32_0 : i32, i32
  }
  func.func @transform_4(%arg0: i32) -> (i32, i32) {
    %c0_i32 = arith.constant 0 : i32
    %c0_i32_0 = arith.constant 0 : i32
    %c0_i32_1 = arith.constant 0 : i32
    return %c0_i32, %c0_i32_0 : i32, i32
  }
  func.func @transform_5(%arg0: i32) -> (i32, i32) {
    %c0_i32 = arith.constant 0 : i32
    %c0_i32_0 = arith.constant 0 : i32
    %c0_i32_1 = arith.constant 0 : i32
    return %c0_i32, %c0_i32_0 : i32, i32
  }
  func.func @transform_6(%arg0: i32) -> (i32, i32) {
    %c0_i32 = arith.constant 0 : i32
    %c0_i32_0 = arith.constant 0 : i32
    %c0_i32_1 = arith.constant 0 : i32
    return %c0_i32, %c0_i32_0 : i32, i32
  }
  func.func @transform_7(%arg0: i32) -> (i32, i32) {
    %c0_i32 = arith.constant 0 : i32
    %c0_i32_0 = arith.constant 0 : i32
    %c0_i32_1 = arith.constant 0 : i32
    return %c0_i32, %c0_i32_0 : i32, i32
  }
  func.func @transform_8(%arg0: i32) -> (i32, i32) {
    %c0_i32 = arith.constant 0 : i32
    %c0_i32_0 = arith.constant 0 : i32
    %c0_i32_1 = arith.constant 0 : i32
    return %c0_i32, %c0_i32_0 : i32, i32
  }
  func.func @transform_9(%arg0: i32) -> (i32, i32) {
    %c0_i32 = arith.constant 0 : i32
    %c0_i32_0 = arith.constant 0 : i32
    %c0_i32_1 = arith.constant 0 : i32
    return %c0_i32, %c0_i32_0 : i32, i32
  }
  func.func @transform_10(%arg0: i32) -> (i32, i32) {
    %c0_i32 = arith.constant 0 : i32
    %c0_i32_0 = arith.constant 0 : i32
    return %arg0, %c0_i32 : i32, i32
  }
}

module attributes {stable_mosaic.version = 11 : i64} {
  func.func @_conv3x3_kernel(%arg0: i32, %arg1: i32, %arg2: memref<1x18x18x16xbf16, #tpu.memory_space<vmem>>, %arg3: memref<9x16x8xbf16, #tpu.memory_space<vmem>>, %arg4: memref<1x16x16x8xbf16, #tpu.memory_space<vmem>>) attributes {dimension_semantics = [#tpu.dimension_semantics<parallel>, #tpu.dimension_semantics<parallel>], iteration_bounds = array<i64: 2, 1>, scalar_prefetch = 0 : i64, scratch_operands = 0 : i64, tpu.core_type = #tpu.core_type<tc>, window_params = [{transform_indices = @transform_0, window_bounds = array<i64: 1, 18, 18, 16>}, {pipeline_mode = #tpu.pipeline_mode<synchronous>, transform_indices = @transform_1, window_bounds = array<i64: 9, 16, 8>}, {transform_indices = @transform_2, window_bounds = array<i64: 1, 16, 16, 8>}]} {
    %c16_i32 = arith.constant 16 : i32
    %0 = arith.muli %arg1, %c16_i32 : i32
    %1 = tpu.assume_multiple %0, 16 : i32
    %cst = arith.constant 0.000000e+00 : f32
    %2 = vector.broadcast %cst : f32 to vector<256x8xf32>
    %c0_i32 = arith.constant 0 : i32
    %3 = arith.addi %1, %c0_i32 : i32
    %c0 = arith.constant 0 : index
    %4 = arith.index_cast %3 : i32 to index
    %c0_0 = arith.constant 0 : index
    %c0_1 = arith.constant 0 : index
    %5 = vector.load %arg2[%c0, %4, %c0_0, %c0_1] : memref<1x18x18x16xbf16, #tpu.memory_space<vmem>>, vector<1x16x18x16xbf16>
    %6 = vector.shape_cast %5 : vector<1x16x18x16xbf16> to vector<16x18x16xbf16>
    %7 = vector.extract_strided_slice %6 {offsets = [0, 0, 0], sizes = [16, 16, 16], strides = [1, 1, 1]} : vector<16x18x16xbf16> to vector<16x16x16xbf16>
    %8 = vector.shape_cast %7 : vector<16x16x16xbf16> to vector<256x16xbf16>
    %c0_2 = arith.constant 0 : index
    %c0_3 = arith.constant 0 : index
    %c0_4 = arith.constant 0 : index
    %9 = vector.load %arg3[%c0_2, %c0_3, %c0_4] : memref<9x16x8xbf16, #tpu.memory_space<vmem>>, vector<1x16x8xbf16>
    %10 = vector.shape_cast %9 : vector<1x16x8xbf16> to vector<16x8xbf16>
    %cst_5 = arith.constant dense<0.000000e+00> : vector<256x8xf32>
    %11 = tpu.matmul %8, %10, %cst_5 {dimension_numbers = #tpu.dot_dimension_numbers<[1], [0], [0], [1], [0, 0, 1, 1], [], []>} : vector<256x16xbf16>, vector<16x8xbf16>, vector<256x8xf32> -> vector<256x8xf32>
    %12 = arith.addf %2, %11 : vector<256x8xf32>
    %13 = vector.extract_strided_slice %6 {offsets = [0, 1, 0], sizes = [16, 16, 16], strides = [1, 1, 1]} : vector<16x18x16xbf16> to vector<16x16x16xbf16>
    %14 = vector.shape_cast %13 : vector<16x16x16xbf16> to vector<256x16xbf16>
    %c1 = arith.constant 1 : index
    %c0_6 = arith.constant 0 : index
    %c0_7 = arith.constant 0 : index
    %15 = vector.load %arg3[%c1, %c0_6, %c0_7] : memref<9x16x8xbf16, #tpu.memory_space<vmem>>, vector<1x16x8xbf16>
    %16 = vector.shape_cast %15 : vector<1x16x8xbf16> to vector<16x8xbf16>
    %cst_8 = arith.constant dense<0.000000e+00> : vector<256x8xf32>
    %17 = tpu.matmul %14, %16, %cst_8 {dimension_numbers = #tpu.dot_dimension_numbers<[1], [0], [0], [1], [0, 0, 1, 1], [], []>} : vector<256x16xbf16>, vector<16x8xbf16>, vector<256x8xf32> -> vector<256x8xf32>
    %18 = arith.addf %12, %17 : vector<256x8xf32>
    %19 = vector.extract_strided_slice %6 {offsets = [0, 2, 0], sizes = [16, 16, 16], strides = [1, 1, 1]} : vector<16x18x16xbf16> to vector<16x16x16xbf16>
    %20 = vector.shape_cast %19 : vector<16x16x16xbf16> to vector<256x16xbf16>
    %c2 = arith.constant 2 : index
    %c0_9 = arith.constant 0 : index
    %c0_10 = arith.constant 0 : index
    %21 = vector.load %arg3[%c2, %c0_9, %c0_10] : memref<9x16x8xbf16, #tpu.memory_space<vmem>>, vector<1x16x8xbf16>
    %22 = vector.shape_cast %21 : vector<1x16x8xbf16> to vector<16x8xbf16>
    %cst_11 = arith.constant dense<0.000000e+00> : vector<256x8xf32>
    %23 = tpu.matmul %20, %22, %cst_11 {dimension_numbers = #tpu.dot_dimension_numbers<[1], [0], [0], [1], [0, 0, 1, 1], [], []>} : vector<256x16xbf16>, vector<16x8xbf16>, vector<256x8xf32> -> vector<256x8xf32>
    %24 = arith.addf %18, %23 : vector<256x8xf32>
    %c1_i32 = arith.constant 1 : i32
    %25 = arith.addi %1, %c1_i32 : i32
    %c0_12 = arith.constant 0 : index
    %26 = arith.index_cast %25 : i32 to index
    %c0_13 = arith.constant 0 : index
    %c0_14 = arith.constant 0 : index
    %27 = vector.load %arg2[%c0_12, %26, %c0_13, %c0_14] : memref<1x18x18x16xbf16, #tpu.memory_space<vmem>>, vector<1x16x18x16xbf16>
    %28 = vector.shape_cast %27 : vector<1x16x18x16xbf16> to vector<16x18x16xbf16>
    %29 = vector.extract_strided_slice %28 {offsets = [0, 0, 0], sizes = [16, 16, 16], strides = [1, 1, 1]} : vector<16x18x16xbf16> to vector<16x16x16xbf16>
    %30 = vector.shape_cast %29 : vector<16x16x16xbf16> to vector<256x16xbf16>
    %c3 = arith.constant 3 : index
    %c0_15 = arith.constant 0 : index
    %c0_16 = arith.constant 0 : index
    %31 = vector.load %arg3[%c3, %c0_15, %c0_16] : memref<9x16x8xbf16, #tpu.memory_space<vmem>>, vector<1x16x8xbf16>
    %32 = vector.shape_cast %31 : vector<1x16x8xbf16> to vector<16x8xbf16>
    %cst_17 = arith.constant dense<0.000000e+00> : vector<256x8xf32>
    %33 = tpu.matmul %30, %32, %cst_17 {dimension_numbers = #tpu.dot_dimension_numbers<[1], [0], [0], [1], [0, 0, 1, 1], [], []>} : vector<256x16xbf16>, vector<16x8xbf16>, vector<256x8xf32> -> vector<256x8xf32>
    %34 = arith.addf %24, %33 : vector<256x8xf32>
    %35 = vector.extract_strided_slice %28 {offsets = [0, 1, 0], sizes = [16, 16, 16], strides = [1, 1, 1]} : vector<16x18x16xbf16> to vector<16x16x16xbf16>
    %36 = vector.shape_cast %35 : vector<16x16x16xbf16> to vector<256x16xbf16>
    %c4 = arith.constant 4 : index
    %c0_18 = arith.constant 0 : index
    %c0_19 = arith.constant 0 : index
    %37 = vector.load %arg3[%c4, %c0_18, %c0_19] : memref<9x16x8xbf16, #tpu.memory_space<vmem>>, vector<1x16x8xbf16>
    %38 = vector.shape_cast %37 : vector<1x16x8xbf16> to vector<16x8xbf16>
    %cst_20 = arith.constant dense<0.000000e+00> : vector<256x8xf32>
    %39 = tpu.matmul %36, %38, %cst_20 {dimension_numbers = #tpu.dot_dimension_numbers<[1], [0], [0], [1], [0, 0, 1, 1], [], []>} : vector<256x16xbf16>, vector<16x8xbf16>, vector<256x8xf32> -> vector<256x8xf32>
    %40 = arith.addf %34, %39 : vector<256x8xf32>
    %41 = vector.extract_strided_slice %28 {offsets = [0, 2, 0], sizes = [16, 16, 16], strides = [1, 1, 1]} : vector<16x18x16xbf16> to vector<16x16x16xbf16>
    %42 = vector.shape_cast %41 : vector<16x16x16xbf16> to vector<256x16xbf16>
    %c5 = arith.constant 5 : index
    %c0_21 = arith.constant 0 : index
    %c0_22 = arith.constant 0 : index
    %43 = vector.load %arg3[%c5, %c0_21, %c0_22] : memref<9x16x8xbf16, #tpu.memory_space<vmem>>, vector<1x16x8xbf16>
    %44 = vector.shape_cast %43 : vector<1x16x8xbf16> to vector<16x8xbf16>
    %cst_23 = arith.constant dense<0.000000e+00> : vector<256x8xf32>
    %45 = tpu.matmul %42, %44, %cst_23 {dimension_numbers = #tpu.dot_dimension_numbers<[1], [0], [0], [1], [0, 0, 1, 1], [], []>} : vector<256x16xbf16>, vector<16x8xbf16>, vector<256x8xf32> -> vector<256x8xf32>
    %46 = arith.addf %40, %45 : vector<256x8xf32>
    %c2_i32 = arith.constant 2 : i32
    %47 = arith.addi %1, %c2_i32 : i32
    %c0_24 = arith.constant 0 : index
    %48 = arith.index_cast %47 : i32 to index
    %c0_25 = arith.constant 0 : index
    %c0_26 = arith.constant 0 : index
    %49 = vector.load %arg2[%c0_24, %48, %c0_25, %c0_26] : memref<1x18x18x16xbf16, #tpu.memory_space<vmem>>, vector<1x16x18x16xbf16>
    %50 = vector.shape_cast %49 : vector<1x16x18x16xbf16> to vector<16x18x16xbf16>
    %51 = vector.extract_strided_slice %50 {offsets = [0, 0, 0], sizes = [16, 16, 16], strides = [1, 1, 1]} : vector<16x18x16xbf16> to vector<16x16x16xbf16>
    %52 = vector.shape_cast %51 : vector<16x16x16xbf16> to vector<256x16xbf16>
    %c6 = arith.constant 6 : index
    %c0_27 = arith.constant 0 : index
    %c0_28 = arith.constant 0 : index
    %53 = vector.load %arg3[%c6, %c0_27, %c0_28] : memref<9x16x8xbf16, #tpu.memory_space<vmem>>, vector<1x16x8xbf16>
    %54 = vector.shape_cast %53 : vector<1x16x8xbf16> to vector<16x8xbf16>
    %cst_29 = arith.constant dense<0.000000e+00> : vector<256x8xf32>
    %55 = tpu.matmul %52, %54, %cst_29 {dimension_numbers = #tpu.dot_dimension_numbers<[1], [0], [0], [1], [0, 0, 1, 1], [], []>} : vector<256x16xbf16>, vector<16x8xbf16>, vector<256x8xf32> -> vector<256x8xf32>
    %56 = arith.addf %46, %55 : vector<256x8xf32>
    %57 = vector.extract_strided_slice %50 {offsets = [0, 1, 0], sizes = [16, 16, 16], strides = [1, 1, 1]} : vector<16x18x16xbf16> to vector<16x16x16xbf16>
    %58 = vector.shape_cast %57 : vector<16x16x16xbf16> to vector<256x16xbf16>
    %c7 = arith.constant 7 : index
    %c0_30 = arith.constant 0 : index
    %c0_31 = arith.constant 0 : index
    %59 = vector.load %arg3[%c7, %c0_30, %c0_31] : memref<9x16x8xbf16, #tpu.memory_space<vmem>>, vector<1x16x8xbf16>
    %60 = vector.shape_cast %59 : vector<1x16x8xbf16> to vector<16x8xbf16>
    %cst_32 = arith.constant dense<0.000000e+00> : vector<256x8xf32>
    %61 = tpu.matmul %58, %60, %cst_32 {dimension_numbers = #tpu.dot_dimension_numbers<[1], [0], [0], [1], [0, 0, 1, 1], [], []>} : vector<256x16xbf16>, vector<16x8xbf16>, vector<256x8xf32> -> vector<256x8xf32>
    %62 = arith.addf %56, %61 : vector<256x8xf32>
    %63 = vector.extract_strided_slice %50 {offsets = [0, 2, 0], sizes = [16, 16, 16], strides = [1, 1, 1]} : vector<16x18x16xbf16> to vector<16x16x16xbf16>
    %64 = vector.shape_cast %63 : vector<16x16x16xbf16> to vector<256x16xbf16>
    %c8 = arith.constant 8 : index
    %c0_33 = arith.constant 0 : index
    %c0_34 = arith.constant 0 : index
    %65 = vector.load %arg3[%c8, %c0_33, %c0_34] : memref<9x16x8xbf16, #tpu.memory_space<vmem>>, vector<1x16x8xbf16>
    %66 = vector.shape_cast %65 : vector<1x16x8xbf16> to vector<16x8xbf16>
    %cst_35 = arith.constant dense<0.000000e+00> : vector<256x8xf32>
    %67 = tpu.matmul %64, %66, %cst_35 {dimension_numbers = #tpu.dot_dimension_numbers<[1], [0], [0], [1], [0, 0, 1, 1], [], []>} : vector<256x16xbf16>, vector<16x8xbf16>, vector<256x8xf32> -> vector<256x8xf32>
    %68 = arith.addf %62, %67 : vector<256x8xf32>
    %69 = vector.shape_cast %68 : vector<256x8xf32> to vector<1x16x16x8xf32>
    %70 = arith.truncf %69 : vector<1x16x16x8xf32> to vector<1x16x16x8xbf16>
    %c0_36 = arith.constant 0 : index
    %c0_37 = arith.constant 0 : index
    %c0_38 = arith.constant 0 : index
    %c0_39 = arith.constant 0 : index
    %71 = vector.load %arg4[%c0_36, %c0_37, %c0_38, %c0_39] : memref<1x16x16x8xbf16, #tpu.memory_space<vmem>>, vector<1x16x16x8xbf16>
    tpu.vector_store %arg4[%c0_36, %c0_37, %c0_38, %c0_39], %70 {strides = array<i32>} : memref<1x16x16x8xbf16, #tpu.memory_space<vmem>>, vector<1x16x16x8xbf16>,
    return
  }
  func.func @transform_0(%arg0: i32, %arg1: i32) -> (i32, i32, i32, i32) {
    %c0_i32 = arith.constant 0 : i32
    %c0_i32_0 = arith.constant 0 : i32
    %c0_i32_1 = arith.constant 0 : i32
    %c0_i32_2 = arith.constant 0 : i32
    return %arg0, %c0_i32, %c0_i32_0, %c0_i32_1 : i32, i32, i32, i32
  }
  func.func @transform_1(%arg0: i32, %arg1: i32) -> (i32, i32, i32) {
    %c0_i32 = arith.constant 0 : i32
    %c0_i32_0 = arith.constant 0 : i32
    %c0_i32_1 = arith.constant 0 : i32
    %c0_i32_2 = arith.constant 0 : i32
    return %c0_i32, %c0_i32_0, %c0_i32_1 : i32, i32, i32
  }
  func.func @transform_2(%arg0: i32, %arg1: i32) -> (i32, i32, i32, i32) {
    %c0_i32 = arith.constant 0 : i32
    %c0_i32_0 = arith.constant 0 : i32
    %c0_i32_1 = arith.constant 0 : i32
    return %arg0, %arg1, %c0_i32, %c0_i32_0 : i32, i32, i32, i32
  }
}

</mosaic_0001>

<bundles_post_ra>
// kernel: dense_block_forward.4
= control target key start
LH: loop header
LB: loop body
LE: loop exit
PB: predicated region body
PF: predicated region fallthrough
CT: control target
= control target key end

     0   :  { %s1157_s21 = smov 0   ;;  %s1445_s0 = inlined_call_operand.vmem [shape: f32[512,8], index: 0, kind: input, shape index: {}]   ;;  %s1446_s1 = inlined_call_operand.vmem [shape: f32[1,8], index: 1, kind: input, shape index: {}]   ;;  %s1447_s2 = inlined_call_operand.vmem [shape: f32[1,8], index: 2, kind: input, shape index: {}]   ;;  %s1448_s3 = inlined_call_operand.vmem [shape: bf16[8,16], index: 3, kind: input, shape index: {}]   ;;  %s1449_s4 = inlined_call_operand.vmem [shape: f32[1,16], index: 4, kind: input, shape index: {}]   ;;  %s1450_s5 = inlined_call_operand.vmem [shape: f32[1,16], index: 5, kind: input, shape index: {}]   ;;  %s1451_s6 = inlined_call_operand.vmem [shape: bf16[512,16], index: 6, kind: output, shape index: {}]  }
   0x1 LB: > { %s956_s22 = sadd.s32 4294967295, %s1120_s21   ;;  %p960_p0 = scmp.ge.s32.totalorder %s1120_s21, 1  ;;  %s1120_s21 = sphi %s1157_s21, %s16_s21  }
   0x2   : > { %p213_p1 = scmp.lt.s32.totalorder %s1120_s21, 3 }
   0x4   : > { %p214_p2 = pnand %p960_p0, %p213_p1 }
   0x5   : > { %v414_v0 = vld [vmem:[%s1448_s3] sm:$0xf] (!%p214_p2)  ;;  %vm464_vm0 = vcmask (!%p214_p2), 1043456   ;;  %s961_s25 = sshll.u32 (!%p214_p2), %s956_s22, 5  ;;  %vm415_vm1 = vcmask (!%p214_p2), 64512   ;;  %vm867_vm2 = vcmask (!%p214_p2), 125952  }
   0x6   : > { %217 = sbr.rel (%p214_p2) target bundleno = 276 (0x114), region = 44  ;;  %1104 = vmatprep.subr.msk.bf16.mxu0 (!%p214_p2), %vm464_vm0, %v414_v0  ;;  %1105 = vmatprep.subr.msk.bf16.mxu1 (!%p214_p2), %vm464_vm0, %v414_v0  ;;  %v466_v1 = vsel (!%p214_p2), %vm464_vm0, %v414_v0, 0  ;;  %p244_p3 = scmp.lt.s32.totalorder (!%p214_p2), %s961_s25, 63  ;;  %v1174_v2 = vld [vmem:[%s1446_s1] ss:$0 sm:$0xff] (!%p214_p2) }
   0x7   : > { %1069 = vmatpush3.bf16.msra.mxu0 (!%p214_p2), %v466_v1  ;;  %1103 = vmatpush3.bf16.msra.mxu1 (!%p214_p2), %v466_v1  ;;  %v1184_v3 = vld [vmem:[%s1447_s2] ss:$0 sm:$0xff] (!%p214_p2) }
   0xd   : > { %s1453_s25 = smov (!%p244_p3, %s961_s25), 63 }
   0xe   : > { %s962_s26 = sshll.u32 %s1453_s25, 3  ;;  %s964_s14 = sshll.u32 %s1453_s25, 2 }
   0xf   : > { %s1179_s7 = scalar_lea.vmem %s1445_s0, %s962_s26  ;;  %s1323_s17 = scalar_lea.vmem %s1451_s6, %s964_s14 }
  0x10   : > { %v256_v4 = vld [vmem:[%s1179_s7] sm:$0xff]  ;;  %v257_v5 = vld [vmem:[%s1179_s7 + $0x8] sm:$0xff]  ;;  %v258_v11 = vld [vmem:[%s1179_s7 + $0x10] sm:$0xff] }
  0x11   : > { %v272_v6 = vld [vmem:[%s1179_s7 + $0x80] sm:$0xff]  ;;  %v295_v7 = vmul.f32 %v1174_v2, %v256_v4  ;;  %v296_v8 = vmul.f32 %v1174_v2, %v257_v5  ;;  %v273_v9 = vld [vmem:[%s1179_s7 + $0x88] sm:$0xff]  ;;  %v259_v12 = vld [vmem:[%s1179_s7 + $0x18] sm:$0xff]  ;;  %v297_v14 = vmul.f32 %v1174_v2, %v258_v11 }
  0x12   : > { %v311_v10 = vmul.f32 %v1174_v2, %v272_v6  ;;  %v312_v13 = vmul.f32 %v1174_v2, %v273_v9  ;;  %v298_v15 = vmul.f32 %v1174_v2, %v259_v12  ;;  %v274_v16 = vld [vmem:[%s1179_s7 + $0x90] sm:$0xff]  ;;  %v275_v17 = vld [vmem:[%s1179_s7 + $0x98] sm:$0xff]  ;;  %v260_v26 = vld [vmem:[%s1179_s7 + $0x20] sm:$0xff] }
  0x13   : > { %v334_v18 = vadd.f32 %v1184_v3, %v295_v7  ;;  %v335_v19 = vadd.f32 %v1184_v3, %v296_v8  ;;  %v313_v21 = vmul.f32 %v1174_v2, %v274_v16  ;;  %v336_v23 = vadd.f32 %v1184_v3, %v297_v14  ;;  %v261_v27 = vld [vmem:[%s1179_s7 + $0x28] sm:$0xff]  ;;  %v276_v32 = vld [vmem:[%s1179_s7 + $0xa0] sm:$0xff]  ;;  %v262_v38 = vld [vmem:[%s1179_s7 + $0x30] sm:$0xff] }
  0x14   : > { %v350_v20 = vadd.f32 %v1184_v3, %v311_v10  ;;  %v351_v22 = vadd.f32 %v1184_v3, %v312_v13  ;;  %v337_v24 = vadd.f32 %v1184_v3, %v298_v15  ;;  %v314_v25 = vmul.f32 %v1174_v2, %v275_v17  ;;  %v277_v37 = vld [vmem:[%s1179_s7 + $0xa8] sm:$0xff]  ;;  %v263_v43 = vld [vmem:[%s1179_s7 + $0x38] sm:$0xff]  ;;  %v278_v52 = vld [vmem:[%s1179_s7 + $0xb0] sm:$0xff] }
  0x15   : > { %v366_v28 = vmax.f32 %v334_v18, 0.0  ;;  %v367_v29 = vmax.f32 %v335_v19, 0.0  ;;  %v352_v31 = vadd.f32 %v1184_v3, %v313_v21  ;;  %v368_v34 = vmax.f32 %v336_v23, 0.0  ;;  %v279_v53 = vld [vmem:[%s1179_s7 + $0xb8] sm:$0xff]  ;;  %v264_v57 = vld [vmem:[%s1179_s7 + $0x40] sm:$0xff]  ;;  %v265_v62 = vld [vmem:[%s1179_s7 + $0x48] sm:$0xff] }
  0x16   : > { %v382_v30 = vmax.f32 %v350_v20, 0.0  ;;  %v383_v33 = vmax.f32 %v351_v22, 0.0  ;;  %v369_v35 = vmax.f32 %v337_v24, 0.0  ;;  %v353_v36 = vadd.f32 %v1184_v3, %v314_v25  ;;  %v280_v5 = vld [vmem:[%s1179_s7 + $0xc0] sm:$0xff]  ;;  %v281_v6 = vld [vmem:[%s1179_s7 + $0xc8] sm:$0xff]  ;;  %v266_v15 = vld [vmem:[%s1179_s7 + $0x50] sm:$0xff] }
  0x17   : > { %v398_v39 = vpack.c.bf16 %v367_v29, %v366_v28  ;;  %v384_v40 = vmax.f32 %v352_v31, 0.0  ;;  %v299_v41 = vmul.f32 %v1174_v2, %v260_v26  ;;  %v300_v42 = vmul.f32 %v1174_v2, %v261_v27  ;;  %v267_v20 = vld [vmem:[%s1179_s7 + $0x58] sm:$0xff]  ;;  %v282_v21 = vld [vmem:[%s1179_s7 + $0xd0] sm:$0xff]  ;;  %v268_v31 = vld [vmem:[%s1179_s7 + $0x60] sm:$0xff] }
  0x18   : > { %v406_v44 = vpack.c.bf16 %v383_v33, %v382_v30  ;;  %v399_v45 = vpack.c.bf16 %v369_v35, %v368_v34  ;;  %v385_v46 = vmax.f32 %v353_v36, 0.0  ;;  %v315_v47 = vmul.f32 %v1174_v2, %v276_v32  ;;  %v283_v26 = vld [vmem:[%s1179_s7 + $0xd8] sm:$0xff]  ;;  %v269_v36 = vld [vmem:[%s1179_s7 + $0x68] sm:$0xff] }
  0x19   : > { %1070 = vmatprep.mubr.msk.bf16.mxu0 %vm415_vm1, %v398_v39  ;;  %v338_v48 = vadd.f32 %v1184_v3, %v299_v41  ;;  %v339_v49 = vadd.f32 %v1184_v3, %v300_v42  ;;  %v316_v50 = vmul.f32 %v1174_v2, %v277_v37  ;;  %v301_v51 = vmul.f32 %v1174_v2, %v262_v38  ;;  %v284_v41 = vld [vmem:[%s1179_s7 + $0xe0] sm:$0xff] }
  0x1a   : > { %1086 = vmatprep.mubr.msk.bf16.mxu1 %vm415_vm1, %v406_v44  ;;  %1071 = vmatmul.mubr.msk.bf16.vlgmr.msra.gmra.mrb[0].mxu0 %vm415_vm1, %v399_v45  ;;  %v407_v54 = vpack.c.bf16 %v385_v46, %v384_v40  ;;  %v354_v55 = vadd.f32 %v1184_v3, %v315_v47  ;;  %v302_v56 = vmul.f32 %v1174_v2, %v263_v43  ;;  %v285_v46 = vld [vmem:[%s1179_s7 + $0xe8] sm:$0xff]  ;;  %v270_v47 = vld [vmem:[%s1179_s7 + $0x70] sm:$0xff] }
  0x1b   : > { %v370_v58 = vmax.f32 %v338_v48, 0.0  ;;  %v371_v59 = vmax.f32 %v339_v49, 0.0  ;;  %v355_v60 = vadd.f32 %v1184_v3, %v316_v50  ;;  %v340_v61 = vadd.f32 %v1184_v3, %v301_v51 }
  0x1c   : > { %1087 = vmatmul.mubr.msk.bf16.vlgmr.msra.gmra.mrb[0].mxu1 %vm415_vm1, %v407_v54  ;;  %v386_v63 = vmax.f32 %v354_v55, 0.0  ;;  %v341_v0 = vadd.f32 %v1184_v3, %v302_v56  ;;  %v317_v1 = vmul.f32 %v1174_v2, %v278_v52  ;;  %v318_v4 = vmul.f32 %v1174_v2, %v279_v53  ;;  %v271_v52 = vld [vmem:[%s1179_s7 + $0x78] sm:$0xff] }
  0x1d   : > { %v400_v7 = vpack.c.bf16 %v371_v59, %v370_v58  ;;  %v387_v8 = vmax.f32 %v355_v60, 0.0  ;;  %v372_v9 = vmax.f32 %v340_v61, 0.0  ;;  %v303_v10 = vmul.f32 %v1174_v2, %v264_v57  ;;  %v286_v61 = vld [vmem:[%s1179_s7 + $0xf0] sm:$0xff] }
  0x1e   : > { %v373_v11 = vmax.f32 %v341_v0, 0.0  ;;  %v356_v12 = vadd.f32 %v1184_v3, %v317_v1  ;;  %v357_v13 = vadd.f32 %v1184_v3, %v318_v4  ;;  %v304_v14 = vmul.f32 %v1174_v2, %v265_v62  ;;  %v287_v62 = vld [vmem:[%s1179_s7 + $0xf8] sm:$0xff] }
  0x1f   : > { %1074 = vmatprep.mubr.msk.bf16.mxu0 %vm415_vm1, %v400_v7  ;;  %v408_v16 = vpack.c.bf16 %v387_v8, %v386_v63  ;;  %v342_v17 = vadd.f32 %v1184_v3, %v303_v10  ;;  %v319_v18 = vmul.f32 %v1174_v2, %v280_v5  ;;  %v320_v19 = vmul.f32 %v1174_v2, %v281_v6 }
  0x20   : > { %v401_v22 = vpack.c.bf16 %v373_v11, %v372_v9  ;;  %v388_v23 = vmax.f32 %v356_v12, 0.0  ;;  %v389_v24 = vmax.f32 %v357_v13, 0.0  ;;  %v343_v25 = vadd.f32 %v1184_v3, %v304_v14 }
  0x21   : > { %1090 = vmatprep.mubr.msk.bf16.mxu1 %vm415_vm1, %v408_v16  ;;  %v374_v27 = vmax.f32 %v342_v17, 0.0  ;;  %v358_v28 = vadd.f32 %v1184_v3, %v319_v18  ;;  %v359_v29 = vadd.f32 %v1184_v3, %v320_v19  ;;  %v305_v30 = vmul.f32 %v1174_v2, %v266_v15 }
  0x22   : > { %1075 = vmatmul.mubr.msk.bf16.gmra.mrb[4].mxu0 %vm415_vm1, %v401_v22  ;;  %v409_v32 = vpack.c.bf16 %v389_v24, %v388_v23  ;;  %v375_v33 = vmax.f32 %v343_v25, 0.0  ;;  %v306_v34 = vmul.f32 %v1174_v2, %v267_v20  ;;  %v321_v35 = vmul.f32 %v1174_v2, %v282_v21  ;;  %v1301_v23 = vld [vmem:[%s1449_s4] ss:$0 sm:$0xff] }
  0x23   : > { %v390_v37 = vmax.f32 %v358_v28, 0.0  ;;  %v391_v38 = vmax.f32 %v359_v29, 0.0  ;;  %v344_v39 = vadd.f32 %v1184_v3, %v305_v30  ;;  %v322_v40 = vmul.f32 %v1174_v2, %v283_v26  ;;  %v1306_v24 = vld [vmem:[%s1450_s5] ss:$0 sm:$0xff] }
  0x24   : > { %1091 = vmatmul.mubr.msk.bf16.gmra.mrb[4].mxu1 %vm415_vm1, %v409_v32  ;;  %v402_v42 = vpack.c.bf16 %v375_v33, %v374_v27  ;;  %v345_v43 = vadd.f32 %v1184_v3, %v306_v34  ;;  %v360_v44 = vadd.f32 %v1184_v3, %v321_v35  ;;  %v307_v45 = vmul.f32 %v1174_v2, %v268_v31 }
  0x25   : > { %v410_v48 = vpack.c.bf16 %v391_v38, %v390_v37  ;;  %v376_v49 = vmax.f32 %v344_v39, 0.0  ;;  %v361_v50 = vadd.f32 %v1184_v3, %v322_v40  ;;  %v308_v51 = vmul.f32 %v1174_v2, %v269_v36 }
  0x26   : > { %1078 = vmatprep.mubr.msk.bf16.mxu0 %vm415_vm1, %v402_v42  ;;  %v377_v53 = vmax.f32 %v345_v43, 0.0  ;;  %v392_v54 = vmax.f32 %v360_v44, 0.0  ;;  %v346_v55 = vadd.f32 %v1184_v3, %v307_v45  ;;  %v323_v56 = vmul.f32 %v1174_v2, %v284_v41 }
  0x27   : > { %1094 = vmatprep.mubr.msk.bf16.mxu1 %vm415_vm1, %v410_v48  ;;  %v393_v57 = vmax.f32 %v361_v50, 0.0  ;;  %v347_v58 = vadd.f32 %v1184_v3, %v308_v51  ;;  %v324_v59 = vmul.f32 %v1174_v2, %v285_v46  ;;  %v309_v60 = vmul.f32 %v1174_v2, %v270_v47 }
  0x28   : > { %v403_v63 = vpack.c.bf16 %v377_v53, %v376_v49  ;;  %v378_v0 = vmax.f32 %v346_v55, 0.0  ;;  %v362_v1 = vadd.f32 %v1184_v3, %v323_v56  ;;  %v310_v4 = vmul.f32 %v1174_v2, %v271_v52 }
  0x29   : > { %v411_v5 = vpack.c.bf16 %v393_v57, %v392_v54  ;;  %v379_v6 = vmax.f32 %v347_v58, 0.0  ;;  %v363_v7 = vadd.f32 %v1184_v3, %v324_v59  ;;  %v348_v8 = vadd.f32 %v1184_v3, %v309_v60 }
  0x2a   : > { %1079 = vmatmul.mubr.msk.bf16.gmra.mrb[8].mxu0 %vm415_vm1, %v403_v63  ;;  %v394_v9 = vmax.f32 %v362_v1, 0.0  ;;  %v349_v10 = vadd.f32 %v1184_v3, %v310_v4  ;;  %v325_v11 = vmul.f32 %v1174_v2, %v286_v61  ;;  %v326_v12 = vmul.f32 %v1174_v2, %v287_v62 }
  0x2b   : > { %v404_v13 = vpack.c.bf16 %v379_v6, %v378_v0  ;;  %v395_v14 = vmax.f32 %v363_v7, 0.0  ;;  %v380_v15 = vmax.f32 %v348_v8, 0.0 }
  0x2c   : > { %1095 = vmatmul.mubr.msk.bf16.gmra.mrb[8].mxu1 %vm415_vm1, %v411_v5  ;;  %v381_v16 = vmax.f32 %v349_v10, 0.0  ;;  %v364_v17 = vadd.f32 %v1184_v3, %v325_v11  ;;  %v365_v18 = vadd.f32 %v1184_v3, %v326_v12 }
  0x2d   : > { %1082 = vmatprep.mubr.msk.bf16.mxu0 %vm415_vm1, %v404_v13  ;;  %v412_v19 = vpack.c.bf16 %v395_v14, %v394_v9 }
  0x2e   : > { %v405_v20 = vpack.c.bf16 %v381_v16, %v380_v15  ;;  %v396_v21 = vmax.f32 %v364_v17, 0.0  ;;  %v397_v22 = vmax.f32 %v365_v18, 0.0 }
  0x2f   : > { %1098 = vmatprep.mubr.msk.bf16.mxu1 %vm415_vm1, %v412_v19 }
  0x30   : > { %v413_v2 = vpack.c.bf16 %v397_v22, %v396_v21 }
  0x32   : > { %1083 = vmatmul.mubr.msk.bf16.gmra.mrb[12].mxu0 %vm415_vm1, %v405_v20 }
  0x34   : > { %1099 = vmatmul.mubr.msk.bf16.gmra.mrb[12].mxu1 %vm415_vm1, %v413_v2 }
  0xed   : > { %v1072_v3 = vpop.f32.mrb[0].mxu0 }
  0xee   : > { %v638_v25 = vmul.f32 %v1072_v3, %v1301_v23  ;;  %v502_v26 = vpop.f32.mrb[1].mxu0 }
  0xef   : > { %v1088_v27 = vpop.f32.mrb[0].mxu1  ;;  %v636_v28 = vmul.f32 %v1301_v23, %v502_v26  ;;  %v1073_v29 = vpop.f32.mrb[2].mxu0 }
  0xf0   : > { %v677_v30 = vadd.f32 %v1306_v24, %v638_v25  ;;  %v654_v31 = vmul.f32 %v1088_v27, %v1301_v23  ;;  %v566_v32 = vpop.f32.mrb[1].mxu1  ;;  %v639_v33 = vmul.f32 %v1073_v29, %v1301_v23  ;;  %v505_v34 = vpop.f32.mrb[3].mxu0 }
  0xf1   : > { %v675_v35 = vadd.f32 %v1306_v24, %v636_v28  ;;  %v652_v36 = vmul.f32 %v1301_v23, %v566_v32  ;;  %v1089_v37 = vpop.f32.mrb[2].mxu1  ;;  %v637_v38 = vmul.f32 %v1301_v23, %v505_v34 }
  0xf2   : > { %v709_v39 = vmax.f32 %v677_v30, 0.0  ;;  %v693_v40 = vadd.f32 %v1306_v24, %v654_v31  ;;  %v678_v41 = vadd.f32 %v1306_v24, %v639_v33  ;;  %v655_v42 = vmul.f32 %v1089_v37, %v1301_v23  ;;  %v569_v43 = vpop.f32.mrb[3].mxu1 }
  0xf3   : > { %v707_v44 = vmax.f32 %v675_v35, 0.0  ;;  %v691_v45 = vadd.f32 %v1306_v24, %v652_v36  ;;  %v676_v46 = vadd.f32 %v1306_v24, %v637_v38  ;;  %v653_v47 = vmul.f32 %v1301_v23, %v569_v43 }
  0xf4   : > { %v1021_v48 = vpack.c.bf16 %v709_v39, %v709_v39  ;;  %v725_v49 = vmax.f32 %v693_v40, 0.0  ;;  %v710_v50 = vmax.f32 %v678_v41, 0.0  ;;  %v694_v51 = vadd.f32 %v1306_v24, %v655_v42 }
  0xf5   : > { %v1019_v52 = vpack.c.bf16 %v707_v44, %v707_v44  ;;  %v723_v53 = vmax.f32 %v691_v45, 0.0  ;;  %v708_v54 = vmax.f32 %v676_v46, 0.0  ;;  %v692_v55 = vadd.f32 %v1306_v24, %v653_v47  ;;  %v1076_v56 = vpop.f32.mrb[4].mxu0 }
  0xf6   : > { %870 = vst.msk [vmem:[%s1323_s17 + $0x8] sm:$0xf] %vm867_vm2, %v1021_v48  ;;  %v1037_v57 = vpack.c.bf16 %v725_v49, %v725_v49  ;;  %v1022_v58 = vpack.c.bf16 %v710_v50, %v710_v50  ;;  %v726_v59 = vmax.f32 %v694_v51, 0.0  ;;  %v642_v60 = vmul.f32 %v1076_v56, %v1301_v23  ;;  %v518_v61 = vpop.f32.mrb[5].mxu0 }
  0xf7   : > { %868 = vst.msk [vmem:[%s1323_s17] sm:$0xf] %vm867_vm2, %v1019_v52  ;;  %v1035_v62 = vpack.c.bf16 %v723_v53, %v723_v53  ;;  %v1020_v63 = vpack.c.bf16 %v708_v54, %v708_v54  ;;  %v724_v0 = vmax.f32 %v692_v55, 0.0  ;;  %v1092_v1 = vpop.f32.mrb[4].mxu1  ;;  %v640_v4 = vmul.f32 %v1301_v23, %v518_v61  ;;  %v1077_v5 = vpop.f32.mrb[6].mxu0 }
  0xf8   : > { %886 = vst.msk [vmem:[%s1323_s17 + $0x48] sm:$0xf] %vm867_vm2, %v1037_v57  ;;  %871 = vst.msk [vmem:[%s1323_s17 + $0xc] sm:$0xf] %vm867_vm2, %v1022_v58  ;;  %v1038_v6 = vpack.c.bf16 %v726_v59, %v726_v59  ;;  %v681_v7 = vadd.f32 %v1306_v24, %v642_v60  ;;  %v658_v8 = vmul.f32 %v1092_v1, %v1301_v23  ;;  %v582_v9 = vpop.f32.mrb[5].mxu1  ;;  %v521_v11 = vpop.f32.mrb[7].mxu0 }
  0xf9   : > { %v643_v10 = vmul.f32 %v1077_v5, %v1301_v23  ;;  %884 = vst.msk [vmem:[%s1323_s17 + $0x40] sm:$0xf] %vm867_vm2, %v1035_v62  ;;  %869 = vst.msk [vmem:[%s1323_s17 + $0x4] sm:$0xf] %vm867_vm2, %v1020_v63  ;;  %v1036_v12 = vpack.c.bf16 %v724_v0, %v724_v0  ;;  %v679_v13 = vadd.f32 %v1306_v24, %v640_v4  ;;  %v1093_v15 = vpop.f32.mrb[6].mxu1 }
  0xfa   : > { %v656_v14 = vmul.f32 %v1301_v23, %v582_v9  ;;  %v641_v16 = vmul.f32 %v1301_v23, %v521_v11  ;;  %887 = vst.msk [vmem:[%s1323_s17 + $0x4c] sm:$0xf] %vm867_vm2, %v1038_v6  ;;  %v713_v17 = vmax.f32 %v681_v7, 0.0  ;;  %v697_v18 = vadd.f32 %v1306_v24, %v658_v8  ;;  %v585_v21 = vpop.f32.mrb[7].mxu1 }
  0xfb   : > { %v682_v19 = vadd.f32 %v1306_v24, %v643_v10  ;;  %v659_v20 = vmul.f32 %v1093_v15, %v1301_v23  ;;  %885 = vst.msk [vmem:[%s1323_s17 + $0x44] sm:$0xf] %vm867_vm2, %v1036_v12  ;;  %v711_v22 = vmax.f32 %v679_v13, 0.0  ;;  %v657_v25 = vmul.f32 %v1301_v23, %v585_v21 }
  0xfc   : > { %v695_v2 = vadd.f32 %v1306_v24, %v656_v14  ;;  %v680_v3 = vadd.f32 %v1306_v24, %v641_v16  ;;  %v1025_v26 = vpack.c.bf16 %v713_v17, %v713_v17  ;;  %v729_v27 = vmax.f32 %v697_v18, 0.0 }
  0xfd   : > { %v714_v28 = vmax.f32 %v682_v19, 0.0  ;;  %v698_v29 = vadd.f32 %v1306_v24, %v659_v20  ;;  %v1023_v30 = vpack.c.bf16 %v711_v22, %v711_v22  ;;  %v696_v33 = vadd.f32 %v1306_v24, %v657_v25  ;;  %v1080_v34 = vpop.f32.mrb[8].mxu0 }
  0xfe   : > { %v727_v31 = vmax.f32 %v695_v2, 0.0  ;;  %v712_v32 = vmax.f32 %v680_v3, 0.0  ;;  %874 = vst.msk [vmem:[%s1323_s17 + $0x18] sm:$0xf] %vm867_vm2, %v1025_v26  ;;  %v1041_v35 = vpack.c.bf16 %v729_v27, %v729_v27  ;;  %v646_v38 = vmul.f32 %v1080_v34, %v1301_v23  ;;  %v534_v39 = vpop.f32.mrb[9].mxu0 }
  0xff   : > { %v1026_v36 = vpack.c.bf16 %v714_v28, %v714_v28  ;;  %v730_v37 = vmax.f32 %v698_v29, 0.0  ;;  %872 = vst.msk [vmem:[%s1323_s17 + $0x10] sm:$0xf] %vm867_vm2, %v1023_v30  ;;  %v728_v42 = vmax.f32 %v696_v33, 0.0  ;;  %v1096_v43 = vpop.f32.mrb[8].mxu1  ;;  %v644_v44 = vmul.f32 %v1301_v23, %v534_v39  ;;  %v1081_v45 = vpop.f32.mrb[10].mxu0 }
 0x100   : > { %v1039_v40 = vpack.c.bf16 %v727_v31, %v727_v31  ;;  %v1024_v41 = vpack.c.bf16 %v712_v32, %v712_v32  ;;  %890 = vst.msk [vmem:[%s1323_s17 + $0x58] sm:$0xf] %vm867_vm2, %v1041_v35  ;;  %v685_v47 = vadd.f32 %v1306_v24, %v646_v38  ;;  %v662_v48 = vmul.f32 %v1096_v43, %v1301_v23  ;;  %v598_v49 = vpop.f32.mrb[9].mxu1  ;;  %v537_v51 = vpop.f32.mrb[11].mxu0 }
 0x101   : > { %875 = vst.msk [vmem:[%s1323_s17 + $0x1c] sm:$0xf] %vm867_vm2, %v1026_v36  ;;  %v1042_v46 = vpack.c.bf16 %v730_v37, %v730_v37  ;;  %v647_v50 = vmul.f32 %v1081_v45, %v1301_v23  ;;  %v1040_v52 = vpack.c.bf16 %v728_v42, %v728_v42  ;;  %v683_v53 = vadd.f32 %v1306_v24, %v644_v44  ;;  %v1097_v55 = vpop.f32.mrb[10].mxu1 }
 0x102   : > { %888 = vst.msk [vmem:[%s1323_s17 + $0x50] sm:$0xf] %vm867_vm2, %v1039_v40  ;;  %873 = vst.msk [vmem:[%s1323_s17 + $0x14] sm:$0xf] %vm867_vm2, %v1024_v41  ;;  %v660_v54 = vmul.f32 %v1301_v23, %v598_v49  ;;  %v645_v56 = vmul.f32 %v1301_v23, %v537_v51  ;;  %v717_v57 = vmax.f32 %v685_v47, 0.0  ;;  %v701_v58 = vadd.f32 %v1306_v24, %v662_v48  ;;  %v601_v61 = vpop.f32.mrb[11].mxu1 }
 0x103   : > { %891 = vst.msk [vmem:[%s1323_s17 + $0x5c] sm:$0xf] %vm867_vm2, %v1042_v46  ;;  %v686_v59 = vadd.f32 %v1306_v24, %v647_v50  ;;  %v663_v60 = vmul.f32 %v1097_v55, %v1301_v23  ;;  %889 = vst.msk [vmem:[%s1323_s17 + $0x54] sm:$0xf] %vm867_vm2, %v1040_v52  ;;  %v715_v62 = vmax.f32 %v683_v53, 0.0  ;;  %v661_v1 = vmul.f32 %v1301_v23, %v601_v61 }
 0x104   : > { %v699_v63 = vadd.f32 %v1306_v24, %v660_v54  ;;  %v684_v0 = vadd.f32 %v1306_v24, %v645_v56  ;;  %v1029_v4 = vpack.c.bf16 %v717_v57, %v717_v57  ;;  %v733_v5 = vmax.f32 %v701_v58, 0.0 }
 0x105   : > { %v718_v6 = vmax.f32 %v686_v59, 0.0  ;;  %v702_v7 = vadd.f32 %v1306_v24, %v663_v60  ;;  %v1027_v8 = vpack.c.bf16 %v715_v62, %v715_v62  ;;  %v700_v11 = vadd.f32 %v1306_v24, %v661_v1  ;;  %v1084_v12 = vpop.f32.mrb[12].mxu0 }
 0x106   : > { %v731_v9 = vmax.f32 %v699_v63, 0.0  ;;  %v716_v10 = vmax.f32 %v684_v0, 0.0  ;;  %878 = vst.msk [vmem:[%s1323_s17 + $0x28] sm:$0xf] %vm867_vm2, %v1029_v4  ;;  %v1045_v13 = vpack.c.bf16 %v733_v5, %v733_v5  ;;  %v650_v16 = vmul.f32 %v1084_v12, %v1301_v23  ;;  %v550_v17 = vpop.f32.mrb[13].mxu0 }
 0x107   : > { %v1030_v14 = vpack.c.bf16 %v718_v6, %v718_v6  ;;  %v734_v15 = vmax.f32 %v702_v7, 0.0  ;;  %876 = vst.msk [vmem:[%s1323_s17 + $0x20] sm:$0xf] %vm867_vm2, %v1027_v8  ;;  %v732_v20 = vmax.f32 %v700_v11, 0.0  ;;  %v1100_v21 = vpop.f32.mrb[12].mxu1  ;;  %v648_v22 = vmul.f32 %v1301_v23, %v550_v17  ;;  %v1085_v2 = vpop.f32.mrb[14].mxu0 }
 0x108   : > { %v1043_v18 = vpack.c.bf16 %v731_v9, %v731_v9  ;;  %v1028_v19 = vpack.c.bf16 %v716_v10, %v716_v10  ;;  %894 = vst.msk [vmem:[%s1323_s17 + $0x68] sm:$0xf] %vm867_vm2, %v1045_v13  ;;  %v689_v25 = vadd.f32 %v1306_v24, %v650_v16  ;;  %v666_v26 = vmul.f32 %v1100_v21, %v1301_v23  ;;  %v614_v27 = vpop.f32.mrb[13].mxu1  ;;  %v553_v29 = vpop.f32.mrb[15].mxu0 }
 0x109   : > { %879 = vst.msk [vmem:[%s1323_s17 + $0x2c] sm:$0xf] %vm867_vm2, %v1030_v14  ;;  %v1046_v3 = vpack.c.bf16 %v734_v15, %v734_v15  ;;  %v651_v28 = vmul.f32 %v1085_v2, %v1301_v23  ;;  %v1044_v30 = vpack.c.bf16 %v732_v20, %v732_v20  ;;  %v687_v31 = vadd.f32 %v1306_v24, %v648_v22  ;;  %v1101_v33 = vpop.f32.mrb[14].mxu1 }
 0x10a   : > { %892 = vst.msk [vmem:[%s1323_s17 + $0x60] sm:$0xf] %vm867_vm2, %v1043_v18  ;;  %877 = vst.msk [vmem:[%s1323_s17 + $0x24] sm:$0xf] %vm867_vm2, %v1028_v19  ;;  %v664_v32 = vmul.f32 %v1301_v23, %v614_v27  ;;  %v649_v34 = vmul.f32 %v1301_v23, %v553_v29  ;;  %v721_v35 = vmax.f32 %v689_v25, 0.0  ;;  %v705_v36 = vadd.f32 %v1306_v24, %v666_v26  ;;  %v617_v39 = vpop.f32.mrb[15].mxu1 }
 0x10b   : > { %895 = vst.msk [vmem:[%s1323_s17 + $0x6c] sm:$0xf] %vm867_vm2, %v1046_v3  ;;  %v690_v37 = vadd.f32 %v1306_v24, %v651_v28  ;;  %v667_v38 = vmul.f32 %v1101_v33, %v1301_v23  ;;  %893 = vst.msk [vmem:[%s1323_s17 + $0x64] sm:$0xf] %vm867_vm2, %v1044_v30  ;;  %v719_v40 = vmax.f32 %v687_v31, 0.0  ;;  %v665_v43 = vmul.f32 %v1301_v23, %v617_v39 }
 0x10c   : > { %v703_v41 = vadd.f32 %v1306_v24, %v664_v32  ;;  %v688_v42 = vadd.f32 %v1306_v24, %v649_v34  ;;  %v1033_v44 = vpack.c.bf16 %v721_v35, %v721_v35  ;;  %v737_v45 = vmax.f32 %v705_v36, 0.0 }
 0x10d   : > { %v722_v46 = vmax.f32 %v690_v37, 0.0  ;;  %v706_v47 = vadd.f32 %v1306_v24, %v667_v38  ;;  %v1031_v48 = vpack.c.bf16 %v719_v40, %v719_v40  ;;  %v704_v51 = vadd.f32 %v1306_v24, %v665_v43 }
 0x10e   : > { %v735_v49 = vmax.f32 %v703_v41, 0.0  ;;  %v720_v50 = vmax.f32 %v688_v42, 0.0  ;;  %882 = vst.msk [vmem:[%s1323_s17 + $0x38] sm:$0xf] %vm867_vm2, %v1033_v44  ;;  %v1049_v52 = vpack.c.bf16 %v737_v45, %v737_v45 }
 0x10f   : > { %v1034_v23 = vpack.c.bf16 %v722_v46, %v722_v46  ;;  %v738_v53 = vmax.f32 %v706_v47, 0.0  ;;  %880 = vst.msk [vmem:[%s1323_s17 + $0x30] sm:$0xf] %vm867_vm2, %v1031_v48  ;;  %v736_v56 = vmax.f32 %v704_v51, 0.0 }
 0x110   : > { %v1047_v54 = vpack.c.bf16 %v735_v49, %v735_v49  ;;  %v1032_v55 = vpack.c.bf16 %v720_v50, %v720_v50  ;;  %898 = vst.msk [vmem:[%s1323_s17 + $0x78] sm:$0xf] %vm867_vm2, %v1049_v52 }
 0x111   : > { %883 = vst.msk [vmem:[%s1323_s17 + $0x3c] sm:$0xf] %vm867_vm2, %v1034_v23  ;;  %v1050_v57 = vpack.c.bf16 %v738_v53, %v738_v53  ;;  %v1048_v24 = vpack.c.bf16 %v736_v56, %v736_v56 }
 0x112   : > { %896 = vst.msk [vmem:[%s1323_s17 + $0x70] sm:$0xf] %vm867_vm2, %v1047_v54  ;;  %881 = vst.msk [vmem:[%s1323_s17 + $0x34] sm:$0xf] %vm867_vm2, %v1032_v55 }
 0x113   : > { %899 = vst.msk [vmem:[%s1323_s17 + $0x7c] sm:$0xf] %vm867_vm2, %v1050_v57  ;;  %897 = vst.msk [vmem:[%s1323_s17 + $0x74] sm:$0xf] %vm867_vm2, %v1048_v24 }
 0x114 PF: > { %s16_s21 = sadd.s32 1, %s1120_s21  }
 0x115   : > { %p13_p4 = scmp.ge.s32.totalorder %s16_s21, 4  }
 0x117   :  { %15 = sbr.rel (!%p13_p4) target bundleno = 1 (0x1), region = 74 }

// kernel: dense_block_forward.6
= control target key start
LH: loop header
LB: loop body
LE: loop exit
PB: predicated region body
PF: predicated region fallthrough
CT: control target
= control target key end

     0   :  { %s1902_s13 = smov 0   ;;  %s2308_s0 = inlined_call_operand.vmem [shape: f32[512,8], index: 0, kind: input, shape index: {}]   ;;  %s2309_s1 = inlined_call_operand.vmem [shape: bf16[512,8], index: 1, kind: input, shape index: {}]   ;;  %s2310_s2 = inlined_call_operand.vmem [shape: f32[1,8], index: 2, kind: input, shape index: {}]   ;;  %s2311_s3 = inlined_call_operand.vmem [shape: f32[1,8], index: 3, kind: input, shape index: {}]   ;;  %s2312_s4 = inlined_call_operand.vmem [shape: f32[1,8], index: 4, kind: input, shape index: {}]   ;;  %s2313_s5 = inlined_call_operand.vmem [shape: f32[1,8], index: 5, kind: input, shape index: {}]   ;;  %s2314_s6 = inlined_call_operand.vmem [shape: bf16[8,16], index: 6, kind: input, shape index: {}]   ;;  %s2315_s7 = inlined_call_operand.vmem [shape: bf16[8,16], index: 7, kind: input, shape index: {}]   ;;  %s2316_s8 = inlined_call_operand.vmem [shape: f32[1,16], index: 8, kind: input, shape index: {}]   ;;  %s2317_s9 = inlined_call_operand.vmem [shape: f32[1,16], index: 9, kind: input, shape index: {}]   ;;  %s2318_s10 = inlined_call_operand.vmem [shape: bf16[512,16], index: 10, kind: output, shape index: {}]  }
   0x1 LB: > { %s1501_s14 = sadd.s32 4294967295, %s1845_s13   ;;  %p1505_p0 = scmp.ge.s32.totalorder %s1845_s13, 1  ;;  %s1845_s13 = sphi %s1902_s13, %s20_s13  }
   0x2   : > { %p324_p1 = scmp.lt.s32.totalorder %s1845_s13, 3 }
   0x4   : > { %p325_p2 = pnand %p1505_p0, %p324_p1 }
   0x5   : > { %v544_v0 = vld [vmem:[%s2314_s6] sm:$0xf] (!%p325_p2)  ;;  %vm785_vm0 = vcmask (!%p325_p2), 1043456   ;;  %s1506_s19 = sshll.u32 (!%p325_p2), %s1501_s14, 5  ;;  %vm736_vm1 = vcmask (!%p325_p2), 64512   ;;  %vm1400_vm2 = vcmask (!%p325_p2), 125952  }
   0x6   : > { %328 = sbr.rel (%p325_p2) target bundleno = 313 (0x139), region = 60  ;;  %v735_v1 = vld [vmem:[%s2315_s7] sm:$0xf] (!%p325_p2)  ;;  %1830 = vmatprep.subr.msk.bf16.mxu0 (!%p325_p2), %vm785_vm0, %v544_v0  ;;  %v999_v2 = vsel (!%p325_p2), %vm785_vm0, %v544_v0, 0  ;;  %p368_p3 = scmp.lt.s32.totalorder (!%p325_p2), %s1506_s19, 63 }
   0x7   : > { %1829 = vmatprep.subr.msk.bf16.mxu1 (!%p325_p2), %vm785_vm0, %v735_v1  ;;  %v787_v3 = vsel (!%p325_p2), %vm785_vm0, %v735_v1, 0  ;;  %1764 = vmatpush3.bf16.msra.mxu0 (!%p325_p2), %v999_v2  ;;  %v1922_v4 = vld [vmem:[%s2310_s2] ss:$0 sm:$0xff] (!%p325_p2) }
   0x8   : > { %1730 = vmatpush3.bf16.msra.mxu1 (!%p325_p2), %v787_v3  ;;  %v1933_v5 = vld [vmem:[%s2312_s4] ss:$0 sm:$0xff] (!%p325_p2) }
   0x9   : > { %v1945_v6 = vld [vmem:[%s2311_s3] ss:$0 sm:$0xff] (!%p325_p2) }
   0xa   : > { %v1963_v23 = vld [vmem:[%s2313_s5] ss:$0 sm:$0xff] (!%p325_p2) }
   0xd   : > { %s2320_s19 = smov (!%p368_p3, %s1506_s19), 63 }
   0xe   : > { %s1507_s20 = sshll.u32 %s2320_s19, 3  ;;  %s1509_s23 = sshll.u32 %s2320_s19, 2 }
   0xf   : > { %s1928_s26 = scalar_lea.vmem %s2308_s0, %s1507_s20  ;;  %s1940_s11 = scalar_lea.vmem %s2309_s1, %s1509_s23 }
  0x10   : > { %v386_v7 = vld [vmem:[%s1928_s26] sm:$0xff]  ;;  %v387_v8 = vld [vmem:[%s1928_s26 + $0x8] sm:$0xff]  ;;  %v388_v9 = vld [vmem:[%s1928_s26 + $0x10] sm:$0xff]  ;;  %s2182_s25 = scalar_lea.vmem %s2318_s10, %s1509_s23 }
  0x11   : > { %v425_v10 = vmul.f32 %v1922_v4, %v386_v7  ;;  %v426_v11 = vmul.f32 %v1922_v4, %v387_v8  ;;  %v389_v12 = vld [vmem:[%s1928_s26 + $0x18] sm:$0xff]  ;;  %v427_v13 = vmul.f32 %v1922_v4, %v388_v9  ;;  %v1617_v14 = vld [vmem:[%s1940_s11] sm:$0xff]   ;;  %v1680_v15 = vld [vmem:[%s1940_s11 + $0x8] sm:$0xff]  }
  0x12   : > { %v428_v16 = vmul.f32 %v1922_v4, %v389_v12  ;;  %v1618_v17 = vunpack.c.l.bf16 %v1617_v14  ;;  %v1619_v18 = vunpack.c.h.bf16 %v1617_v14  ;;  %v1622_v19 = vunpack.c.l.bf16 %v1680_v15  ;;  %v390_v29 = vld [vmem:[%s1928_s26 + $0x20] sm:$0xff]  ;;  %v391_v30 = vld [vmem:[%s1928_s26 + $0x28] sm:$0xff]  ;;  %v392_v39 = vld [vmem:[%s1928_s26 + $0x30] sm:$0xff] }
  0x13   : > { %v464_v20 = vadd.f32 %v1933_v5, %v425_v10  ;;  %v465_v21 = vadd.f32 %v1933_v5, %v426_v11  ;;  %v466_v22 = vadd.f32 %v1933_v5, %v427_v13  ;;  %v1623_v24 = vunpack.c.h.bf16 %v1680_v15  ;;  %v393_v44 = vld [vmem:[%s1928_s26 + $0x38] sm:$0xff]  ;;  %v1681_v45 = vld [vmem:[%s1940_s11 + $0x10] sm:$0xff]   ;;  %v394_v59 = vld [vmem:[%s1928_s26 + $0x40] sm:$0xff] }
  0x14   : > { %v467_v25 = vadd.f32 %v1933_v5, %v428_v16  ;;  %v616_v26 = vmul.f32 %v1618_v17, %v1945_v6  ;;  %v617_v27 = vmul.f32 %v1619_v18, %v1945_v6  ;;  %v618_v28 = vmul.f32 %v1622_v19, %v1945_v6  ;;  %v1682_v54 = vld [vmem:[%s1940_s11 + $0x18] sm:$0xff]   ;;  %v395_v7 = vld [vmem:[%s1928_s26 + $0x48] sm:$0xff]  ;;  %v396_v8 = vld [vmem:[%s1928_s26 + $0x50] sm:$0xff] }
  0x15   : > { %v496_v31 = vmax.f32 %v464_v20, 0.0  ;;  %v497_v32 = vmax.f32 %v465_v21, 0.0  ;;  %v498_v33 = vmax.f32 %v466_v22, 0.0  ;;  %v619_v34 = vmul.f32 %v1623_v24, %v1945_v6  ;;  %v397_v17 = vld [vmem:[%s1928_s26 + $0x58] sm:$0xff]  ;;  %v1683_v22 = vld [vmem:[%s1940_s11 + $0x20] sm:$0xff]  }
  0x16   : > { %v499_v35 = vmax.f32 %v467_v25, 0.0  ;;  %v655_v36 = vadd.f32 %v1963_v23, %v616_v26  ;;  %v656_v37 = vadd.f32 %v1963_v23, %v617_v27  ;;  %v657_v38 = vadd.f32 %v1963_v23, %v618_v28 }
  0x17   : > { %v528_v40 = vpack.c.bf16 %v497_v32, %v496_v31  ;;  %v658_v41 = vadd.f32 %v1963_v23, %v619_v34  ;;  %v429_v42 = vmul.f32 %v1922_v4, %v390_v29  ;;  %v430_v43 = vmul.f32 %v1922_v4, %v391_v30  ;;  %v1684_v32 = vld [vmem:[%s1940_s11 + $0x28] sm:$0xff]  }
  0x18   : > { %v529_v46 = vpack.c.bf16 %v499_v35, %v498_v33  ;;  %v687_v47 = vmax.f32 %v655_v36, 0.0  ;;  %v688_v48 = vmax.f32 %v656_v37, 0.0  ;;  %v689_v49 = vmax.f32 %v657_v38, 0.0 }
  0x19   : > { %1765 = vmatprep.mubr.msk.bf16.mxu0 %vm736_vm1, %v528_v40  ;;  %v690_v50 = vmax.f32 %v658_v41, 0.0  ;;  %v468_v51 = vadd.f32 %v1933_v5, %v429_v42  ;;  %v469_v52 = vadd.f32 %v1933_v5, %v430_v43  ;;  %v431_v53 = vmul.f32 %v1922_v4, %v392_v39  ;;  %v398_v41 = vld [vmem:[%s1928_s26 + $0x60] sm:$0xff] }
  0x1a   : > { %1766 = vmatmul.mubr.msk.bf16.vlgmr.msra.gmra.mrb[0].mxu0 %vm736_vm1, %v529_v46  ;;  %v719_v55 = vpack.c.bf16 %v688_v48, %v687_v47  ;;  %v432_v56 = vmul.f32 %v1922_v4, %v393_v44  ;;  %v1626_v57 = vunpack.c.l.bf16 %v1681_v45  ;;  %v1627_v58 = vunpack.c.h.bf16 %v1681_v45  ;;  %v399_v46 = vld [vmem:[%s1928_s26 + $0x68] sm:$0xff]  ;;  %v1685_v47 = vld [vmem:[%s1940_s11 + $0x30] sm:$0xff]  }
  0x1b   : > { %v720_v60 = vpack.c.bf16 %v690_v50, %v689_v49  ;;  %v500_v61 = vmax.f32 %v468_v51, 0.0  ;;  %v501_v62 = vmax.f32 %v469_v52, 0.0  ;;  %v470_v63 = vadd.f32 %v1933_v5, %v431_v53 }
  0x1c   : > { %1731 = vmatprep.mubr.msk.bf16.mxu1 %vm736_vm1, %v719_v55  ;;  %v471_v0 = vadd.f32 %v1933_v5, %v432_v56  ;;  %v620_v1 = vmul.f32 %v1626_v57, %v1945_v6  ;;  %v621_v2 = vmul.f32 %v1627_v58, %v1945_v6  ;;  %v1630_v3 = vunpack.c.l.bf16 %v1682_v54  ;;  %v400_v56 = vld [vmem:[%s1928_s26 + $0x70] sm:$0xff]  ;;  %v401_v57 = vld [vmem:[%s1928_s26 + $0x78] sm:$0xff] }
  0x1d   : > { %1732 = vmatmul.mubr.msk.bf16.vlgmr.msra.gmra.mrb[0].mxu1 %vm736_vm1, %v720_v60  ;;  %v530_v9 = vpack.c.bf16 %v501_v62, %v500_v61  ;;  %v502_v10 = vmax.f32 %v470_v63, 0.0  ;;  %v1631_v11 = vunpack.c.h.bf16 %v1682_v54  ;;  %v433_v12 = vmul.f32 %v1922_v4, %v394_v59 }
  0x1e   : > { %v503_v13 = vmax.f32 %v471_v0, 0.0  ;;  %v659_v14 = vadd.f32 %v1963_v23, %v620_v1  ;;  %v660_v15 = vadd.f32 %v1963_v23, %v621_v2  ;;  %v622_v16 = vmul.f32 %v1630_v3, %v1945_v6 }
  0x1f   : > { %1769 = vmatprep.mubr.msk.bf16.mxu0 %vm736_vm1, %v530_v9  ;;  %v623_v18 = vmul.f32 %v1631_v11, %v1945_v6  ;;  %v434_v19 = vmul.f32 %v1922_v4, %v395_v7  ;;  %v472_v20 = vadd.f32 %v1933_v5, %v433_v12  ;;  %v435_v21 = vmul.f32 %v1922_v4, %v396_v8  ;;  %v1686_v9 = vld [vmem:[%s1940_s11 + $0x38] sm:$0xff]  }
  0x20   : > { %v531_v24 = vpack.c.bf16 %v503_v13, %v502_v10  ;;  %v691_v25 = vmax.f32 %v659_v14, 0.0  ;;  %v692_v26 = vmax.f32 %v660_v15, 0.0  ;;  %v661_v27 = vadd.f32 %v1963_v23, %v622_v16 }
  0x21   : > { %v662_v28 = vadd.f32 %v1963_v23, %v623_v18  ;;  %v473_v29 = vadd.f32 %v1933_v5, %v434_v19  ;;  %v504_v30 = vmax.f32 %v472_v20, 0.0  ;;  %v436_v31 = vmul.f32 %v1922_v4, %v397_v17  ;;  %v402_v18 = vld [vmem:[%s1928_s26 + $0x80] sm:$0xff] }
  0x22   : > { %1770 = vmatmul.mubr.msk.bf16.gmra.mrb[4].mxu0 %vm736_vm1, %v531_v24  ;;  %v721_v33 = vpack.c.bf16 %v692_v26, %v691_v25  ;;  %v693_v34 = vmax.f32 %v661_v27, 0.0  ;;  %v474_v35 = vadd.f32 %v1933_v5, %v435_v21  ;;  %v1634_v36 = vunpack.c.l.bf16 %v1683_v22  ;;  %v403_v24 = vld [vmem:[%s1928_s26 + $0x88] sm:$0xff]  ;;  %v1687_v25 = vld [vmem:[%s1940_s11 + $0x40] sm:$0xff]  }
  0x23   : > { %v694_v37 = vmax.f32 %v662_v28, 0.0  ;;  %v505_v38 = vmax.f32 %v473_v29, 0.0  ;;  %v475_v39 = vadd.f32 %v1933_v5, %v436_v31  ;;  %v1635_v40 = vunpack.c.h.bf16 %v1683_v22 }
  0x24   : > { %1735 = vmatprep.mubr.msk.bf16.mxu1 %vm736_vm1, %v721_v33  ;;  %v506_v42 = vmax.f32 %v474_v35, 0.0  ;;  %v624_v43 = vmul.f32 %v1634_v36, %v1945_v6  ;;  %v1638_v44 = vunpack.c.l.bf16 %v1684_v32  ;;  %v1639_v45 = vunpack.c.h.bf16 %v1684_v32  ;;  %v405_v35 = vld [vmem:[%s1928_s26 + $0x98] sm:$0xff] }
  0x25   : > { %v722_v48 = vpack.c.bf16 %v694_v37, %v693_v34  ;;  %v532_v49 = vpack.c.bf16 %v505_v38, %v504_v30  ;;  %v507_v50 = vmax.f32 %v475_v39, 0.0  ;;  %v625_v51 = vmul.f32 %v1635_v40, %v1945_v6  ;;  %v404_v34 = vld [vmem:[%s1928_s26 + $0x90] sm:$0xff] }
  0x26   : > { %v663_v52 = vadd.f32 %v1963_v23, %v624_v43  ;;  %v626_v53 = vmul.f32 %v1638_v44, %v1945_v6  ;;  %v627_v54 = vmul.f32 %v1639_v45, %v1945_v6  ;;  %v437_v55 = vmul.f32 %v1922_v4, %v398_v41 }
  0x27   : > { %1736 = vmatmul.mubr.msk.bf16.gmra.mrb[4].mxu1 %vm736_vm1, %v722_v48  ;;  %1773 = vmatprep.mubr.msk.bf16.mxu0 %vm736_vm1, %v532_v49  ;;  %v533_v58 = vpack.c.bf16 %v507_v50, %v506_v42  ;;  %v664_v59 = vadd.f32 %v1963_v23, %v625_v51  ;;  %v438_v60 = vmul.f32 %v1922_v4, %v399_v46  ;;  %v1642_v61 = vunpack.c.l.bf16 %v1685_v47  ;;  %v1688_v48 = vld [vmem:[%s1940_s11 + $0x48] sm:$0xff]  }
  0x28   : > { %v695_v62 = vmax.f32 %v663_v52, 0.0  ;;  %v665_v63 = vadd.f32 %v1963_v23, %v626_v53  ;;  %v666_v0 = vadd.f32 %v1963_v23, %v627_v54  ;;  %v476_v1 = vadd.f32 %v1933_v5, %v437_v55 }
  0x29   : > { %v696_v2 = vmax.f32 %v664_v59, 0.0  ;;  %v477_v3 = vadd.f32 %v1933_v5, %v438_v60  ;;  %v439_v7 = vmul.f32 %v1922_v4, %v400_v56  ;;  %v440_v8 = vmul.f32 %v1922_v4, %v401_v57 }
  0x2a   : > { %1774 = vmatmul.mubr.msk.bf16.gmra.mrb[8].mxu0 %vm736_vm1, %v533_v58  ;;  %v697_v10 = vmax.f32 %v665_v63, 0.0  ;;  %v698_v11 = vmax.f32 %v666_v0, 0.0  ;;  %v508_v12 = vmax.f32 %v476_v1, 0.0  ;;  %v1643_v13 = vunpack.c.h.bf16 %v1685_v47  ;;  %v1689_v63 = vld [vmem:[%s1940_s11 + $0x50] sm:$0xff]  }
  0x2b   : > { %v723_v14 = vpack.c.bf16 %v696_v2, %v695_v62  ;;  %v509_v15 = vmax.f32 %v477_v3, 0.0  ;;  %v478_v16 = vadd.f32 %v1933_v5, %v439_v7  ;;  %v479_v17 = vadd.f32 %v1933_v5, %v440_v8  ;;  %v407_v62 = vld [vmem:[%s1928_s26 + $0xa8] sm:$0xff] }
  0x2c   : > { %v724_v19 = vpack.c.bf16 %v698_v11, %v697_v10  ;;  %v628_v20 = vmul.f32 %v1642_v61, %v1945_v6  ;;  %v629_v21 = vmul.f32 %v1643_v13, %v1945_v6  ;;  %v1646_v22 = vunpack.c.l.bf16 %v1686_v9  ;;  %v406_v61 = vld [vmem:[%s1928_s26 + $0xa0] sm:$0xff]  ;;  %v408_v11 = vld [vmem:[%s1928_s26 + $0xb0] sm:$0xff] }
  0x2d   : > { %1739 = vmatprep.mubr.msk.bf16.mxu1 %vm736_vm1, %v723_v14  ;;  %v534_v26 = vpack.c.bf16 %v509_v15, %v508_v12  ;;  %v510_v27 = vmax.f32 %v478_v16, 0.0  ;;  %v511_v28 = vmax.f32 %v479_v17, 0.0  ;;  %v1647_v29 = vunpack.c.h.bf16 %v1686_v9  ;;  %v409_v12 = vld [vmem:[%s1928_s26 + $0xb8] sm:$0xff] }
  0x2e   : > { %v667_v30 = vadd.f32 %v1963_v23, %v628_v20  ;;  %v668_v31 = vadd.f32 %v1963_v23, %v629_v21  ;;  %v630_v32 = vmul.f32 %v1646_v22, %v1945_v6  ;;  %v441_v33 = vmul.f32 %v1922_v4, %v402_v18 }
  0x2f   : > { %1740 = vmatmul.mubr.msk.bf16.gmra.mrb[8].mxu1 %vm736_vm1, %v724_v19  ;;  %1777 = vmatprep.mubr.msk.bf16.mxu0 %vm736_vm1, %v534_v26  ;;  %v535_v36 = vpack.c.bf16 %v511_v28, %v510_v27  ;;  %v631_v37 = vmul.f32 %v1647_v29, %v1945_v6  ;;  %v442_v38 = vmul.f32 %v1922_v4, %v403_v24  ;;  %v1650_v39 = vunpack.c.l.bf16 %v1687_v25  ;;  %v1690_v26 = vld [vmem:[%s1940_s11 + $0x58] sm:$0xff]  }
  0x30   : > { %v699_v40 = vmax.f32 %v667_v30, 0.0  ;;  %v700_v41 = vmax.f32 %v668_v31, 0.0  ;;  %v669_v42 = vadd.f32 %v1963_v23, %v630_v32  ;;  %v480_v43 = vadd.f32 %v1933_v5, %v441_v33 }
  0x31   : > { %v670_v44 = vadd.f32 %v1963_v23, %v631_v37  ;;  %v481_v45 = vadd.f32 %v1933_v5, %v442_v38  ;;  %v443_v46 = vmul.f32 %v1922_v4, %v404_v34  ;;  %v444_v47 = vmul.f32 %v1922_v4, %v405_v35  ;;  %v410_v35 = vld [vmem:[%s1928_s26 + $0xc0] sm:$0xff] }
  0x32   : > { %1778 = vmatmul.mubr.msk.bf16.gmra.mrb[12].mxu0 %vm736_vm1, %v535_v36  ;;  %v725_v49 = vpack.c.bf16 %v700_v41, %v699_v40  ;;  %v701_v50 = vmax.f32 %v669_v42, 0.0  ;;  %v512_v51 = vmax.f32 %v480_v43, 0.0  ;;  %v1651_v52 = vunpack.c.h.bf16 %v1687_v25  ;;  %v411_v40 = vld [vmem:[%s1928_s26 + $0xc8] sm:$0xff]  ;;  %v1691_v41 = vld [vmem:[%s1940_s11 + $0x60] sm:$0xff]  }
  0x33   : > { %v702_v53 = vmax.f32 %v670_v44, 0.0  ;;  %v513_v54 = vmax.f32 %v481_v45, 0.0  ;;  %v482_v55 = vadd.f32 %v1933_v5, %v443_v46  ;;  %v483_v56 = vadd.f32 %v1933_v5, %v444_v47 }
  0x34   : > { %1743 = vmatprep.mubr.msk.bf16.mxu1 %vm736_vm1, %v725_v49  ;;  %v632_v57 = vmul.f32 %v1650_v39, %v1945_v6  ;;  %v633_v58 = vmul.f32 %v1651_v52, %v1945_v6  ;;  %v1654_v59 = vunpack.c.l.bf16 %v1688_v48  ;;  %v1655_v60 = vunpack.c.h.bf16 %v1688_v48 }
  0x35   : > { %v726_v0 = vpack.c.bf16 %v702_v53, %v701_v50  ;;  %v536_v1 = vpack.c.bf16 %v513_v54, %v512_v51  ;;  %v514_v2 = vmax.f32 %v482_v55, 0.0  ;;  %v515_v3 = vmax.f32 %v483_v56, 0.0  ;;  %v412_v50 = vld [vmem:[%s1928_s26 + $0xd0] sm:$0xff]  ;;  %v413_v51 = vld [vmem:[%s1928_s26 + $0xd8] sm:$0xff] }
  0x36   : > { %v671_v7 = vadd.f32 %v1963_v23, %v632_v57  ;;  %v672_v8 = vadd.f32 %v1963_v23, %v633_v58  ;;  %v634_v9 = vmul.f32 %v1654_v59, %v1945_v6  ;;  %v635_v10 = vmul.f32 %v1655_v60, %v1945_v6 }
  0x37   : > { %1744 = vmatmul.mubr.msk.bf16.gmra.mrb[12].mxu1 %vm736_vm1, %v726_v0  ;;  %1781 = vmatprep.mubr.msk.bf16.mxu0 %vm736_vm1, %v536_v1  ;;  %v537_v13 = vpack.c.bf16 %v515_v3, %v514_v2  ;;  %v445_v14 = vmul.f32 %v1922_v4, %v406_v61  ;;  %v446_v15 = vmul.f32 %v1922_v4, %v407_v62  ;;  %v1658_v16 = vunpack.c.l.bf16 %v1689_v63  ;;  %v1692_v0 = vld [vmem:[%s1940_s11 + $0x68] sm:$0xff]  }
  0x38   : > { %v703_v17 = vmax.f32 %v671_v7, 0.0  ;;  %v704_v18 = vmax.f32 %v672_v8, 0.0  ;;  %v673_v19 = vadd.f32 %v1963_v23, %v634_v9  ;;  %v674_v20 = vadd.f32 %v1963_v23, %v635_v10 }
  0x39   : > { %v484_v21 = vadd.f32 %v1933_v5, %v445_v14  ;;  %v485_v22 = vadd.f32 %v1933_v5, %v446_v15  ;;  %v447_v24 = vmul.f32 %v1922_v4, %v408_v11  ;;  %v448_v25 = vmul.f32 %v1922_v4, %v409_v12 }
  0x3a   : > { %1782 = vmatmul.mubr.msk.bf16.gmra.mrb[16].mxu0 %vm736_vm1, %v537_v13  ;;  %v727_v27 = vpack.c.bf16 %v704_v18, %v703_v17  ;;  %v705_v28 = vmax.f32 %v673_v19, 0.0  ;;  %v706_v29 = vmax.f32 %v674_v20, 0.0  ;;  %v1659_v30 = vunpack.c.h.bf16 %v1689_v63  ;;  %v415_v17 = vld [vmem:[%s1928_s26 + $0xe8] sm:$0xff]  ;;  %v1693_v18 = vld [vmem:[%s1940_s11 + $0x70] sm:$0xff]  }
  0x3b   : > { %v516_v31 = vmax.f32 %v484_v21, 0.0  ;;  %v517_v32 = vmax.f32 %v485_v22, 0.0  ;;  %v486_v33 = vadd.f32 %v1933_v5, %v447_v24  ;;  %v487_v34 = vadd.f32 %v1933_v5, %v448_v25 }
  0x3c   : > { %1747 = vmatprep.mubr.msk.bf16.mxu1 %vm736_vm1, %v727_v27  ;;  %v728_v36 = vpack.c.bf16 %v706_v29, %v705_v28  ;;  %v636_v37 = vmul.f32 %v1658_v16, %v1945_v6  ;;  %v637_v38 = vmul.f32 %v1659_v30, %v1945_v6  ;;  %v1662_v39 = vunpack.c.l.bf16 %v1690_v26  ;;  %v414_v16 = vld [vmem:[%s1928_s26 + $0xe0] sm:$0xff]  ;;  %v416_v28 = vld [vmem:[%s1928_s26 + $0xf0] sm:$0xff]  ;;  %v417_v29 = vld [vmem:[%s1928_s26 + $0xf8] sm:$0xff] }
  0x3d   : > { %v538_v42 = vpack.c.bf16 %v517_v32, %v516_v31  ;;  %v518_v43 = vmax.f32 %v486_v33, 0.0  ;;  %v519_v44 = vmax.f32 %v487_v34, 0.0  ;;  %v1663_v45 = vunpack.c.h.bf16 %v1690_v26 }
  0x3e   : > { %v675_v46 = vadd.f32 %v1963_v23, %v636_v37  ;;  %v676_v47 = vadd.f32 %v1963_v23, %v637_v38  ;;  %v638_v48 = vmul.f32 %v1662_v39, %v1945_v6  ;;  %v449_v49 = vmul.f32 %v1922_v4, %v410_v35 }
  0x3f   : > { %1748 = vmatmul.mubr.msk.bf16.gmra.mrb[16].mxu1 %vm736_vm1, %v728_v36  ;;  %1785 = vmatprep.mubr.msk.bf16.mxu0 %vm736_vm1, %v538_v42  ;;  %v539_v52 = vpack.c.bf16 %v519_v44, %v518_v43  ;;  %v639_v53 = vmul.f32 %v1663_v45, %v1945_v6  ;;  %v450_v54 = vmul.f32 %v1922_v4, %v411_v40  ;;  %v1666_v55 = vunpack.c.l.bf16 %v1691_v41  ;;  %v1694_v42 = vld [vmem:[%s1940_s11 + $0x78] sm:$0xff]  }
  0x40   : > { %v707_v56 = vmax.f32 %v675_v46, 0.0  ;;  %v708_v57 = vmax.f32 %v676_v47, 0.0  ;;  %v677_v58 = vadd.f32 %v1963_v23, %v638_v48  ;;  %v488_v59 = vadd.f32 %v1933_v5, %v449_v49 }
  0x41   : > { %v678_v60 = vadd.f32 %v1963_v23, %v639_v53  ;;  %v489_v61 = vadd.f32 %v1933_v5, %v450_v54  ;;  %v451_v62 = vmul.f32 %v1922_v4, %v412_v50  ;;  %v452_v63 = vmul.f32 %v1922_v4, %v413_v51 }
  0x42   : > { %1786 = vmatmul.mubr.msk.bf16.gmra.mrb[20].mxu0 %vm736_vm1, %v539_v52  ;;  %v729_v1 = vpack.c.bf16 %v708_v57, %v707_v56  ;;  %v709_v2 = vmax.f32 %v677_v58, 0.0  ;;  %v520_v3 = vmax.f32 %v488_v59, 0.0  ;;  %v1667_v7 = vunpack.c.h.bf16 %v1691_v41 }
  0x43   : > { %v710_v8 = vmax.f32 %v678_v60, 0.0  ;;  %v521_v9 = vmax.f32 %v489_v61, 0.0  ;;  %v490_v10 = vadd.f32 %v1933_v5, %v451_v62  ;;  %v491_v11 = vadd.f32 %v1933_v5, %v452_v63 }
  0x44   : > { %1751 = vmatprep.mubr.msk.bf16.mxu1 %vm736_vm1, %v729_v1  ;;  %v640_v12 = vmul.f32 %v1666_v55, %v1945_v6  ;;  %v641_v13 = vmul.f32 %v1667_v7, %v1945_v6  ;;  %v1670_v14 = vunpack.c.l.bf16 %v1692_v0  ;;  %v1671_v15 = vunpack.c.h.bf16 %v1692_v0 }
  0x45   : > { %v730_v19 = vpack.c.bf16 %v710_v8, %v709_v2  ;;  %v540_v20 = vpack.c.bf16 %v521_v9, %v520_v3  ;;  %v522_v21 = vmax.f32 %v490_v10, 0.0  ;;  %v523_v22 = vmax.f32 %v491_v11, 0.0 }
  0x46   : > { %v679_v24 = vadd.f32 %v1963_v23, %v640_v12  ;;  %v680_v25 = vadd.f32 %v1963_v23, %v641_v13  ;;  %v642_v26 = vmul.f32 %v1670_v14, %v1945_v6  ;;  %v643_v27 = vmul.f32 %v1671_v15, %v1945_v6  ;;  %v2163_v12 = vld [vmem:[%s2316_s8] ss:$0 sm:$0xff] }
  0x47   : > { %1752 = vmatmul.mubr.msk.bf16.gmra.mrb[20].mxu1 %vm736_vm1, %v730_v19  ;;  %1789 = vmatprep.mubr.msk.bf16.mxu0 %vm736_vm1, %v540_v20  ;;  %v541_v30 = vpack.c.bf16 %v523_v22, %v522_v21  ;;  %v453_v31 = vmul.f32 %v1922_v4, %v414_v16  ;;  %v454_v32 = vmul.f32 %v1922_v4, %v415_v17  ;;  %v1674_v33 = vunpack.c.l.bf16 %v1693_v18  ;;  %v2168_v15 = vld [vmem:[%s2317_s9] ss:$0 sm:$0xff] }
  0x48   : > { %v711_v34 = vmax.f32 %v679_v24, 0.0  ;;  %v712_v35 = vmax.f32 %v680_v25, 0.0  ;;  %v681_v36 = vadd.f32 %v1963_v23, %v642_v26  ;;  %v682_v37 = vadd.f32 %v1963_v23, %v643_v27 }
  0x49   : > { %v492_v38 = vadd.f32 %v1933_v5, %v453_v31  ;;  %v493_v39 = vadd.f32 %v1933_v5, %v454_v32  ;;  %v455_v40 = vmul.f32 %v1922_v4, %v416_v28  ;;  %v456_v41 = vmul.f32 %v1922_v4, %v417_v29 }
  0x4a   : > { %1790 = vmatmul.mubr.msk.bf16.gmra.mrb[24].mxu0 %vm736_vm1, %v541_v30  ;;  %v731_v43 = vpack.c.bf16 %v712_v35, %v711_v34  ;;  %v713_v44 = vmax.f32 %v681_v36, 0.0  ;;  %v714_v45 = vmax.f32 %v682_v37, 0.0  ;;  %v1675_v46 = vunpack.c.h.bf16 %v1693_v18 }
  0x4b   : > { %v524_v47 = vmax.f32 %v492_v38, 0.0  ;;  %v525_v48 = vmax.f32 %v493_v39, 0.0  ;;  %v494_v49 = vadd.f32 %v1933_v5, %v455_v40  ;;  %v495_v50 = vadd.f32 %v1933_v5, %v456_v41 }
  0x4c   : > { %1755 = vmatprep.mubr.msk.bf16.mxu1 %vm736_vm1, %v731_v43  ;;  %v732_v51 = vpack.c.bf16 %v714_v45, %v713_v44  ;;  %v644_v52 = vmul.f32 %v1674_v33, %v1945_v6  ;;  %v645_v4 = vmul.f32 %v1675_v46, %v1945_v6  ;;  %v1678_v53 = vunpack.c.l.bf16 %v1694_v42 }
  0x4d   : > { %v542_v54 = vpack.c.bf16 %v525_v48, %v524_v47  ;;  %v526_v55 = vmax.f32 %v494_v49, 0.0  ;;  %v527_v56 = vmax.f32 %v495_v50, 0.0  ;;  %v1679_v57 = vunpack.c.h.bf16 %v1694_v42 }
  0x4e   : > { %v683_v58 = vadd.f32 %v1963_v23, %v644_v52  ;;  %v684_v59 = vadd.f32 %v1963_v23, %v645_v4  ;;  %v646_v60 = vmul.f32 %v1678_v53, %v1945_v6 }
  0x4f   : > { %1756 = vmatmul.mubr.msk.bf16.gmra.mrb[24].mxu1 %vm736_vm1, %v732_v51  ;;  %1793 = vmatprep.mubr.msk.bf16.mxu0 %vm736_vm1, %v542_v54  ;;  %v543_v5 = vpack.c.bf16 %v527_v56, %v526_v55  ;;  %v647_v61 = vmul.f32 %v1679_v57, %v1945_v6 }
  0x50   : > { %v715_v62 = vmax.f32 %v683_v58, 0.0  ;;  %v716_v63 = vmax.f32 %v684_v59, 0.0  ;;  %v685_v0 = vadd.f32 %v1963_v23, %v646_v60 }
  0x51   : > { %v686_v1 = vadd.f32 %v1963_v23, %v647_v61 }
  0x52   : > { %1794 = vmatmul.mubr.msk.bf16.gmra.mrb[28].mxu0 %vm736_vm1, %v543_v5  ;;  %v733_v2 = vpack.c.bf16 %v716_v63, %v715_v62  ;;  %v717_v3 = vmax.f32 %v685_v0, 0.0 }
  0x53   : > { %v718_v7 = vmax.f32 %v686_v1, 0.0 }
  0x54   : > { %1759 = vmatprep.mubr.msk.bf16.mxu1 %vm736_vm1, %v733_v2 }
  0x55   : > { %v734_v8 = vpack.c.bf16 %v718_v7, %v717_v3 }
  0x57   : > { %1760 = vmatmul.mubr.msk.bf16.gmra.mrb[28].mxu1 %vm736_vm1, %v734_v8 }
  0xed   : > { %v1767_v9 = vpop.f32.mrb[0].mxu0 }
  0xee   : > { %v1035_v10 = vpop.f32.mrb[1].mxu0 }
  0xef   : > { %v1768_v11 = vpop.f32.mrb[2].mxu0 }
  0xf0   : > { %v1733_v6 = vpop.f32.mrb[0].mxu1  ;;  %v1038_v23 = vpop.f32.mrb[3].mxu0 }
  0xf1   : > { %v1044_v13 = vadd.f32 %v1767_v9, %v1733_v6  ;;  %v823_v14 = vpop.f32.mrb[1].mxu1 }
  0xf2   : > { %v1036_v16 = vadd.f32 %v1035_v10, %v823_v14  ;;  %v1734_v17 = vpop.f32.mrb[2].mxu1 }
  0xf3   : > { %v1171_v18 = vmul.f32 %v2163_v12, %v1044_v13  ;;  %v1047_v19 = vadd.f32 %v1768_v11, %v1734_v17  ;;  %v826_v20 = vpop.f32.mrb[3].mxu1 }
  0xf4   : > { %v1169_v21 = vmul.f32 %v2163_v12, %v1036_v16  ;;  %v1039_v22 = vadd.f32 %v1038_v23, %v826_v20 }
  0xf5   : > { %v1210_v24 = vadd.f32 %v2168_v15, %v1171_v18  ;;  %v1172_v25 = vmul.f32 %v2163_v12, %v1047_v19  ;;  %v1771_v26 = vpop.f32.mrb[4].mxu0 }
  0xf6   : > { %v1208_v27 = vadd.f32 %v2168_v15, %v1169_v21  ;;  %v1170_v28 = vmul.f32 %v2163_v12, %v1039_v22  ;;  %v1051_v29 = vpop.f32.mrb[5].mxu0 }
  0xf7   : > { %v1242_v30 = vmax.f32 %v1210_v24, 0.0  ;;  %v1211_v31 = vadd.f32 %v2168_v15, %v1172_v25  ;;  %v1772_v32 = vpop.f32.mrb[6].mxu0 }
  0xf8   : > { %v1240_v33 = vmax.f32 %v1208_v27, 0.0  ;;  %v1209_v34 = vadd.f32 %v2168_v15, %v1170_v28  ;;  %v1054_v35 = vpop.f32.mrb[7].mxu0 }
  0xf9   : > { %v1586_v36 = vpack.c.bf16 %v1242_v30, %v1242_v30  ;;  %v1243_v37 = vmax.f32 %v1211_v31, 0.0 }
  0xfa   : > { %v1584_v38 = vpack.c.bf16 %v1240_v33, %v1240_v33  ;;  %v1241_v39 = vmax.f32 %v1209_v34, 0.0  ;;  %v1737_v40 = vpop.f32.mrb[4].mxu1 }
  0xfb   : > { %1403 = vst.msk [vmem:[%s2182_s25 + $0x8] sm:$0xf] %vm1400_vm2, %v1586_v36  ;;  %v1587_v41 = vpack.c.bf16 %v1243_v37, %v1243_v37  ;;  %v1060_v42 = vadd.f32 %v1771_v26, %v1737_v40  ;;  %v839_v43 = vpop.f32.mrb[5].mxu1 }
  0xfc   : > { %1401 = vst.msk [vmem:[%s2182_s25] sm:$0xf] %vm1400_vm2, %v1584_v38  ;;  %v1585_v44 = vpack.c.bf16 %v1241_v39, %v1241_v39  ;;  %v1052_v45 = vadd.f32 %v1051_v29, %v839_v43  ;;  %v1738_v46 = vpop.f32.mrb[6].mxu1 }
  0xfd   : > { %1404 = vst.msk [vmem:[%s2182_s25 + $0xc] sm:$0xf] %vm1400_vm2, %v1587_v41  ;;  %v1175_v47 = vmul.f32 %v2163_v12, %v1060_v42  ;;  %v1063_v48 = vadd.f32 %v1772_v32, %v1738_v46  ;;  %v842_v49 = vpop.f32.mrb[7].mxu1  ;;  %v1775_v50 = vpop.f32.mrb[8].mxu0 }
  0xfe   : > { %1402 = vst.msk [vmem:[%s2182_s25 + $0x4] sm:$0xf] %vm1400_vm2, %v1585_v44  ;;  %v1173_v51 = vmul.f32 %v2163_v12, %v1052_v45  ;;  %v1055_v52 = vadd.f32 %v1054_v35, %v842_v49  ;;  %v1067_v4 = vpop.f32.mrb[9].mxu0 }
  0xff   : > { %v1214_v53 = vadd.f32 %v2168_v15, %v1175_v47  ;;  %v1176_v54 = vmul.f32 %v2163_v12, %v1063_v48  ;;  %v1776_v55 = vpop.f32.mrb[10].mxu0 }
 0x100   : > { %v1212_v56 = vadd.f32 %v2168_v15, %v1173_v51  ;;  %v1174_v57 = vmul.f32 %v2163_v12, %v1055_v52  ;;  %v1070_v58 = vpop.f32.mrb[11].mxu0 }
 0x101   : > { %v1246_v59 = vmax.f32 %v1214_v53, 0.0  ;;  %v1215_v60 = vadd.f32 %v2168_v15, %v1176_v54 }
 0x102   : > { %v1244_v5 = vmax.f32 %v1212_v56, 0.0  ;;  %v1213_v61 = vadd.f32 %v2168_v15, %v1174_v57  ;;  %v1741_v62 = vpop.f32.mrb[8].mxu1 }
 0x103   : > { %v1590_v63 = vpack.c.bf16 %v1246_v59, %v1246_v59  ;;  %v1247_v0 = vmax.f32 %v1215_v60, 0.0  ;;  %v1076_v1 = vadd.f32 %v1775_v50, %v1741_v62  ;;  %v855_v2 = vpop.f32.mrb[9].mxu1 }
 0x104   : > { %v1588_v3 = vpack.c.bf16 %v1244_v5, %v1244_v5  ;;  %v1245_v7 = vmax.f32 %v1213_v61, 0.0  ;;  %v1068_v8 = vadd.f32 %v1067_v4, %v855_v2  ;;  %v1742_v9 = vpop.f32.mrb[10].mxu1 }
 0x105   : > { %1407 = vst.msk [vmem:[%s2182_s25 + $0x18] sm:$0xf] %vm1400_vm2, %v1590_v63  ;;  %v1591_v10 = vpack.c.bf16 %v1247_v0, %v1247_v0  ;;  %v1179_v11 = vmul.f32 %v2163_v12, %v1076_v1  ;;  %v1079_v6 = vadd.f32 %v1776_v55, %v1742_v9  ;;  %v858_v23 = vpop.f32.mrb[11].mxu1  ;;  %v1779_v13 = vpop.f32.mrb[12].mxu0 }
 0x106   : > { %1405 = vst.msk [vmem:[%s2182_s25 + $0x10] sm:$0xf] %vm1400_vm2, %v1588_v3  ;;  %v1589_v14 = vpack.c.bf16 %v1245_v7, %v1245_v7  ;;  %v1177_v16 = vmul.f32 %v2163_v12, %v1068_v8  ;;  %v1071_v17 = vadd.f32 %v1070_v58, %v858_v23  ;;  %v1083_v18 = vpop.f32.mrb[13].mxu0 }
 0x107   : > { %1408 = vst.msk [vmem:[%s2182_s25 + $0x1c] sm:$0xf] %vm1400_vm2, %v1591_v10  ;;  %v1218_v19 = vadd.f32 %v2168_v15, %v1179_v11  ;;  %v1180_v20 = vmul.f32 %v2163_v12, %v1079_v6  ;;  %v1780_v21 = vpop.f32.mrb[14].mxu0 }
 0x108   : > { %1406 = vst.msk [vmem:[%s2182_s25 + $0x14] sm:$0xf] %vm1400_vm2, %v1589_v14  ;;  %v1216_v22 = vadd.f32 %v2168_v15, %v1177_v16  ;;  %v1178_v24 = vmul.f32 %v2163_v12, %v1071_v17  ;;  %v1086_v25 = vpop.f32.mrb[15].mxu0 }
 0x109   : > { %v1250_v26 = vmax.f32 %v1218_v19, 0.0  ;;  %v1219_v27 = vadd.f32 %v2168_v15, %v1180_v20 }
 0x10a   : > { %v1248_v28 = vmax.f32 %v1216_v22, 0.0  ;;  %v1217_v29 = vadd.f32 %v2168_v15, %v1178_v24  ;;  %v1745_v30 = vpop.f32.mrb[12].mxu1 }
 0x10b   : > { %v1594_v31 = vpack.c.bf16 %v1250_v26, %v1250_v26  ;;  %v1251_v32 = vmax.f32 %v1219_v27, 0.0  ;;  %v1092_v33 = vadd.f32 %v1779_v13, %v1745_v30  ;;  %v871_v34 = vpop.f32.mrb[13].mxu1 }
 0x10c   : > { %v1592_v35 = vpack.c.bf16 %v1248_v28, %v1248_v28  ;;  %v1249_v36 = vmax.f32 %v1217_v29, 0.0  ;;  %v1084_v37 = vadd.f32 %v1083_v18, %v871_v34  ;;  %v1746_v38 = vpop.f32.mrb[14].mxu1 }
 0x10d   : > { %1411 = vst.msk [vmem:[%s2182_s25 + $0x28] sm:$0xf] %vm1400_vm2, %v1594_v31  ;;  %v1595_v39 = vpack.c.bf16 %v1251_v32, %v1251_v32  ;;  %v1183_v40 = vmul.f32 %v2163_v12, %v1092_v33  ;;  %v1095_v41 = vadd.f32 %v1780_v21, %v1746_v38  ;;  %v874_v42 = vpop.f32.mrb[15].mxu1  ;;  %v1783_v43 = vpop.f32.mrb[16].mxu0 }
 0x10e   : > { %1409 = vst.msk [vmem:[%s2182_s25 + $0x20] sm:$0xf] %vm1400_vm2, %v1592_v35  ;;  %v1593_v44 = vpack.c.bf16 %v1249_v36, %v1249_v36  ;;  %v1181_v45 = vmul.f32 %v2163_v12, %v1084_v37  ;;  %v1087_v46 = vadd.f32 %v1086_v25, %v874_v42  ;;  %v1099_v47 = vpop.f32.mrb[17].mxu0 }
 0x10f   : > { %1412 = vst.msk [vmem:[%s2182_s25 + $0x2c] sm:$0xf] %vm1400_vm2, %v1595_v39  ;;  %v1222_v48 = vadd.f32 %v2168_v15, %v1183_v40  ;;  %v1184_v49 = vmul.f32 %v2163_v12, %v1095_v41  ;;  %v1784_v50 = vpop.f32.mrb[18].mxu0 }
 0x110   : > { %1410 = vst.msk [vmem:[%s2182_s25 + $0x24] sm:$0xf] %vm1400_vm2, %v1593_v44  ;;  %v1220_v51 = vadd.f32 %v2168_v15, %v1181_v45  ;;  %v1182_v52 = vmul.f32 %v2163_v12, %v1087_v46  ;;  %v1102_v4 = vpop.f32.mrb[19].mxu0 }
 0x111   : > { %v1254_v53 = vmax.f32 %v1222_v48, 0.0  ;;  %v1223_v54 = vadd.f32 %v2168_v15, %v1184_v49 }
 0x112   : > { %v1252_v55 = vmax.f32 %v1220_v51, 0.0  ;;  %v1221_v56 = vadd.f32 %v2168_v15, %v1182_v52  ;;  %v1749_v57 = vpop.f32.mrb[16].mxu1 }
 0x113   : > { %v1598_v58 = vpack.c.bf16 %v1254_v53, %v1254_v53  ;;  %v1255_v59 = vmax.f32 %v1223_v54, 0.0  ;;  %v1108_v60 = vadd.f32 %v1783_v43, %v1749_v57  ;;  %v887_v5 = vpop.f32.mrb[17].mxu1 }
 0x114   : > { %v1596_v61 = vpack.c.bf16 %v1252_v55, %v1252_v55  ;;  %v1253_v62 = vmax.f32 %v1221_v56, 0.0  ;;  %v1100_v63 = vadd.f32 %v1099_v47, %v887_v5  ;;  %v1750_v0 = vpop.f32.mrb[18].mxu1 }
 0x115   : > { %1415 = vst.msk [vmem:[%s2182_s25 + $0x38] sm:$0xf] %vm1400_vm2, %v1598_v58  ;;  %v1599_v1 = vpack.c.bf16 %v1255_v59, %v1255_v59  ;;  %v1187_v2 = vmul.f32 %v2163_v12, %v1108_v60  ;;  %v1111_v3 = vadd.f32 %v1784_v50, %v1750_v0  ;;  %v890_v7 = vpop.f32.mrb[19].mxu1  ;;  %v1787_v8 = vpop.f32.mrb[20].mxu0 }
 0x116   : > { %1413 = vst.msk [vmem:[%s2182_s25 + $0x30] sm:$0xf] %vm1400_vm2, %v1596_v61  ;;  %v1597_v9 = vpack.c.bf16 %v1253_v62, %v1253_v62  ;;  %v1185_v10 = vmul.f32 %v2163_v12, %v1100_v63  ;;  %v1103_v11 = vadd.f32 %v1102_v4, %v890_v7  ;;  %v1115_v6 = vpop.f32.mrb[21].mxu0 }
 0x117   : > { %1416 = vst.msk [vmem:[%s2182_s25 + $0x3c] sm:$0xf] %vm1400_vm2, %v1599_v1  ;;  %v1226_v23 = vadd.f32 %v2168_v15, %v1187_v2  ;;  %v1188_v13 = vmul.f32 %v2163_v12, %v1111_v3  ;;  %v1788_v14 = vpop.f32.mrb[22].mxu0 }
 0x118   : > { %1414 = vst.msk [vmem:[%s2182_s25 + $0x34] sm:$0xf] %vm1400_vm2, %v1597_v9  ;;  %v1224_v16 = vadd.f32 %v2168_v15, %v1185_v10  ;;  %v1186_v17 = vmul.f32 %v2163_v12, %v1103_v11  ;;  %v1118_v18 = vpop.f32.mrb[23].mxu0 }
 0x119   : > { %v1258_v19 = vmax.f32 %v1226_v23, 0.0  ;;  %v1227_v20 = vadd.f32 %v2168_v15, %v1188_v13 }
 0x11a   : > { %v1256_v21 = vmax.f32 %v1224_v16, 0.0  ;;  %v1225_v22 = vadd.f32 %v2168_v15, %v1186_v17  ;;  %v1753_v24 = vpop.f32.mrb[20].mxu1 }
 0x11b   : > { %v1602_v25 = vpack.c.bf16 %v1258_v19, %v1258_v19  ;;  %v1259_v26 = vmax.f32 %v1227_v20, 0.0  ;;  %v1124_v27 = vadd.f32 %v1787_v8, %v1753_v24  ;;  %v903_v28 = vpop.f32.mrb[21].mxu1 }
 0x11c   : > { %v1600_v29 = vpack.c.bf16 %v1256_v21, %v1256_v21  ;;  %v1257_v30 = vmax.f32 %v1225_v22, 0.0  ;;  %v1116_v31 = vadd.f32 %v1115_v6, %v903_v28  ;;  %v1754_v32 = vpop.f32.mrb[22].mxu1 }
 0x11d   : > { %1419 = vst.msk [vmem:[%s2182_s25 + $0x48] sm:$0xf] %vm1400_vm2, %v1602_v25  ;;  %v1603_v33 = vpack.c.bf16 %v1259_v26, %v1259_v26  ;;  %v1191_v34 = vmul.f32 %v2163_v12, %v1124_v27  ;;  %v1127_v35 = vadd.f32 %v1788_v14, %v1754_v32  ;;  %v906_v36 = vpop.f32.mrb[23].mxu1  ;;  %v1791_v37 = vpop.f32.mrb[24].mxu0 }
 0x11e   : > { %1417 = vst.msk [vmem:[%s2182_s25 + $0x40] sm:$0xf] %vm1400_vm2, %v1600_v29  ;;  %v1601_v38 = vpack.c.bf16 %v1257_v30, %v1257_v30  ;;  %v1189_v39 = vmul.f32 %v2163_v12, %v1116_v31  ;;  %v1119_v40 = vadd.f32 %v1118_v18, %v906_v36  ;;  %v1131_v41 = vpop.f32.mrb[25].mxu0 }
 0x11f   : > { %1420 = vst.msk [vmem:[%s2182_s25 + $0x4c] sm:$0xf] %vm1400_vm2, %v1603_v33  ;;  %v1230_v42 = vadd.f32 %v2168_v15, %v1191_v34  ;;  %v1192_v43 = vmul.f32 %v2163_v12, %v1127_v35  ;;  %v1792_v44 = vpop.f32.mrb[26].mxu0 }
 0x120   : > { %1418 = vst.msk [vmem:[%s2182_s25 + $0x44] sm:$0xf] %vm1400_vm2, %v1601_v38  ;;  %v1228_v45 = vadd.f32 %v2168_v15, %v1189_v39  ;;  %v1190_v46 = vmul.f32 %v2163_v12, %v1119_v40  ;;  %v1134_v47 = vpop.f32.mrb[27].mxu0 }
 0x121   : > { %v1262_v48 = vmax.f32 %v1230_v42, 0.0  ;;  %v1231_v49 = vadd.f32 %v2168_v15, %v1192_v43 }
 0x122   : > { %v1260_v50 = vmax.f32 %v1228_v45, 0.0  ;;  %v1229_v51 = vadd.f32 %v2168_v15, %v1190_v46  ;;  %v1757_v52 = vpop.f32.mrb[24].mxu1 }
 0x123   : > { %v1606_v4 = vpack.c.bf16 %v1262_v48, %v1262_v48  ;;  %v1263_v53 = vmax.f32 %v1231_v49, 0.0  ;;  %v1140_v54 = vadd.f32 %v1791_v37, %v1757_v52  ;;  %v919_v55 = vpop.f32.mrb[25].mxu1 }
 0x124   : > { %v1604_v56 = vpack.c.bf16 %v1260_v50, %v1260_v50  ;;  %v1261_v57 = vmax.f32 %v1229_v51, 0.0  ;;  %v1132_v58 = vadd.f32 %v1131_v41, %v919_v55  ;;  %v1758_v59 = vpop.f32.mrb[26].mxu1 }
 0x125   : > { %1423 = vst.msk [vmem:[%s2182_s25 + $0x58] sm:$0xf] %vm1400_vm2, %v1606_v4  ;;  %v1607_v60 = vpack.c.bf16 %v1263_v53, %v1263_v53  ;;  %v1195_v5 = vmul.f32 %v2163_v12, %v1140_v54  ;;  %v1143_v61 = vadd.f32 %v1792_v44, %v1758_v59  ;;  %v922_v62 = vpop.f32.mrb[27].mxu1  ;;  %v1795_v63 = vpop.f32.mrb[28].mxu0 }
 0x126   : > { %1421 = vst.msk [vmem:[%s2182_s25 + $0x50] sm:$0xf] %vm1400_vm2, %v1604_v56  ;;  %v1605_v0 = vpack.c.bf16 %v1261_v57, %v1261_v57  ;;  %v1193_v1 = vmul.f32 %v2163_v12, %v1132_v58  ;;  %v1135_v2 = vadd.f32 %v1134_v47, %v922_v62  ;;  %v1147_v3 = vpop.f32.mrb[29].mxu0 }
 0x127   : > { %1424 = vst.msk [vmem:[%s2182_s25 + $0x5c] sm:$0xf] %vm1400_vm2, %v1607_v60  ;;  %v1234_v7 = vadd.f32 %v2168_v15, %v1195_v5  ;;  %v1196_v8 = vmul.f32 %v2163_v12, %v1143_v61  ;;  %v1796_v9 = vpop.f32.mrb[30].mxu0 }
 0x128   : > { %1422 = vst.msk [vmem:[%s2182_s25 + $0x54] sm:$0xf] %vm1400_vm2, %v1605_v0  ;;  %v1232_v10 = vadd.f32 %v2168_v15, %v1193_v1  ;;  %v1194_v11 = vmul.f32 %v2163_v12, %v1135_v2  ;;  %v1150_v6 = vpop.f32.mrb[31].mxu0 }
 0x129   : > { %v1266_v23 = vmax.f32 %v1234_v7, 0.0  ;;  %v1235_v13 = vadd.f32 %v2168_v15, %v1196_v8 }
 0x12a   : > { %v1264_v14 = vmax.f32 %v1232_v10, 0.0  ;;  %v1233_v16 = vadd.f32 %v2168_v15, %v1194_v11  ;;  %v1761_v17 = vpop.f32.mrb[28].mxu1 }
 0x12b   : > { %v1610_v18 = vpack.c.bf16 %v1266_v23, %v1266_v23  ;;  %v1267_v19 = vmax.f32 %v1235_v13, 0.0  ;;  %v1156_v20 = vadd.f32 %v1795_v63, %v1761_v17  ;;  %v935_v21 = vpop.f32.mrb[29].mxu1 }
 0x12c   : > { %v1608_v22 = vpack.c.bf16 %v1264_v14, %v1264_v14  ;;  %v1265_v24 = vmax.f32 %v1233_v16, 0.0  ;;  %v1148_v25 = vadd.f32 %v1147_v3, %v935_v21  ;;  %v1762_v26 = vpop.f32.mrb[30].mxu1 }
 0x12d   : > { %1427 = vst.msk [vmem:[%s2182_s25 + $0x68] sm:$0xf] %vm1400_vm2, %v1610_v18  ;;  %v1611_v27 = vpack.c.bf16 %v1267_v19, %v1267_v19  ;;  %v1199_v28 = vmul.f32 %v2163_v12, %v1156_v20  ;;  %v1159_v29 = vadd.f32 %v1796_v9, %v1762_v26  ;;  %v938_v30 = vpop.f32.mrb[31].mxu1 }
 0x12e   : > { %1425 = vst.msk [vmem:[%s2182_s25 + $0x60] sm:$0xf] %vm1400_vm2, %v1608_v22  ;;  %v1609_v31 = vpack.c.bf16 %v1265_v24, %v1265_v24  ;;  %v1197_v32 = vmul.f32 %v2163_v12, %v1148_v25  ;;  %v1151_v33 = vadd.f32 %v1150_v6, %v938_v30 }
 0x12f   : > { %1428 = vst.msk [vmem:[%s2182_s25 + $0x6c] sm:$0xf] %vm1400_vm2, %v1611_v27  ;;  %v1238_v34 = vadd.f32 %v2168_v15, %v1199_v28  ;;  %v1200_v35 = vmul.f32 %v2163_v12, %v1159_v29 }
 0x130   : > { %1426 = vst.msk [vmem:[%s2182_s25 + $0x64] sm:$0xf] %vm1400_vm2, %v1609_v31  ;;  %v1236_v36 = vadd.f32 %v2168_v15, %v1197_v32  ;;  %v1198_v37 = vmul.f32 %v2163_v12, %v1151_v33 }
 0x131   : > { %v1270_v38 = vmax.f32 %v1238_v34, 0.0  ;;  %v1239_v39 = vadd.f32 %v2168_v15, %v1200_v35 }
 0x132   : > { %v1268_v40 = vmax.f32 %v1236_v36, 0.0  ;;  %v1237_v41 = vadd.f32 %v2168_v15, %v1198_v37 }
 0x133   : > { %v1614_v42 = vpack.c.bf16 %v1270_v38, %v1270_v38  ;;  %v1271_v43 = vmax.f32 %v1239_v39, 0.0 }
 0x134   : > { %v1612_v44 = vpack.c.bf16 %v1268_v40, %v1268_v40  ;;  %v1269_v45 = vmax.f32 %v1237_v41, 0.0 }
 0x135   : > { %1431 = vst.msk [vmem:[%s2182_s25 + $0x78] sm:$0xf] %vm1400_vm2, %v1614_v42  ;;  %v1615_v46 = vpack.c.bf16 %v1271_v43, %v1271_v43 }
 0x136   : > { %1429 = vst.msk [vmem:[%s2182_s25 + $0x70] sm:$0xf] %vm1400_vm2, %v1612_v44  ;;  %v1613_v47 = vpack.c.bf16 %v1269_v45, %v1269_v45 }
 0x137   : > { %1432 = vst.msk [vmem:[%s2182_s25 + $0x7c] sm:$0xf] %vm1400_vm2, %v1615_v46 }
 0x138   : > { %1430 = vst.msk [vmem:[%s2182_s25 + $0x74] sm:$0xf] %vm1400_vm2, %v1613_v47 }
 0x139 PF: > { %s20_s13 = sadd.s32 1, %s1845_s13  }
 0x13a   : > { %p17_p4 = scmp.ge.s32.totalorder %s20_s13, 4  }
 0x13c   :  { %19 = sbr.rel (!%p17_p4) target bundleno = 1 (0x1), region = 93 }

// kernel: dense_block_forward.5
= control target key start
LH: loop header
LB: loop body
LE: loop exit
PB: predicated region body
PF: predicated region fallthrough
CT: control target
= control target key end

     0   :  { %s6321_s9 = smov 0   ;;  %s6323_s10 = smov 0   ;;  %s8362_s0 = inlined_call_operand.vmem [shape: bf16[2,18,18,16], index: 0, kind: input, shape index: {}]   ;;  %s8363_s1 = inlined_call_operand.vmem [shape: bf16[9,16,8], index: 1, kind: input, shape index: {}]   ;;  %s8364_s2 = inlined_call_operand.vmem [shape: bf16[2,16,16,8], index: 2, kind: output, shape index: {}]  }
   0x1   :  { %s6325_s11 = smov 0  }
   0x2 LB: > { %s24_s12 = sadd.s32 1, %s6300_s10  ;;  %p4844_p0 = scmp.ge.s32.totalorder %s6304_s11, 1  ;;  %s6304_s11 = sphi %s6325_s11, %s12_s11   ;;  %s6300_s10 = sphi %s6323_s10, %s8482_s10   ;;  %s6296_s9 = sphi %s6321_s9, %s8481_s9  }
   0x3   : > { %p26_p1 = scmp.ge.s32.totalorder %s24_s12, 2  ;;  %p126_p2 = scmp.lt.s32.totalorder %s6304_s11, 3 }
   0x5   : > { %s8484_s12 = smov (%p26_p1, %s24_s12), 0  ;;  %p127_p3 = pnand %p4844_p0, %p126_p2 }
   0x7   : > { %130 = sbr.rel (%p127_p3) target bundleno = 589 (0x24d), region = 28 }
   0xe   : > { %v6114_v0 = vld [vmem:[%s8363_s1 + $0x8] sm:$0xff]   ;;  %p153_p4 = scmp.lt.s32.totalorder %s6296_s9, 1  ;;  %v6115_v1 = vld [vmem:[%s8363_s1 + $0x20] sm:$0xff]   ;;  %vm224_vm0 = vsmask.f32 3328  ;;  %vm668_vm3 = vcmask 130048  }
   0xf   : > { %5525 = vmatprep.subr.bf16.mxu1 %v6114_v0  ;;  %v6350_v2 = vld [vmem:[%s8363_s1] sm:$0xff]   ;;  %5661 = vmatprep.subr.bf16.mxu0 %v6115_v1  ;;  %v6357_v3 = vld [vmem:[%s8363_s1 + $0x28] sm:$0xff]   ;;  %vm225_vm1 = vsmask.f32 7440  ;;  %vm1189_vm4 = vcmask 1042432   ;;  %vm1190_vm5 = vcmask 1046532  }
  0x10   : > { %s8486_s9 = smov (!%p153_p4, %s6296_s9), 1  ;;  %5526 = vmatpush3.bf16.msra.mxu1 %v6114_v0  ;;  %5662 = vmatpush3.bf16.msra.mxu0 %v6115_v1  ;;  %vm6386_vm2 = vmor %vm224_vm0, %vm225_vm1  ;;  %vm4710_vm7 = vcmask 60416  }
  0x11   : > { %s6089_s19 = smul.u32 216, %s8486_s9  ;;  %5559 = vmatprep.subr.bf16.mxu1 %v6350_v2  ;;  %5695 = vmatprep.subr.bf16.mxu0 %v6357_v3  ;;  %vm6643_vm6 = vmor %vm1189_vm4, %vm1190_vm5  ;;  %s5339_s15 = sshll.u32 %s8486_s9, 7 }
  0x12   : > { %s8287_s18 = scalar_lea.vmem %s8364_s2, %s5339_s15 }
  0x13   : > { %s6362_s24 = scalar_lea.vmem %s8362_s0, %s6089_s19 }
  0x14   : > { %v174_v4 = vld [vmem:[%s6362_s24] sm:$0xf]  ;;  %v175_v5 = vld [vmem:[%s6362_s24 + $0x4] sm:$0xf]  ;;  %v176_v6 = vld [vmem:[%s6362_s24 + $0x8] sm:$0x1] }
  0x15   : > { %v228_v7 = vshrl.u32 %v174_v4, 16  ;;  %v231_v8 = vshll.u32 %v174_v4, 16  ;;  %v237_v9 = vshll.u32 %v175_v5, 16  ;;  %v241_v10 = vshrl.u32 %v175_v5, 16  ;;  %v6369_v11 = vld [vmem:[%s6362_s24 + $0xc] sm:$0xf] }
  0x16   : > { %v247_v12 = vshll.u32 %v176_v6, 16  ;;  %v6372_v13 = vld [vmem:[%s6362_s24 + $0x10] sm:$0xf]  ;;  %v6375_v14 = vld [vmem:[%s6362_s24 + $0x14] sm:$0x1]  ;;  %v1985_v20 = vshrl.u32 %v6369_v11, 16 }
  0x17   : > { %v230_v15 = vrot.slane %v228_v7, 4  ;;  %v233_v16 = vrot.slane %v231_v8, 5  ;;  %v239_v17 = vrot.slane %v237_v9, 5  ;;  %v243_v18 = vrot.slane %v241_v10, 4  ;;  %v177_v27 = vld [vmem:[%s6362_s24 + $0xc] sm:$0xf] }
  0x18   : > { %v249_v19 = vrot.slane %v247_v12, 5  ;;  %v1988_v21 = vshll.u32 %v6369_v11, 16  ;;  %v1994_v22 = vshll.u32 %v6372_v13, 16  ;;  %v1998_v25 = vshrl.u32 %v6372_v13, 16  ;;  %v178_v28 = vld [vmem:[%s6362_s24 + $0x10] sm:$0xf] }
  0x19   : > { %v234_v23 = vor.u32 %v233_v16, %v230_v15  ;;  %v244_v24 = vor.u32 %v243_v18, %v239_v17  ;;  %v2004_v26 = vshll.u32 %v6375_v14, 16  ;;  %v1987_v30 = vrot.slane %v1985_v20, 4  ;;  %v179_v38 = vld [vmem:[%s6362_s24 + $0x14] sm:$0x1]  ;;  %v6396_v50 = vld [vmem:[%s6362_s24 + $0x18] sm:$0xf] }
  0x1a   : > { %v1990_v31 = vrot.slane %v1988_v21, 5  ;;  %v1996_v32 = vrot.slane %v1994_v22, 5  ;;  %v2000_v35 = vrot.slane %v1998_v25, 4  ;;  %v252_v39 = vshrl.u32 %v177_v27, 16  ;;  %v6399_v55 = vld [vmem:[%s6362_s24 + $0x1c] sm:$0xf] }
  0x1b   : > { %v235_v33 = vrot.slane %v234_v23, 4  ;;  %v245_v34 = vrot.slane %v244_v24, 4  ;;  %v2006_v36 = vrot.slane %v2004_v26, 5  ;;  %v255_v40 = vshll.u32 %v177_v27, 16  ;;  %v6406_v59 = vld [vmem:[%s6362_s24 + $0x20] sm:$0x1] }
  0x1c   : > { %v1991_v37 = vor.u32 %v1990_v31, %v1987_v30  ;;  %v261_v41 = vshll.u32 %v178_v28, 16  ;;  %v2001_v44 = vor.u32 %v2000_v35, %v1996_v32  ;;  %v265_v45 = vshrl.u32 %v178_v28, 16  ;;  %v180_v6 = vld [vmem:[%s6362_s24 + $0x18] sm:$0xf]  ;;  %v181_v12 = vld [vmem:[%s6362_s24 + $0x1c] sm:$0xf] }
  0x1d   : > { %v240_v42 = vsel %vm6386_vm2, %v235_v33, %v239_v17  ;;  %v250_v43 = vsel %vm6386_vm2, %v245_v34, %v249_v19  ;;  %v254_v48 = vrot.slane %v252_v39, 4  ;;  %v257_v49 = vrot.slane %v255_v40, 5  ;;  %v182_v19 = vld [vmem:[%s6362_s24 + $0x20] sm:$0x1]  ;;  %v6426_v24 = vld [vmem:[%s6362_s24 + $0x24] sm:$0xf] }
  0x1e   : > { %v4850_v46 = vcombine.low %v240_v42, %v250_v43  ;;  %v1992_v47 = vrot.slane %v1991_v37, 4  ;;  %v2002_v51 = vrot.slane %v2001_v44, 4  ;;  %v263_v52 = vrot.slane %v261_v41, 5  ;;  %v6120_v30 = vld [vmem:[%s8363_s1 + $0x10] sm:$0xff]   ;;  %v6438_v44 = vld [vmem:[%s6362_s24 + $0x2c] sm:$0x1] }
  0x1f   : > { %v267_v53 = vrot.slane %v265_v45, 4  ;;  %v271_v54 = vshll.u32 %v179_v38, 16  ;;  %v2687_v57 = vrot.slane %v6375_v14, 5  ;;  %v258_v58 = vor.u32 %v257_v49, %v254_v48  ;;  %v6433_v38 = vld [vmem:[%s6362_s24 + $0x28] sm:$0xf] }
  0x20   : > { %5527 = vmatprep.mubr.msk.bf16.mxu1 %vm668_vm3, %v4850_v46  ;;  %v1997_v56 = vsel %vm6386_vm2, %v1992_v47, %v1996_v32  ;;  %v2007_v60 = vsel %vm6386_vm2, %v2002_v51, %v2006_v36  ;;  %v2009_v63 = vshrl.u32 %v6396_v50, 16  ;;  %v2012_v4 = vshll.u32 %v6396_v50, 16  ;;  %v183_v49 = vld [vmem:[%s6362_s24 + $0x24] sm:$0xf] }
  0x21   : > { %v268_v61 = vor.u32 %v267_v53, %v263_v52  ;;  %v273_v62 = vrot.slane %v271_v54, 5  ;;  %v5052_v0 = vcombine.low %v1997_v56, %v2007_v60  ;;  %v259_v1 = vrot.slane %v258_v58, 4 }
  0x22   : > { %v2018_v5 = vshll.u32 %v6399_v55, 16  ;;  %v2011_v8 = vrot.slane %v2009_v63, 4  ;;  %v2022_v9 = vshrl.u32 %v6399_v55, 16  ;;  %v2028_v10 = vshll.u32 %v6406_v59, 16 }
  0x23   : > { %v269_v7 = vrot.slane %v268_v61, 4  ;;  %5663 = vmatprep.mubr.msk.bf16.mxu0 %vm668_vm3, %v5052_v0  ;;  %v264_v15 = vsel %vm6386_vm2, %v259_v1, %v263_v52  ;;  %v2014_v16 = vrot.slane %v2012_v4, 5  ;;  %v2691_v18 = vrot.slane %v6399_v55, 5  ;;  %v184_v61 = vld [vmem:[%s6362_s24 + $0x28] sm:$0xf] }
  0x24   : > { %v2020_v17 = vrot.slane %v2018_v5, 5  ;;  %v2024_v21 = vrot.slane %v2022_v9, 4  ;;  %v2030_v22 = vrot.slane %v2028_v10, 5  ;;  %v2694_v23 = vrot.slane %v6406_v59, 5  ;;  %v6460_v10 = vld [vmem:[%s6362_s24 + $0x30] sm:$0xf] }
  0x25   : > { %v274_v20 = vsel %vm6386_vm2, %v269_v7, %v273_v62  ;;  %v2015_v26 = vor.u32 %v2014_v16, %v2011_v8  ;;  %v276_v27 = vshrl.u32 %v180_v6, 16  ;;  %v279_v28 = vshll.u32 %v180_v6, 16  ;;  %v6453_v62 = vld [vmem:[%s8363_s1 + $0x30] sm:$0xff]   ;;  %v185_v8 = vld [vmem:[%s6362_s24 + $0x2c] sm:$0x1] }
  0x26   : > { %v4851_v25 = vcombine.low %v264_v15, %v274_v20  ;;  %v2025_v31 = vor.u32 %v2024_v21, %v2020_v17  ;;  %v285_v32 = vshll.u32 %v181_v12, 16  ;;  %v289_v33 = vshrl.u32 %v181_v12, 16 }
  0x27   : > { %v295_v34 = vshll.u32 %v182_v19, 16  ;;  %v2016_v35 = vrot.slane %v2015_v26, 4  ;;  %v278_v36 = vrot.slane %v276_v27, 4  ;;  %v281_v37 = vrot.slane %v279_v28, 5 }
  0x28   : > { %5528 = vmatmul.mubr.msk.bf16.vlgmr.msra.gmra.mrb[0].mxu1 %vm668_vm3, %v4851_v25  ;;  %v2033_v39 = vshrl.u32 %v6426_v24, 16  ;;  %v2026_v40 = vrot.slane %v2025_v31, 4  ;;  %v287_v41 = vrot.slane %v285_v32, 5  ;;  %v291_v42 = vrot.slane %v289_v33, 4  ;;  %v6466_v25 = vld [vmem:[%s6362_s24 + $0x34] sm:$0xf] }
  0x29   : > { %5560 = vmatpush3.bf16.msra.mxu1 %v6350_v2  ;;  %v297_v43 = vrot.slane %v295_v34, 5  ;;  %v2021_v45 = vsel %vm6386_vm2, %v2016_v35, %v2020_v17  ;;  %v282_v46 = vor.u32 %v281_v37, %v278_v36  ;;  %v2036_v48 = vshll.u32 %v6426_v24, 16  ;;  %v6474_v33 = vld [vmem:[%s6362_s24 + $0x38] sm:$0x1]  ;;  %v6478_v35 = vld [vmem:[%s6362_s24 + $0x30] sm:$0xf] }
  0x2a   : > { %v2035_v47 = vrot.slane %v2033_v39, 4  ;;  %5593 = vmatprep.subr.bf16.mxu1 %v6120_v30  ;;  %v2031_v51 = vsel %vm6386_vm2, %v2026_v40, %v2030_v22  ;;  %v292_v2 = vor.u32 %v291_v42, %v287_v41  ;;  %v2042_v52 = vshll.u32 %v6433_v38, 16 }
  0x2b   : > { %v2046_v53 = vshrl.u32 %v6433_v38, 16  ;;  %v5053_v54 = vcombine.low %v2021_v45, %v2031_v51  ;;  %v283_v56 = vrot.slane %v282_v46, 4  ;;  %v2038_v58 = vrot.slane %v2036_v48, 5  ;;  %v6484_v46 = vld [vmem:[%s6362_s24 + $0x34] sm:$0xf] }
  0x2c   : > { %v2052_v60 = vshll.u32 %v6438_v44, 16  ;;  %v293_v63 = vrot.slane %v292_v2, 4  ;;  %v2044_v0 = vrot.slane %v2042_v52, 5  ;;  %v300_v4 = vshrl.u32 %v183_v49, 16 }
  0x2d   : > { %v2048_v1 = vrot.slane %v2046_v53, 4  ;;  %5664 = vmatmul.mubr.msk.bf16.vlgmr.msra.gmra.mrb[0].mxu0 %vm668_vm3, %v5053_v54  ;;  %v288_v5 = vsel %vm6386_vm2, %v283_v56, %v287_v41  ;;  %v2039_v6 = vor.u32 %v2038_v58, %v2035_v47  ;;  %v303_v9 = vshll.u32 %v183_v49, 16  ;;  %v188_v54 = vld [vmem:[%s6362_s24 + $0x38] sm:$0x1] }
  0x2e   : > { %v2054_v7 = vrot.slane %v2052_v60, 5  ;;  %5696 = vmatpush3.bf16.msra.mxu0 %v6357_v3  ;;  %v298_v12 = vsel %vm6386_vm2, %v293_v63, %v297_v43  ;;  %v302_v16 = vrot.slane %v300_v4, 4  ;;  %v309_v17 = vshll.u32 %v184_v61, 16 }
  0x2f   : > { %v2049_v15 = vor.u32 %v2048_v1, %v2044_v0  ;;  %v4852_v19 = vcombine.low %v288_v5, %v298_v12  ;;  %v2040_v20 = vrot.slane %v2039_v6, 4  ;;  %v305_v21 = vrot.slane %v303_v9, 5  ;;  %5729 = vmatprep.subr.bf16.mxu0 %v6453_v62 }
  0x30   : > { %v313_v22 = vshrl.u32 %v184_v61, 16  ;;  %v311_v27 = vrot.slane %v309_v17, 5  ;;  %v319_v28 = vshll.u32 %v185_v8, 16  ;;  %v2057_v3 = vshrl.u32 %v6460_v10, 16 }
  0x31   : > { %v2050_v26 = vrot.slane %v2049_v15, 4  ;;  %5531 = vmatprep.mubr.msk.bf16.mxu1 %vm668_vm3, %v4852_v19  ;;  %v2045_v30 = vsel %vm6386_vm2, %v2040_v20, %v2044_v0  ;;  %v306_v31 = vor.u32 %v305_v21, %v302_v16  ;;  %v2060_v34 = vshll.u32 %v6460_v10, 16  ;;  %v6496_v0 = vld [vmem:[%s6362_s24 + $0x3c] sm:$0xf]  ;;  %v6507_v20 = vld [vmem:[%s6362_s24 + $0x44] sm:$0x1] }
  0x32   : > { %v315_v32 = vrot.slane %v313_v22, 4  ;;  %v321_v37 = vrot.slane %v319_v28, 5  ;;  %v2059_v39 = vrot.slane %v2057_v3, 4  ;;  %v2066_v40 = vshll.u32 %v6466_v25, 16 }
  0x33   : > { %v2055_v36 = vsel %vm6386_vm2, %v2050_v26, %v2054_v7  ;;  %v307_v42 = vrot.slane %v306_v31, 4  ;;  %v2062_v45 = vrot.slane %v2060_v34, 5  ;;  %v2070_v48 = vshrl.u32 %v6466_v25, 16  ;;  %v6502_v7 = vld [vmem:[%s6362_s24 + $0x40] sm:$0xf] }
  0x34   : > { %v5054_v41 = vcombine.low %v2045_v30, %v2055_v36  ;;  %v316_v43 = vor.u32 %v315_v32, %v311_v27  ;;  %v2068_v47 = vrot.slane %v2066_v40, 5  ;;  %v2076_v49 = vshll.u32 %v6474_v33, 16  ;;  %v6515_v34 = vld [vmem:[%s6362_s24 + $0x3c] sm:$0xf] }
  0x35   : > { %v324_v51 = vshrl.u32 %v6478_v35, 16  ;;  %v312_v2 = vsel %vm6386_vm2, %v307_v42, %v311_v27  ;;  %v2063_v53 = vor.u32 %v2062_v45, %v2059_v39  ;;  %v327_v56 = vshll.u32 %v6478_v35, 16 }
  0x36   : > { %5667 = vmatprep.mubr.msk.bf16.mxu0 %vm668_vm3, %v5054_v41  ;;  %v317_v52 = vrot.slane %v316_v43, 4  ;;  %v2072_v58 = vrot.slane %v2070_v48, 4  ;;  %v2078_v60 = vrot.slane %v2076_v49, 5  ;;  %v333_v63 = vshll.u32 %v6484_v46, 16  ;;  %v6521_v41 = vld [vmem:[%s6362_s24 + $0x40] sm:$0xf] }
  0x37   : > { %v326_v61 = vrot.slane %v324_v51, 4  ;;  %v2064_v4 = vrot.slane %v2063_v53, 4  ;;  %v329_v5 = vrot.slane %v327_v56, 5  ;;  %v337_v6 = vshrl.u32 %v6484_v46, 16  ;;  %v191_v51 = vld [vmem:[%s6362_s24 + $0x44] sm:$0x1] }
  0x38   : > { %v322_v1 = vsel %vm6386_vm2, %v317_v52, %v321_v37  ;;  %v2073_v9 = vor.u32 %v2072_v58, %v2068_v47  ;;  %v335_v12 = vrot.slane %v333_v63, 5  ;;  %v343_v15 = vshll.u32 %v188_v54, 16 }
  0x39   : > { %v4853_v8 = vcombine.low %v312_v2, %v322_v1  ;;  %v2069_v16 = vsel %vm6386_vm2, %v2064_v4, %v2068_v47  ;;  %v330_v17 = vor.u32 %v329_v5, %v326_v61  ;;  %v339_v19 = vrot.slane %v337_v6, 4  ;;  %v6537_v5 = vld [vmem:[%s6362_s24 + $0x4c] sm:$0xf] }
  0x3a   : > { %v2081_v21 = vshrl.u32 %v6496_v0, 16  ;;  %v2074_v22 = vrot.slane %v2073_v9, 4  ;;  %v345_v26 = vrot.slane %v343_v15, 5  ;;  %v2084_v27 = vshll.u32 %v6496_v0, 16 }
  0x3b   : > { %5532 = vmatmul.mubr.msk.bf16.gmra.mrb[4].mxu1 %vm668_vm3, %v4853_v8  ;;  %v2090_v28 = vshll.u32 %v6502_v7, 16  ;;  %v331_v3 = vrot.slane %v330_v17, 4  ;;  %v340_v30 = vor.u32 %v339_v19, %v335_v12  ;;  %v2094_v32 = vshrl.u32 %v6502_v7, 16  ;;  %v6543_v17 = vld [vmem:[%s6362_s24 + $0x50] sm:$0x1] }
  0x3c   : > { %v2083_v31 = vrot.slane %v2081_v21, 4  ;;  %v2079_v36 = vsel %vm6386_vm2, %v2074_v22, %v2078_v60  ;;  %v2086_v37 = vrot.slane %v2084_v27, 5  ;;  %v2100_v40 = vshll.u32 %v6507_v20, 16  ;;  %v6534_v60 = vld [vmem:[%s6362_s24 + $0x48] sm:$0xf] }
  0x3d   : > { %v2092_v39 = vrot.slane %v2090_v28, 5  ;;  %v5055_v42 = vcombine.low %v2069_v16, %v2079_v36  ;;  %v336_v43 = vsel %vm6386_vm2, %v331_v3, %v335_v12  ;;  %v341_v45 = vrot.slane %v340_v30, 4  ;;  %v6551_v3 = vld [vmem:[%s6362_s24 + $0x48] sm:$0xf] }
  0x3e   : > { %v2096_v47 = vrot.slane %v2094_v32, 4  ;;  %v2087_v48 = vor.u32 %v2086_v37, %v2083_v31  ;;  %v2102_v49 = vrot.slane %v2100_v40, 5  ;;  %v348_v2 = vshrl.u32 %v6515_v34, 16  ;;  %v6554_v37 = vld [vmem:[%s6362_s24 + $0x4c] sm:$0xf] }
  0x3f   : > { %v351_v52 = vshll.u32 %v6515_v34, 16  ;;  %5668 = vmatmul.mubr.msk.bf16.gmra.mrb[4].mxu0 %vm668_vm3, %v5055_v42  ;;  %v346_v53 = vsel %vm6386_vm2, %v341_v45, %v345_v26  ;;  %v357_v56 = vshll.u32 %v6521_v41, 16  ;;  %v361_v58 = vshrl.u32 %v6521_v41, 16 }
  0x40   : > { %v2097_v54 = vor.u32 %v2096_v47, %v2092_v39  ;;  %v4854_v61 = vcombine.low %v336_v43, %v346_v53  ;;  %v2088_v63 = vrot.slane %v2087_v48, 4  ;;  %v350_v1 = vrot.slane %v348_v2, 4  ;;  %v194_v48 = vld [vmem:[%s6362_s24 + $0x50] sm:$0x1] }
  0x41   : > { %v353_v4 = vrot.slane %v351_v52, 5  ;;  %v359_v8 = vrot.slane %v357_v56, 5  ;;  %v363_v9 = vrot.slane %v361_v58, 4  ;;  %v367_v12 = vshll.u32 %v191_v51, 16  ;;  %v6568_v56 = vld [vmem:[%s6362_s24 + $0x54] sm:$0xf] }
  0x42   : > { %v2098_v6 = vrot.slane %v2097_v54, 4  ;;  %5535 = vmatprep.mubr.msk.bf16.mxu1 %vm668_vm3, %v4854_v61  ;;  %v2093_v15 = vsel %vm6386_vm2, %v2088_v63, %v2092_v39  ;;  %v2105_v19 = vshrl.u32 %v6534_v60, 16  ;;  %v2108_v21 = vshll.u32 %v6534_v60, 16 }
  0x43   : > { %v354_v16 = vor.u32 %v353_v4, %v350_v1  ;;  %v364_v26 = vor.u32 %v363_v9, %v359_v8  ;;  %v369_v27 = vrot.slane %v367_v12, 5  ;;  %v2114_v28 = vshll.u32 %v6537_v5, 16  ;;  %v6571_v4 = vld [vmem:[%s6362_s24 + $0x58] sm:$0xf] }
  0x44   : > { %v2103_v22 = vsel %vm6386_vm2, %v2098_v6, %v2102_v49  ;;  %v2107_v32 = vrot.slane %v2105_v19, 4  ;;  %v2110_v36 = vrot.slane %v2108_v21, 5  ;;  %v2118_v42 = vshrl.u32 %v6537_v5, 16  ;;  %v6578_v19 = vld [vmem:[%s6362_s24 + $0x5c] sm:$0x1] }
  0x45   : > { %v5056_v30 = vcombine.low %v2093_v15, %v2103_v22  ;;  %v355_v31 = vrot.slane %v354_v16, 4  ;;  %v365_v39 = vrot.slane %v364_v26, 4  ;;  %v2116_v40 = vrot.slane %v2114_v28, 5 }
  0x46   : > { %v2124_v43 = vshll.u32 %v6543_v17, 16  ;;  %v2111_v47 = vor.u32 %v2110_v36, %v2107_v32  ;;  %v372_v49 = vshrl.u32 %v6551_v3, 16  ;;  %v375_v51 = vshll.u32 %v6551_v3, 16 }
  0x47   : > { %5671 = vmatprep.mubr.msk.bf16.mxu0 %vm668_vm3, %v5056_v30  ;;  %v360_v45 = vsel %vm6386_vm2, %v355_v31, %v359_v8  ;;  %v370_v2 = vsel %vm6386_vm2, %v365_v39, %v369_v27  ;;  %v2120_v52 = vrot.slane %v2118_v42, 4  ;;  %v381_v54 = vshll.u32 %v6554_v37, 16 }
  0x48   : > { %v2126_v53 = vrot.slane %v2124_v43, 5  ;;  %v4855_v58 = vcombine.low %v360_v45, %v370_v2  ;;  %v2112_v61 = vrot.slane %v2111_v47, 4  ;;  %v374_v63 = vrot.slane %v372_v49, 4 }
  0x49   : > { %v377_v1 = vrot.slane %v375_v51, 5  ;;  %v2121_v6 = vor.u32 %v2120_v52, %v2116_v40  ;;  %v383_v8 = vrot.slane %v381_v54, 5  ;;  %v385_v9 = vshrl.u32 %v6554_v37, 16  ;;  %v197_v54 = vld [vmem:[%s6362_s24 + $0x5c] sm:$0x1] }
  0x4a   : > { %v391_v12 = vshll.u32 %v194_v48, 16  ;;  %5536 = vmatmul.mubr.msk.bf16.gmra.mrb[8].mxu1 %vm668_vm3, %v4855_v58  ;;  %v2117_v15 = vsel %vm6386_vm2, %v2112_v61, %v2116_v40  ;;  %v2129_v21 = vshrl.u32 %v6568_v56, 16  ;;  %v2132_v22 = vshll.u32 %v6568_v56, 16  ;;  %v6585_v40 = vld [vmem:[%s6362_s24 + $0x54] sm:$0xf] }
  0x4b   : > { %v378_v16 = vor.u32 %v377_v1, %v374_v63  ;;  %v2122_v26 = vrot.slane %v2121_v6, 4  ;;  %v387_v27 = vrot.slane %v385_v9, 4  ;;  %v2138_v30 = vshll.u32 %v6571_v4, 16  ;;  %v6591_v48 = vld [vmem:[%s6362_s24 + $0x58] sm:$0xf] }
  0x4c   : > { %v393_v28 = vrot.slane %v391_v12, 5  ;;  %v2131_v32 = vrot.slane %v2129_v21, 4  ;;  %v2134_v36 = vrot.slane %v2132_v22, 5  ;;  %v2142_v39 = vshrl.u32 %v6571_v4, 16 }
  0x4d   : > { %v379_v31 = vrot.slane %v378_v16, 4  ;;  %v2127_v42 = vsel %vm6386_vm2, %v2122_v26, %v2126_v53  ;;  %v388_v43 = vor.u32 %v387_v27, %v383_v8  ;;  %v2140_v45 = vrot.slane %v2138_v30, 5  ;;  %v6607_v26 = vld [vmem:[%s6362_s24 + $0x64] sm:$0xf] }
  0x4e   : > { %v2148_v47 = vshll.u32 %v6578_v19, 16  ;;  %v5057_v49 = vcombine.low %v2117_v15, %v2127_v42  ;;  %v2135_v2 = vor.u32 %v2134_v36, %v2131_v32  ;;  %v2144_v52 = vrot.slane %v2142_v39, 4 }
  0x4f   : > { %v384_v51 = vsel %vm6386_vm2, %v379_v31, %v383_v8  ;;  %v389_v58 = vrot.slane %v388_v43, 4  ;;  %v396_v63 = vshrl.u32 %v6585_v40, 16  ;;  %v399_v53 = vshll.u32 %v6585_v40, 16  ;;  %v6602_v8 = vld [vmem:[%s6362_s24 + $0x60] sm:$0xf] }
  0x50   : > { %v2150_v61 = vrot.slane %v2148_v47, 5  ;;  %5672 = vmatmul.mubr.msk.bf16.gmra.mrb[8].mxu0 %vm668_vm3, %v5057_v49  ;;  %v2136_v1 = vrot.slane %v2135_v2, 4  ;;  %v2145_v6 = vor.u32 %v2144_v52, %v2140_v45  ;;  %v405_v9 = vshll.u32 %v6591_v48, 16  ;;  %v6612_v43 = vld [vmem:[%s6362_s24 + $0x68] sm:$0x1] }
  0x51   : > { %v409_v12 = vshrl.u32 %v6591_v48, 16  ;;  %v394_v15 = vsel %vm6386_vm2, %v389_v58, %v393_v28  ;;  %v398_v16 = vrot.slane %v396_v63, 4  ;;  %v401_v21 = vrot.slane %v399_v53, 5  ;;  %v6622_v2 = vld [vmem:[%s6362_s24 + $0x60] sm:$0xf] }
  0x52   : > { %v415_v22 = vshll.u32 %v197_v54, 16  ;;  %v4856_v27 = vcombine.low %v384_v51, %v394_v15  ;;  %v2141_v30 = vsel %vm6386_vm2, %v2136_v1, %v2140_v45  ;;  %v2146_v31 = vrot.slane %v2145_v6, 4  ;;  %v6625_v53 = vld [vmem:[%s6362_s24 + $0x64] sm:$0xf] }
  0x53   : > { %v407_v32 = vrot.slane %v405_v9, 5  ;;  %v402_v36 = vor.u32 %v401_v21, %v398_v16  ;;  %v411_v39 = vrot.slane %v409_v12, 4  ;;  %v2153_v28 = vshrl.u32 %v6602_v8, 16 }
  0x54   : > { %v417_v42 = vrot.slane %v415_v22, 5  ;;  %5539 = vmatprep.mubr.msk.bf16.mxu1 %vm668_vm3, %v4856_v27  ;;  %v2151_v47 = vsel %vm6386_vm2, %v2146_v31, %v2150_v61  ;;  %v2156_v49 = vshll.u32 %v6602_v8, 16  ;;  %v2162_v51 = vshll.u32 %v6607_v26, 16  ;;  %v200_v31 = vld [vmem:[%s6362_s24 + $0x68] sm:$0x1] }
  0x55   : > { %v2166_v45 = vshrl.u32 %v6607_v26, 16  ;;  %v5058_v52 = vcombine.low %v2141_v30, %v2151_v47  ;;  %v403_v54 = vrot.slane %v402_v36, 4  ;;  %v412_v58 = vor.u32 %v411_v39, %v407_v32  ;;  %v6636_v39 = vld [vmem:[%s6362_s24 + $0x6c] sm:$0xf] }
  0x56   : > { %v2155_v63 = vrot.slane %v2153_v28, 4  ;;  %v2158_v1 = vrot.slane %v2156_v49, 5  ;;  %v2164_v6 = vrot.slane %v2162_v51, 5  ;;  %v2172_v61 = vshll.u32 %v6612_v43, 16 }
  0x57   : > { %v2168_v9 = vrot.slane %v2166_v45, 4  ;;  %5675 = vmatprep.mubr.msk.bf16.mxu0 %vm668_vm3, %v5058_v52  ;;  %v408_v12 = vsel %vm6386_vm2, %v403_v54, %v407_v32  ;;  %v413_v15 = vrot.slane %v412_v58, 4  ;;  %v420_v16 = vshrl.u32 %v6622_v2, 16 }
  0x58   : > { %v423_v21 = vshll.u32 %v6622_v2, 16  ;;  %v2159_v22 = vor.u32 %v2158_v1, %v2155_v63  ;;  %v2174_v30 = vrot.slane %v2172_v61, 5  ;;  %v429_v36 = vshll.u32 %v6625_v53, 16 }
  0x59   : > { %v2169_v27 = vor.u32 %v2168_v9, %v2164_v6  ;;  %v418_v28 = vsel %vm6386_vm2, %v413_v15, %v417_v42  ;;  %v422_v47 = vrot.slane %v420_v16, 4  ;;  %v433_v32 = vshrl.u32 %v6625_v53, 16  ;;  %v6655_v16 = vld [vmem:[%s6362_s24 + $0x70] sm:$0xf] }
  0x5a   : > { %v425_v49 = vrot.slane %v423_v21, 5  ;;  %v4857_v51 = vcombine.low %v408_v12, %v418_v28  ;;  %v2160_v45 = vrot.slane %v2159_v22, 4  ;;  %v431_v54 = vrot.slane %v429_v36, 5 }
  0x5b   : > { %v2170_v52 = vrot.slane %v2169_v27, 4  ;;  %v435_v63 = vrot.slane %v433_v32, 4  ;;  %v439_v1 = vshll.u32 %v200_v31, 16  ;;  %v5085_v42 = vrot.slane %v6369_v11, 9  ;;  %v203_v11 = vld [vmem:[%s6362_s24 + $0x74] sm:$0x1] }
  0x5c   : > { %v426_v58 = vor.u32 %v425_v49, %v422_v47  ;;  %5540 = vmatmul.mubr.msk.bf16.gmra.mrb[12].mxu1 %vm668_vm3, %v4857_v51  ;;  %v2165_v61 = vsel %vm6386_vm2, %v2160_v45, %v2164_v6  ;;  %v2684_v15 = vrot.slane %v6372_v13, 5  ;;  %v444_v21 = vshrl.u32 %v6636_v39, 16 }
  0x5d   : > { %v2175_v12 = vsel %vm6386_vm2, %v2170_v52, %v2174_v30  ;;  %v436_v31 = vor.u32 %v435_v63, %v431_v54  ;;  %v441_v36 = vrot.slane %v439_v1, 5  ;;  %v447_v30 = vshll.u32 %v6636_v39, 16  ;;  %v6673_v1 = vld [vmem:[%s6362_s24 + $0x78] sm:$0xf] }
  0x5e   : > { %v5059_v22 = vcombine.low %v2165_v61, %v2175_v12  ;;  %v427_v27 = vrot.slane %v426_v58, 4  ;;  %v2685_v28 = vsel %vm6643_vm6, %v5085_v42, %v2684_v15  ;;  %v2686_v47 = vrot.slane %v2684_v15, 4  ;;  %v6678_v15 = vld [vmem:[%s6362_s24 + $0x7c] sm:$0xf] }
  0x5f   : > { %v446_v6 = vrot.slane %v444_v21, 4  ;;  %v437_v49 = vrot.slane %v436_v31, 4  ;;  %v453_v32 = vshll.u32 %v6655_v16, 16  ;;  %v457_v51 = vshrl.u32 %v6655_v16, 16  ;;  %v206_v21 = vld [vmem:[%s6362_s24 + $0x80] sm:$0x1] }
  0x60   : > { %5676 = vmatmul.mubr.msk.bf16.gmra.mrb[12].mxu0 %vm668_vm3, %v5059_v22  ;;  %v432_v13 = vsel %vm6386_vm2, %v427_v27, %v431_v54  ;;  %v2688_v45 = vsel %vm6643_vm6, %v2686_v47, %v2687_v57  ;;  %v449_v52 = vrot.slane %v447_v30, 5  ;;  %v463_v58 = vshll.u32 %v203_v11, 16 }
  0x61   : > { %v5086_v63 = vrot.slane %v6396_v50, 9  ;;  %v442_v42 = vsel %vm6386_vm2, %v437_v49, %v441_v36  ;;  %v5103_v54 = vcombine.low %v2685_v28, %v2688_v45  ;;  %v455_v61 = vrot.slane %v453_v32, 5 }
  0x62   : > { %v459_v12 = vrot.slane %v457_v51, 4  ;;  %v4858_v14 = vcombine.low %v432_v13, %v442_v42  ;;  %v450_v22 = vor.u32 %v449_v52, %v446_v6  ;;  %v465_v27 = vrot.slane %v463_v58, 5  ;;  %v6694_v13 = vld [vmem:[%s6362_s24 + $0x84] sm:$0xf]  ;;  %v6703_v51 = vld [vmem:[%s8363_s1 + $0x38] sm:$0xff]  }
  0x63   : > { %v2692_v50 = vsel %vm6643_vm6, %v5086_v63, %v2691_v18  ;;  %5697 = vmatprep.mubr.msk.bf16.mxu0 %vm668_vm3, %v5103_v54  ;;  %v2693_v31 = vrot.slane %v2691_v18, 4  ;;  %v468_v36 = vshrl.u32 %v6673_v1, 16  ;;  %v471_v11 = vshll.u32 %v6673_v1, 16  ;;  %v6708_v42 = vld [vmem:[%s6362_s24 + $0x88] sm:$0xf] }
  0x64   : > { %v460_v57 = vor.u32 %v459_v12, %v455_v61  ;;  %5543 = vmatprep.mubr.msk.bf16.mxu1 %vm668_vm3, %v4858_v14  ;;  %v451_v28 = vrot.slane %v450_v22, 4  ;;  %v477_v47 = vshll.u32 %v6678_v15, 16  ;;  %v481_v6 = vshrl.u32 %v6678_v15, 16 }
  0x65   : > { %v487_v30 = vshll.u32 %v206_v21, 16  ;;  %v2695_v55 = vsel %vm6643_vm6, %v2693_v31, %v2694_v23  ;;  %v470_v18 = vrot.slane %v468_v36, 4  ;;  %v473_v32 = vrot.slane %v471_v11, 5 }
  0x66   : > { %v461_v49 = vrot.slane %v460_v57, 4  ;;  %v456_v45 = vsel %vm6386_vm2, %v451_v28, %v455_v61  ;;  %v5104_v52 = vcombine.low %v2692_v50, %v2695_v55  ;;  %v479_v58 = vrot.slane %v477_v47, 5  ;;  %v209_v57 = vld [vmem:[%s6362_s24 + $0x8c] sm:$0x1] }
  0x67   : > { %v483_v63 = vrot.slane %v481_v6, 4  ;;  %v474_v23 = vor.u32 %v473_v32, %v470_v18  ;;  %v489_v54 = vrot.slane %v487_v30, 5  ;;  %v5087_v12 = vrot.slane %v6426_v24, 9  ;;  %v6733_v32 = vld [vmem:[%s6362_s24 + $0x90] sm:$0xf] }
  0x68   : > { %v466_v59 = vsel %vm6386_vm2, %v461_v49, %v465_v27  ;;  %5698 = vmatmul.mubr.msk.bf16.vlgmr.msra.gmra.mrb[0].mxu0 %vm668_vm3, %v5104_v52  ;;  %v2698_v22 = vrot.slane %v6433_v38, 5  ;;  %v2701_v61 = vrot.slane %v6438_v44, 5  ;;  %v492_v31 = vshrl.u32 %v6694_v13, 16 }
  0x69   : > { %v4859_v21 = vcombine.low %v456_v45, %v466_v59  ;;  %v484_v14 = vor.u32 %v483_v63, %v479_v58  ;;  %5730 = vmatpush3.bf16.msra.mxu0 %v6453_v62  ;;  %v475_v50 = vrot.slane %v474_v23, 4  ;;  %v495_v27 = vshll.u32 %v6694_v13, 16  ;;  %v6736_v45 = vld [vmem:[%s6362_s24 + $0x94] sm:$0xf] }
  0x6a   : > { %v501_v36 = vshll.u32 %v6708_v42, 16  ;;  %v2699_v38 = vsel %vm6643_vm6, %v5087_v12, %v2698_v22  ;;  %v2700_v11 = vrot.slane %v2698_v22, 4  ;;  %v505_v44 = vshrl.u32 %v6708_v42, 16  ;;  %5763 = vmatprep.subr.bf16.mxu0 %v6703_v51  ;;  %v6744_v22 = vld [vmem:[%s6362_s24 + $0x98] sm:$0x1] }
  0x6b   : > { %5544 = vmatmul.mubr.msk.bf16.gmra.mrb[16].mxu1 %vm668_vm3, %v4859_v21  ;;  %v485_v24 = vrot.slane %v484_v14, 4  ;;  %v480_v62 = vsel %vm6386_vm2, %v475_v50, %v479_v58  ;;  %v494_v28 = vrot.slane %v492_v31, 4  ;;  %v497_v47 = vrot.slane %v495_v27, 5 }
  0x6c   : > { %v503_v6 = vrot.slane %v501_v36, 5  ;;  %v2702_v49 = vsel %vm6643_vm6, %v2700_v11, %v2701_v61  ;;  %v507_v55 = vrot.slane %v505_v44, 4  ;;  %v511_v18 = vshll.u32 %v209_v57, 16  ;;  %v6755_v11 = vld [vmem:[%s6362_s24 + $0x9c] sm:$0xf] }
  0x6d   : > { %v490_v30 = vsel %vm6386_vm2, %v485_v24, %v489_v54  ;;  %v5105_v63 = vcombine.low %v2699_v38, %v2702_v49  ;;  %v498_v59 = vor.u32 %v497_v47, %v494_v28  ;;  %v5088_v58 = vrot.slane %v6460_v10, 9 }
  0x6e   : > { %v4860_v52 = vcombine.low %v480_v62, %v490_v30  ;;  %v508_v23 = vor.u32 %v507_v55, %v503_v6  ;;  %v513_v12 = vrot.slane %v511_v18, 5  ;;  %v2705_v21 = vrot.slane %v6466_v25, 5  ;;  %v6763_v30 = vld [vmem:[%s6362_s24 + $0xa0] sm:$0xf] }
  0x6f   : > { %v2708_v54 = vrot.slane %v6474_v33, 5  ;;  %5701 = vmatprep.mubr.msk.bf16.mxu0 %vm668_vm3, %v5105_v63  ;;  %v499_v14 = vrot.slane %v498_v59, 4  ;;  %v516_v61 = vshrl.u32 %v6733_v32, 16  ;;  %v519_v50 = vshll.u32 %v6733_v32, 16 }
  0x70   : > { %5547 = vmatprep.mubr.msk.bf16.mxu1 %vm668_vm3, %v4860_v52  ;;  %v525_v10 = vshll.u32 %v6736_v45, 16  ;;  %v509_v57 = vrot.slane %v508_v23, 4  ;;  %v2706_v25 = vsel %vm6643_vm6, %v5088_v58, %v2705_v21  ;;  %v2707_v33 = vrot.slane %v2705_v21, 4 }
  0x71   : > { %v529_v31 = vshrl.u32 %v6736_v45, 16  ;;  %v504_v27 = vsel %vm6386_vm2, %v499_v14, %v503_v6  ;;  %v518_v36 = vrot.slane %v516_v61, 4  ;;  %v521_v24 = vrot.slane %v519_v50, 5 }
  0x72   : > { %v527_v38 = vrot.slane %v525_v10, 5  ;;  %v514_v44 = vsel %vm6386_vm2, %v509_v57, %v513_v12  ;;  %v2709_v62 = vsel %vm6643_vm6, %v2707_v33, %v2708_v54  ;;  %v535_v47 = vshll.u32 %v6744_v22, 16  ;;  %v6771_v12 = vld [vmem:[%s6362_s24 + $0xa4] sm:$0x1] }
  0x73   : > { %v531_v28 = vrot.slane %v529_v31, 4  ;;  %v4861_v49 = vcombine.low %v504_v27, %v514_v44  ;;  %v5106_v55 = vcombine.low %v2706_v25, %v2709_v62  ;;  %v522_v6 = vor.u32 %v521_v24, %v518_v36  ;;  %v6787_v24 = vld [vmem:[%s6362_s24 + $0xa8] sm:$0xf]  ;;  %v6790_v44 = vld [vmem:[%s6362_s24 + $0xac] sm:$0xf] }
  0x74   : > { %v5089_v18 = vrot.slane %v6496_v0, 9  ;;  %v537_v63 = vrot.slane %v535_v47, 5  ;;  %v2712_v59 = vrot.slane %v6502_v7, 5  ;;  %v2715_v58 = vrot.slane %v6507_v20, 5 }
  0x75   : > { %v532_v52 = vor.u32 %v531_v28, %v527_v38  ;;  %5548 = vmatmul.mubr.msk.bf16.gmra.mrb[20].mxu1 %vm668_vm3, %v4861_v49  ;;  %5702 = vmatmul.mubr.msk.bf16.gmra.mrb[4].mxu0 %vm668_vm3, %v5106_v55  ;;  %v523_v23 = vrot.slane %v522_v6, 4  ;;  %v540_v21 = vshrl.u32 %v6755_v11, 16  ;;  %v543_v54 = vshll.u32 %v6755_v11, 16 }
  0x76   : > { %v549_v0 = vshll.u32 %v6763_v30, 16  ;;  %v2713_v7 = vsel %vm6643_vm6, %v5089_v18, %v2712_v59  ;;  %v2714_v20 = vrot.slane %v2712_v59, 4  ;;  %v553_v61 = vshrl.u32 %v6763_v30, 16 }
  0x77   : > { %v533_v14 = vrot.slane %v532_v52, 4  ;;  %v528_v50 = vsel %vm6386_vm2, %v523_v23, %v527_v38  ;;  %v542_v10 = vrot.slane %v540_v21, 4  ;;  %v545_v57 = vrot.slane %v543_v54, 5 }
  0x78   : > { %v551_v25 = vrot.slane %v549_v0, 5  ;;  %v2716_v31 = vsel %vm6643_vm6, %v2714_v20, %v2715_v58  ;;  %v555_v27 = vrot.slane %v553_v61, 4  ;;  %v559_v36 = vshll.u32 %v6771_v12, 16 }
  0x79   : > { %v538_v33 = vsel %vm6386_vm2, %v533_v14, %v537_v63  ;;  %v5107_v28 = vcombine.low %v2713_v7, %v2716_v31  ;;  %v546_v38 = vor.u32 %v545_v57, %v542_v10  ;;  %v5090_v47 = vrot.slane %v6534_v60, 9  ;;  %v6798_v63 = vld [vmem:[%s6362_s24 + $0xb0] sm:$0x1]  ;;  %v6814_v57 = vld [vmem:[%s6362_s24 + $0xb4] sm:$0xf] }
  0x7a   : > { %v4862_v62 = vcombine.low %v528_v50, %v538_v33  ;;  %v556_v49 = vor.u32 %v555_v27, %v551_v25  ;;  %v561_v55 = vrot.slane %v559_v36, 5  ;;  %v2719_v6 = vrot.slane %v6537_v5, 5  ;;  %8394 = vst [vmem:[#allocation2_spill] sm:$0xff] %v6798_v63  ;;  %8395 = vst [vmem:[#allocation3_spill] sm:$0xff] %v6814_v57  ;;  %v6817_v33 = vld [vmem:[%s6362_s24 + $0xb8] sm:$0xf] }
  0x7b   : > { %v2722_v18 = vrot.slane %v6543_v17, 5  ;;  %5705 = vmatprep.mubr.msk.bf16.mxu0 %vm668_vm3, %v5107_v28  ;;  %v547_v52 = vrot.slane %v546_v38, 4  ;;  %v564_v59 = vshrl.u32 %v6787_v24, 16  ;;  %v567_v58 = vshll.u32 %v6787_v24, 16  ;;  %8396 = vst [vmem:[#allocation4_spill] sm:$0xff] %v6817_v33 }
  0x7c   : > { %5551 = vmatprep.mubr.msk.bf16.mxu1 %vm668_vm3, %v4862_v62  ;;  %v573_v60 = vshll.u32 %v6790_v44, 16  ;;  %v557_v23 = vrot.slane %v556_v49, 4  ;;  %v2720_v5 = vsel %vm6643_vm6, %v5090_v47, %v2719_v6  ;;  %v2721_v17 = vrot.slane %v2719_v6, 4 }
  0x7d   : > { %v577_v21 = vshrl.u32 %v6790_v44, 16  ;;  %v552_v54 = vsel %vm6386_vm2, %v547_v52, %v551_v25  ;;  %v566_v0 = vrot.slane %v564_v59, 4  ;;  %v569_v14 = vrot.slane %v567_v58, 5 }
  0x7e   : > { %v575_v7 = vrot.slane %v573_v60, 5  ;;  %v562_v20 = vsel %vm6386_vm2, %v557_v23, %v561_v55  ;;  %v2723_v61 = vsel %vm6643_vm6, %v2721_v17, %v2722_v18  ;;  %v583_v10 = vshll.u32 %v6798_v63, 16  ;;  %v6825_v55 = vld [vmem:[%s6362_s24 + $0xbc] sm:$0x1]  ;;  %v4991_v17 = vld [vmem:[%s6362_s24 + $0x6c] sm:$0xf] }
  0x7f   : > { %v579_v50 = vrot.slane %v577_v21, 4  ;;  %v4863_v31 = vcombine.low %v552_v54, %v562_v20  ;;  %v5108_v27 = vcombine.low %v2720_v5, %v2723_v61  ;;  %v570_v25 = vor.u32 %v569_v14, %v566_v0  ;;  %8397 = vst [vmem:[#allocation5_spill] sm:$0xff] %v6825_v55  ;;  %v4992_v20 = vld [vmem:[%s6362_s24 + $0x70] sm:$0xf]  ;;  %v4993_v61 = vld [vmem:[%s6362_s24 + $0x74] sm:$0x1] }
  0x80   : > { %v5091_v36 = vrot.slane %v6568_v56, 9  ;;  %v585_v28 = vrot.slane %v583_v10, 5  ;;  %v2726_v38 = vrot.slane %v6571_v4, 5  ;;  %v2729_v47 = vrot.slane %v6578_v19, 5 }
  0x81   : > { %v580_v62 = vor.u32 %v579_v50, %v575_v7  ;;  %5552 = vmatmul.mubr.msk.bf16.gmra.mrb[24].mxu1 %vm668_vm3, %v4863_v31  ;;  %5706 = vmatmul.mubr.msk.bf16.gmra.mrb[8].mxu0 %vm668_vm3, %v5108_v27  ;;  %v571_v49 = vrot.slane %v570_v25, 4  ;;  %v588_v6 = vshrl.u32 %v6814_v57, 16  ;;  %v591_v18 = vshll.u32 %v6814_v57, 16 }
  0x82   : > { %v597_v56 = vshll.u32 %v6817_v33, 16  ;;  %v2727_v4 = vsel %vm6643_vm6, %v5091_v36, %v2726_v38  ;;  %v2728_v19 = vrot.slane %v2726_v38, 4  ;;  %v601_v59 = vshrl.u32 %v6817_v33, 16 }
  0x83   : > { %v581_v52 = vrot.slane %v580_v62, 4  ;;  %v576_v58 = vsel %vm6386_vm2, %v571_v49, %v575_v7  ;;  %v590_v60 = vrot.slane %v588_v6, 4  ;;  %v593_v23 = vrot.slane %v591_v18, 5 }
  0x84   : > { %v599_v5 = vrot.slane %v597_v56, 5  ;;  %v2730_v54 = vsel %vm6643_vm6, %v2728_v19, %v2729_v47  ;;  %v603_v0 = vrot.slane %v601_v59, 4  ;;  %v607_v14 = vshll.u32 %v6825_v55, 16  ;;  %v6859_v19 = vld [vmem:[%s6362_s24] sm:$0xf] }
  0x85   : > { %v586_v21 = vsel %vm6386_vm2, %v581_v52, %v585_v28  ;;  %v5109_v10 = vcombine.low %v2727_v4, %v2730_v54  ;;  %v594_v31 = vor.u32 %v593_v23, %v590_v60  ;;  %v5092_v7 = vrot.slane %v6602_v8, 9  ;;  %v6862_v59 = vld [vmem:[%s6362_s24 + $0x4] sm:$0xf]  ;;  %v4994_v60 = vld [vmem:[%s6362_s24 + $0x78] sm:$0xf] }
  0x86   : > { %v4864_v50 = vcombine.low %v576_v58, %v586_v21  ;;  %v604_v27 = vor.u32 %v603_v0, %v599_v5  ;;  %v609_v25 = vrot.slane %v607_v14, 5  ;;  %v2733_v36 = vrot.slane %v6607_v26, 5  ;;  %v4995_v23 = vld [vmem:[%s6362_s24 + $0x7c] sm:$0xf]  ;;  %v4997_v0 = vld [vmem:[%s6362_s24 + $0x84] sm:$0xf] }
  0x87   : > { %v2736_v62 = vrot.slane %v6612_v43, 5  ;;  %5709 = vmatprep.mubr.msk.bf16.mxu0 %vm668_vm3, %v5109_v10  ;;  %v595_v28 = vrot.slane %v594_v31, 4  ;;  %v5093_v38 = vrot.slane %v4991_v17, 9  ;;  %v2740_v47 = vrot.slane %v4992_v20, 5  ;;  %v4998_v14 = vld [vmem:[%s6362_s24 + $0x88] sm:$0xf] }
  0x88   : > { %5555 = vmatprep.mubr.msk.bf16.mxu1 %vm668_vm3, %v4864_v50  ;;  %v2743_v49 = vrot.slane %v4993_v61, 5  ;;  %v605_v8 = vrot.slane %v604_v27, 4  ;;  %v2734_v6 = vsel %vm6643_vm6, %v5092_v7, %v2733_v36  ;;  %v2735_v26 = vrot.slane %v2733_v36, 4  ;;  %v4999_v61 = vld [vmem:[%s6362_s24 + $0x8c] sm:$0x1] }
  0x89   : > { %v600_v43 = vsel %vm6386_vm2, %v595_v28, %v599_v5  ;;  %v2741_v18 = vsel %vm6643_vm6, %v5093_v38, %v2740_v47  ;;  %v2742_v56 = vrot.slane %v2740_v47, 4  ;;  %v4883_v58 = vcombine.low %v6859_v19, %v6862_v59  ;;  %v4996_v5 = vld [vmem:[%s6362_s24 + $0x80] sm:$0x1]  ;;  %v5001_v36 = vld [vmem:[%s6362_s24 + $0x94] sm:$0xf] }
  0x8a   : > { %v610_v52 = vsel %vm6386_vm2, %v605_v8, %v609_v25  ;;  %v2737_v4 = vsel %vm6643_vm6, %v2735_v26, %v2736_v62  ;;  %v5094_v50 = vrot.slane %v4994_v60, 9  ;;  %v2747_v10 = vrot.slane %v4995_v23, 5  ;;  %v5000_v25 = vld [vmem:[%s6362_s24 + $0x90] sm:$0xf]  ;;  %v5002_v47 = vld [vmem:[%s6362_s24 + $0x98] sm:$0x1] }
  0x8b   : > { %v4865_v17 = vcombine.low %v600_v43, %v610_v52  ;;  %v5110_v21 = vcombine.low %v2734_v6, %v2737_v4  ;;  %v2744_v54 = vsel %vm6643_vm6, %v2742_v56, %v2743_v49  ;;  %v2750_v31 = vrot.slane %v4996_v5, 5  ;;  %v5004_v49 = vld [vmem:[%s6362_s24 + $0xa0] sm:$0xf]  ;;  %v6885_v8 = vld [vmem:[%s6362_s24 + $0xc] sm:$0xf] }
  0x8c   : > { %v5111_v20 = vcombine.low %v2741_v18, %v2744_v54  ;;  %v5095_v7 = vrot.slane %v4997_v0, 9  ;;  %v2754_v27 = vrot.slane %v4998_v14, 5  ;;  %v2748_v62 = vsel %vm6643_vm6, %v5094_v50, %v2747_v10  ;;  %v6888_v6 = vld [vmem:[%s6362_s24 + $0x10] sm:$0xf]  ;;  %v5003_v56 = vld [vmem:[%s6362_s24 + $0x9c] sm:$0xf] }
  0x8d   : > { %5556 = vmatmul.mubr.msk.bf16.gmra.mrb[28].mxu1 %vm668_vm3, %v4865_v17  ;;  %5710 = vmatmul.mubr.msk.bf16.gmra.mrb[12].mxu0 %vm668_vm3, %v5110_v21  ;;  %v2749_v28 = vrot.slane %v2747_v10, 4  ;;  %v2757_v38 = vrot.slane %v4999_v61, 5  ;;  %v4884_v26 = vcombine.low %v6885_v8, %v6888_v6  ;;  %v5005_v52 = vld [vmem:[%s6362_s24 + $0xa4] sm:$0x1]  ;;  %v6902_v60 = vld [vmem:[%s6362_s24 + $0x1c] sm:$0xf] }
  0x8e   : > { %5561 = vmatprep.mubr.msk.bf16.mxu1 %vm668_vm3, %v4883_v58  ;;  %5713 = vmatprep.mubr.msk.bf16.mxu0 %vm668_vm3, %v5111_v20  ;;  %v2755_v43 = vsel %vm6643_vm6, %v5095_v7, %v2754_v27  ;;  %v2756_v18 = vrot.slane %v2754_v27, 4  ;;  %v6899_v58 = vld [vmem:[%s6362_s24 + $0x18] sm:$0xf]  ;;  %v5096_v5 = vrot.slane %v5000_v25, 9  ;;  %v2761_v17 = vrot.slane %v5001_v36, 5  ;;  %v6177_v36 = vld [vmem:[%s8363_s1 + $0x10] sm:$0xff]  }
  0x8f   : > { %v2751_v4 = vsel %vm6643_vm6, %v2749_v28, %v2750_v31  ;;  %v4885_v23 = vcombine.low %v6899_v58, %v6902_v60  ;;  %v2764_v0 = vrot.slane %v5002_v47, 5  ;;  %v2768_v14 = vrot.slane %v5004_v49, 5  ;;  %v5007_v31 = vld [vmem:[%s6362_s24 + $0xac] sm:$0xf]  ;;  %v6912_v7 = vld [vmem:[%s8363_s1 + $0x18] sm:$0xff]  }
  0x90   : > { %v5112_v21 = vcombine.low %v2748_v62, %v2751_v4  ;;  %v2758_v54 = vsel %vm6643_vm6, %v2756_v18, %v2757_v38  ;;  %v2763_v61 = vrot.slane %v2761_v17, 4  ;;  %v5097_v50 = vrot.slane %v5003_v56, 9  ;;  %v5010_v25 = vld [vmem:[%s6362_s24 + $0xb8] sm:$0xf]  ;;  %v5009_v56 = vld [vmem:[%s6362_s24 + $0xb4] sm:$0xf] }
  0x91   : > { %v5113_v20 = vcombine.low %v2755_v43, %v2758_v54  ;;  %v2771_v10 = vrot.slane %v5005_v52, 5  ;;  %v2770_v27 = vrot.slane %v2768_v14, 4  ;;  %v2762_v62 = vsel %vm6643_vm6, %v5096_v5, %v2761_v17  ;;  %v5008_v43 = vld [vmem:[%s6362_s24 + $0xb0] sm:$0x1]  ;;  %v5011_v52 = vld [vmem:[%s6362_s24 + $0xbc] sm:$0x1] }
  0x92   : > { %v2765_v28 = vsel %vm6643_vm6, %v2763_v61, %v2764_v0  ;;  %v2775_v38 = vrot.slane %v5007_v31, 5  ;;  %v2769_v47 = vsel %vm6643_vm6, %v5097_v50, %v2768_v14  ;;  %v2782_v18 = vrot.slane %v5010_v25, 5  ;;  %v6936_v4 = vld [vmem:[%s6362_s24 + $0x24] sm:$0xf] }
  0x93   : > { %v2772_v49 = vsel %vm6643_vm6, %v2770_v27, %v2771_v10  ;;  %v5114_v17 = vcombine.low %v2762_v62, %v2765_v28  ;;  %v5099_v61 = vrot.slane %v5009_v56, 9  ;;  %v2785_v10 = vrot.slane %v5011_v52, 5  ;;  %v5013_v31 = vld [vmem:[%s6362_s24 + $0xc4] sm:$0xf]  ;;  %v5012_v62 = vld [vmem:[%s6362_s24 + $0xc0] sm:$0xf] }
  0x94   : > { %v5115_v54 = vcombine.low %v2769_v47, %v2772_v49  ;;  %v2777_v14 = vrot.slane %v2775_v38, 4  ;;  %v2784_v50 = vrot.slane %v2782_v18, 4  ;;  %v2789_v27 = vrot.slane %v5013_v31, 5  ;;  %v5014_v28 = vld [vmem:[%s6362_s24 + $0xc8] sm:$0x1] }
  0x95   : > { %5562 = vmatmul.mubr.msk.bf16.vlgmr.msra.gmra.mrb[0].mxu1 %vm668_vm3, %v4884_v26  ;;  %5714 = vmatmul.mubr.msk.bf16.gmra.mrb[16].mxu0 %vm668_vm3, %v5112_v21  ;;  %v5006_v26 = vld [vmem:[%s6362_s24 + $0xa8] sm:$0xf]  ;;  %v4887_v21 = vcombine.low %v6478_v35, %v6484_v46  ;;  %v2783_v25 = vsel %vm6643_vm6, %v5099_v61, %v2782_v18  ;;  %v4888_v47 = vcombine.low %v6515_v34, %v6521_v41  ;;  %v2792_v52 = vrot.slane %v5014_v28, 5  ;;  %v7011_v61 = vld [vmem:[%s8363_s1 + $0x40] sm:$0xff]  }
  0x96   : > { %5594 = vmatpush3.bf16.msra.mxu1 %v6177_v36  ;;  %5565 = vmatprep.mubr.msk.bf16.mxu1 %vm668_vm3, %v4885_v23  ;;  %v6939_v23 = vld [vmem:[%s6362_s24 + $0x28] sm:$0xf]  ;;  %v5098_v0 = vrot.slane %v5006_v26, 9  ;;  %v2786_v36 = vsel %vm6643_vm6, %v2784_v50, %v2785_v10  ;;  %v2791_v56 = vrot.slane %v2789_v27, 4  ;;  %v4890_v18 = vcombine.low %v6585_v40, %v6591_v48  ;;  %v6995_v48 = vld [vmem:[%s6362_s24 + $0x30] sm:$0xf] }
  0x97   : > { %5717 = vmatprep.mubr.msk.bf16.mxu0 %vm668_vm3, %v5113_v20  ;;  %5627 = vmatprep.subr.bf16.mxu1 %v6912_v7  ;;  %v4886_v5 = vcombine.low %v6936_v4, %v6939_v23  ;;  %v2778_v20 = vrot.slane %v5008_v43, 5  ;;  %v5117_v26 = vcombine.low %v2783_v25, %v2786_v36  ;;  %v5100_v43 = vrot.slane %v5012_v62, 9  ;;  %v6992_v40 = vld [vmem:[%s6362_s24 + $0x28] sm:$0xf]  ;;  %8398 = vst [vmem:[#allocation6_spill] sm:$0xff] %v7011_v61 }
  0x98   : > { %v2776_v35 = vsel %vm6643_vm6, %v5098_v0, %v2775_v38  ;;  %v4889_v38 = vcombine.low %v6551_v3, %v6554_v37  ;;  %v2793_v41 = vsel %vm6643_vm6, %v2791_v56, %v2792_v52  ;;  %v6973_v3 = vld [vmem:[%s6362_s24 + $0x18] sm:$0xf]  ;;  %v6976_v37 = vld [vmem:[%s6362_s24 + $0x1c] sm:$0xf]  ;;  %v7025_v50 = vld [vmem:[%s6362_s24 + $0x48] sm:$0xf]  ;;  %v4895_v28 = vcombine.low %v6733_v32, %v6736_v45 }
  0x99   : > { %v2779_v46 = vsel %vm6643_vm6, %v2777_v14, %v2778_v20  ;;  %v2790_v34 = vsel %vm6643_vm6, %v5100_v43, %v2789_v27  ;;  %v4893_v14 = vcombine.low %v6673_v1, %v6678_v15  ;;  %v7021_v1 = vld [vmem:[%s6362_s24 + $0x40] sm:$0xf]  ;;  %v7028_v10 = vld [vmem:[%s6362_s24 + $0x4c] sm:$0xf]  ;;  %v7032_v31 = vld [vmem:[%s6362_s24 + $0x8] sm:$0x1] }
  0x9a   : > { %v5116_v49 = vcombine.low %v2776_v35, %v2779_v46  ;;  %v1201_v35 = vrot.slane %v6888_v6, 5  ;;  %v4894_v46 = vcombine.low %v6694_v13, %v6708_v42  ;;  %v7041_v25 = vld [vmem:[%s6362_s24 + $0x14] sm:$0x1]  ;;  %v7057_v43 = vld [vmem:[%s6362_s24 + $0x58] sm:$0xf]  ;;  %v1208_v42 = vrot.slane %v6902_v60, 5 }
  0x9b   : > { %v1204_v36 = vrot.slane %v7041_v25, 5  ;;  %v7110_v52 = vld [vmem:[%s6362_s24 + $0x84] sm:$0xf]  ;;  %v1215_v62 = vrot.slane %v6939_v23, 5  ;;  %v7172_v13 = vld [vmem:[%s6362_s24 + $0xa0] sm:$0xf] }
  0x9c   : > { %8404 = vst [vmem:[#allocation12_spill] sm:$0xff] %v7110_v52  ;;  %v1203_v56 = vrot.slane %v1201_v35, 4  ;;  %v1210_v25 = vrot.slane %v1208_v42, 4  ;;  %v8409_v55 = vshrl.u32 %v6973_v3, 16  ;;  %v8410_v63 = vshll.u32 %v6973_v3, 16 }
  0x9d   : > { %5566 = vmatmul.mubr.msk.bf16.gmra.mrb[4].mxu1 %vm668_vm3, %v4886_v5  ;;  %5718 = vmatmul.mubr.msk.bf16.gmra.mrb[20].mxu0 %vm668_vm3, %v5114_v17  ;;  %v5118_v5 = vcombine.low %v2790_v34, %v2793_v41  ;;  %v4891_v17 = vcombine.low %v6622_v2, %v6625_v53  ;;  %v6998_v2 = vld [vmem:[%s6362_s24 + $0x34] sm:$0xf]  ;;  %v4892_v53 = vcombine.low %v6636_v39, %v6655_v16  ;;  %v7018_v39 = vld [vmem:[%s6362_s24 + $0x3c] sm:$0xf]  ;;  %v7064_v41 = vld [vmem:[%s6362_s24 + $0x60] sm:$0xf] }
  0x9e   : > { %5569 = vmatprep.mubr.msk.bf16.mxu1 %vm668_vm3, %v4887_v21  ;;  %5721 = vmatprep.mubr.msk.bf16.mxu0 %vm668_vm3, %v5115_v54  ;;  %v5186_v21 = vcombine.low %v6973_v3, %v6976_v37  ;;  %v6989_v54 = vld [vmem:[%s6362_s24 + $0x24] sm:$0xf]  ;;  %v5188_v20 = vcombine.low %v6995_v48, %v6998_v2  ;;  %v5189_v27 = vcombine.low %v7018_v39, %v7021_v1 }
  0x9f   : > { %v5187_v0 = vcombine.low %v6989_v54, %v6992_v40  ;;  %8399 = vst [vmem:[#allocation7_spill] sm:$0xff] %v7064_v41 }
  0xa5   : > { %5570 = vmatmul.mubr.msk.bf16.gmra.mrb[8].mxu1 %vm668_vm3, %v4888_v47  ;;  %5722 = vmatmul.mubr.msk.bf16.gmra.mrb[24].mxu0 %vm668_vm3, %v5116_v49  ;;  %v5190_v47 = vcombine.low %v7025_v50, %v7028_v10  ;;  %v7050_v49 = vld [vmem:[%s6362_s24 + $0x54] sm:$0xf] }
  0xa6   : > { %5573 = vmatprep.mubr.msk.bf16.mxu1 %vm668_vm3, %v4889_v38  ;;  %5725 = vmatprep.mubr.msk.bf16.mxu0 %vm668_vm3, %v5117_v26  ;;  %v7119_v26 = vld [vmem:[%s6362_s24 + $0x88] sm:$0xf] }
  0xa7   : > { %8405 = vst [vmem:[#allocation13_spill] sm:$0xff] %v7119_v26 }
  0xad   : > { %5574 = vmatmul.mubr.msk.bf16.gmra.mrb[12].mxu1 %vm668_vm3, %v4890_v18  ;;  %5726 = vmatmul.mubr.msk.bf16.gmra.mrb[28].mxu0 %vm668_vm3, %v5118_v5  ;;  %v7100_v5 = vld [vmem:[%s6362_s24 + $0x78] sm:$0xf]  ;;  %v4916_v18 = vrot.slane %v6859_v19, 9 }
  0xae   : > { %5577 = vmatprep.mubr.msk.bf16.mxu1 %vm668_vm3, %v4891_v17  ;;  %5731 = vmatprep.mubr.msk.bf16.mxu0 %vm668_vm3, %v5186_v21  ;;  %v7072_v21 = vld [vmem:[%s6362_s24 + $0x64] sm:$0xf]  ;;  %8402 = vst [vmem:[#allocation10_spill] sm:$0xff] %v7100_v5  ;;  %v4898_v17 = vcombine.low %v6814_v57, %v6817_v33 }
  0xb5   : > { %5578 = vmatmul.mubr.msk.bf16.gmra.mrb[16].mxu1 %vm668_vm3, %v4892_v53  ;;  %5732 = vmatmul.mubr.msk.bf16.vlgmr.msra.gmra.mrb[0].mxu0 %vm668_vm3, %v5187_v0  ;;  %v1194_v53 = vrot.slane %v6862_v59, 5  ;;  %v5191_v59 = vcombine.low %v7050_v49, %v7057_v43  ;;  %v7091_v0 = vld [vmem:[%s6362_s24 + $0x70] sm:$0xf] }
  0xb6   : > { %5764 = vmatpush3.bf16.msra.mxu0 %v6703_v51  ;;  %5581 = vmatprep.mubr.msk.bf16.mxu1 %vm668_vm3, %v4893_v14  ;;  %v1197_v51 = vrot.slane %v7032_v31, 5  ;;  %8401 = vst [vmem:[#allocation9_spill] sm:$0xff] %v7091_v0  ;;  %v4917_v14 = vrot.slane %v6885_v8, 9  ;;  %v7153_v31 = vsel %vm6643_vm6, %v1203_v56, %v1204_v36  ;;  %v7167_v36 = vld [vmem:[%s6362_s24 + $0x9c] sm:$0xf] }
  0xb7   : > { %5735 = vmatprep.mubr.msk.bf16.mxu0 %vm668_vm3, %v5188_v20  ;;  %5797 = vmatprep.subr.bf16.mxu0 %v7011_v61  ;;  %v4897_v20 = vcombine.low %v6787_v24, %v6790_v44  ;;  %v1196_v34 = vrot.slane %v1194_v53, 4  ;;  %v1195_v38 = vsel %vm6643_vm6, %v4916_v18, %v1194_v53  ;;  %v7160_v18 = vld [vmem:[%s6362_s24 + $0x94] sm:$0xf]  ;;  %v6187_v8 = vld [vmem:[%s6362_s24 + $0x38] sm:$0x1]  ;;  %v3477_v61 = vrot.slane %v8409_v55, 4 }
  0xb8   : > { %v7147_v23 = vsel %vm6643_vm6, %v4917_v14, %v1201_v35  ;;  %8407 = vst [vmem:[#allocation15_spill] sm:$0xff] %v7160_v18  ;;  %v6182_v53 = vld [vmem:[%s6362_s24 + $0x34] sm:$0xf]  ;;  %v4918_v14 = vrot.slane %v6899_v58, 9  ;;  %v6185_v35 = vld [vmem:[%s6362_s24 + $0x40] sm:$0xf] }
  0xb9   : > { %v1198_v60 = vsel %vm6643_vm6, %v1196_v34, %v1197_v51  ;;  %v7157_v34 = vld [vmem:[%s6362_s24 + $0x90] sm:$0xf]  ;;  %v1222_v6 = vrot.slane %v6182_v53, 5  ;;  %v6184_v51 = vld [vmem:[%s6362_s24 + $0x2c] sm:$0x1]  ;;  %v1225_v19 = vrot.slane %v6187_v8, 5 }
  0xba   : > { %8406 = vst [vmem:[#allocation14_spill] sm:$0xff] %v7157_v34  ;;  %v4934_v56 = vcombine.low %v1195_v38, %v1198_v60  ;;  %v7185_v53 = vsel %vm6643_vm6, %v4918_v14, %v1208_v42  ;;  %v6196_v55 = vld [vmem:[%s6362_s24 + $0x5c] sm:$0x1] }
  0xbb   : > { %v1246_v3 = vrot.slane %v6196_v55, 5 }
  0xbd   : > { %5582 = vmatmul.mubr.msk.bf16.gmra.mrb[20].mxu1 %vm668_vm3, %v4894_v46  ;;  %5736 = vmatmul.mubr.msk.bf16.gmra.mrb[4].mxu0 %vm668_vm3, %v5189_v27  ;;  %v4896_v46 = vcombine.low %v6755_v11, %v6763_v30  ;;  %v7083_v27 = vld [vmem:[%s6362_s24 + $0x6c] sm:$0xf]  ;;  %v5192_v11 = vcombine.low %v7064_v41, %v7072_v21  ;;  %v1218_v30 = vrot.slane %v6184_v51, 5  ;;  %v1224_v51 = vrot.slane %v1222_v6, 4 }
  0xbe   : > { %5585 = vmatprep.mubr.msk.bf16.mxu1 %vm668_vm3, %v4895_v28  ;;  %5739 = vmatprep.mubr.msk.bf16.mxu0 %vm668_vm3, %v5190_v47  ;;  %8400 = vst [vmem:[#allocation8_spill] sm:$0xff] %v7083_v27  ;;  %v7103_v28 = vld [vmem:[%s6362_s24 + $0x7c] sm:$0xf]  ;;  %v5193_v32 = vcombine.low %v7083_v27, %v7091_v0  ;;  %v1229_v47 = vrot.slane %v6185_v35, 5  ;;  %v7211_v35 = vld [vmem:[%s6362_s24 + $0xb4] sm:$0xf] }
  0xbf   : > { %8403 = vst [vmem:[#allocation11_spill] sm:$0xff] %v7103_v28  ;;  %v3480_v0 = vrot.slane %v8410_v63, 5  ;;  %v8411_v41 = vshrl.u32 %v6976_v37, 16  ;;  %v8413_v63 = vcombine.low %v7110_v52, %v7119_v26  ;;  %v8418_v26 = vshrl.u32 %v6992_v40, 16 }
  0xc5   : > { %5586 = vmatmul.mubr.msk.bf16.gmra.mrb[24].mxu1 %vm668_vm3, %v4896_v46  ;;  %5740 = vmatmul.mubr.msk.bf16.gmra.mrb[8].mxu0 %vm668_vm3, %v5191_v59  ;;  %v4919_v59 = vrot.slane %v6936_v4, 9  ;;  %v6186_v4 = vld [vmem:[%s6362_s24 + $0x30] sm:$0xf] }
  0xc6   : > { %5589 = vmatprep.mubr.msk.bf16.mxu1 %vm668_vm3, %v4897_v20  ;;  %5743 = vmatprep.mubr.msk.bf16.mxu0 %vm668_vm3, %v5192_v11  ;;  %v6183_v20 = vld [vmem:[%s6362_s24 + $0x20] sm:$0x1]  ;;  %v1217_v11 = vrot.slane %v1215_v62, 4  ;;  %v4920_v60 = vrot.slane %v6186_v4, 9  ;;  %v7195_v4 = vld [vmem:[%s6362_s24 + $0xa8] sm:$0xf] }
  0xc7   : > { %v1211_v46 = vrot.slane %v6183_v20, 5  ;;  %v7199_v8 = vsel %vm6643_vm6, %v4919_v59, %v1215_v62  ;;  %v7225_v20 = vld [vmem:[%s6362_s24 + $0xb8] sm:$0xf]  ;;  %v6190_v62 = vld [vmem:[%s6362_s24 + $0x4c] sm:$0xf] }
  0xc8   : > { %v7203_v42 = vsel %vm6643_vm6, %v1217_v11, %v1218_v30  ;;  %v6188_v30 = vld [vmem:[%s6362_s24 + $0x3c] sm:$0xf]  ;;  %v1231_v11 = vrot.slane %v1229_v47, 4  ;;  %v1236_v38 = vrot.slane %v6190_v62, 5  ;;  %v6191_v62 = vld [vmem:[%s6362_s24 + $0x48] sm:$0xf] }
  0xc9   : > { %v7189_v58 = vsel %vm6643_vm6, %v1210_v25, %v1211_v46  ;;  %v7208_v46 = vld [vmem:[%s6362_s24 + $0xac] sm:$0xf]  ;;  %v4921_v59 = vrot.slane %v6188_v30, 9  ;;  %v6189_v25 = vld [vmem:[%s6362_s24 + $0x44] sm:$0x1]  ;;  %v7236_v30 = vsel %vm6643_vm6, %v4920_v60, %v1222_v6 }
  0xca   : > { %v1232_v14 = vrot.slane %v6189_v25, 5  ;;  %v7240_v25 = vsel %vm6643_vm6, %v1224_v51, %v1225_v19  ;;  %v7250_v6 = vld [vmem:[%s6362_s24 + $0xc0] sm:$0xf]  ;;  %v7253_v60 = vld [vmem:[%s6362_s24 + $0xc4] sm:$0xf] }
  0xcb   : > { %v7272_v51 = vld [vmem:[%s6362_s24 + $0xcc] sm:$0xf] }
  0xcc   : > { %v7268_v19 = vsel %vm6643_vm6, %v1231_v11, %v1232_v14  ;;  %v6195_v14 = vld [vmem:[%s6362_s24 + $0x64] sm:$0xf] }
  0xcd   : > { %5590 = vmatmul.mubr.msk.bf16.gmra.mrb[28].mxu1 %vm668_vm3, %v4898_v17  ;;  %5744 = vmatmul.mubr.msk.bf16.gmra.mrb[12].mxu0 %vm668_vm3, %v5193_v32  ;;  %v8408_v17 = vcombine.low %v7100_v5, %v7103_v28  ;;  %v4936_v32 = vcombine.low %v7185_v53, %v7189_v58  ;;  %v7264_v53 = vsel %vm6643_vm6, %v4921_v59, %v1229_v47  ;;  %v1238_v5 = vrot.slane %v1236_v38, 4  ;;  %v6193_v58 = vld [vmem:[%s6362_s24 + $0x58] sm:$0xf]  ;;  %v7279_v28 = vld [vmem:[%s6362_s24 + $0xd0] sm:$0xf] }
  0xce   : > { %5595 = vmatprep.mubr.msk.bf16.mxu1 %vm668_vm3, %v4934_v56  ;;  %v4922_v56 = vrot.slane %v6191_v62, 9  ;;  %v6192_v62 = vld [vmem:[%s6362_s24 + $0x50] sm:$0x1]  ;;  %v1243_v33 = vrot.slane %v6193_v58, 5  ;;  %v6194_v47 = vld [vmem:[%s6362_s24 + $0x54] sm:$0xf] }
  0xcf   : > { %5747 = vmatprep.mubr.msk.bf16.mxu0 %vm668_vm3, %v8408_v17  ;;  %v3484_v17 = vshll.u32 %v6976_v37, 16  ;;  %v1239_v57 = vrot.slane %v6192_v62, 5  ;;  %v4923_v59 = vrot.slane %v6194_v47, 9  ;;  %v1250_v11 = vrot.slane %v6195_v14, 5 }
  0xd0   : > { %v7291_v27 = vsel %vm6643_vm6, %v4922_v56, %v1236_v38  ;;  %v3490_v47 = vrot.slane %v8411_v41, 4  ;;  %v8412_v14 = vcombine.low %v7147_v23, %v7153_v31  ;;  %v7309_v56 = vld [vmem:[%s6362_s24 + $0x20] sm:$0x1]  ;;  %v1257_v37 = vrot.slane %v6655_v16, 5 }
  0xd1   : > { %v7293_v58 = vrot.slane %v3484_v17, 5  ;;  %v3508_v41 = vshll.u32 %v6992_v40, 16  ;;  %v7317_v23 = vsel %vm6643_vm6, %v1238_v5, %v1239_v57  ;;  %v1245_v31 = vrot.slane %v1243_v33, 4  ;;  %v6198_v57 = vld [vmem:[%s6362_s24 + $0x68] sm:$0x1] }
  0xd2   : > { %v8414_v17 = vshrl.u32 %v6989_v54, 16  ;;  %v8416_v16 = vcombine.low %v7157_v34, %v7160_v18  ;;  %v1252_v38 = vrot.slane %v1250_v11, 4  ;;  %v1253_v5 = vrot.slane %v6198_v57, 5  ;;  %v6201_v57 = vld [vmem:[%s6362_s24 + $0x74] sm:$0x1] }
  0xd3   : > { %v3481_v62 = vor.u32 %v3480_v0, %v3477_v61  ;;  %v1259_v52 = vrot.slane %v1257_v37, 4  ;;  %v1260_v61 = vrot.slane %v6201_v57, 5  ;;  %v7344_v0 = vld [vmem:[%s6362_s24 + $0x2c] sm:$0x1]  ;;  %v7346_v18 = vrot.slane %v3508_v41, 5 }
  0xd4   : > { %v7363_v41 = vsel %vm6643_vm6, %v1252_v38, %v1253_v5  ;;  %v8419_v38 = vcombine.low %v7199_v8, %v7203_v42  ;;  %v8423_v8 = vcombine.low %v7236_v30, %v7240_v25  ;;  %v8424_v42 = vcombine.low %v7195_v4, %v7208_v46  ;;  %v7480_v30 = vld [vmem:[%s6362_s24 + $0x50] sm:$0x1] }
  0xd5   : > { %5596 = vmatmul.mubr.msk.bf16.vlgmr.msra.gmra.mrb[0].mxu1 %vm668_vm3, %v8412_v14  ;;  %5748 = vmatmul.mubr.msk.bf16.gmra.mrb[16].mxu0 %vm668_vm3, %v8413_v63  ;;  %v3501_v14 = vrot.slane %v8414_v17, 4  ;;  %v8415_v63 = vshll.u32 %v6989_v54, 16  ;;  %v7332_v17 = vld [vmem:[%s8363_s1 + $0x20] sm:$0xff]   ;;  %v7337_v54 = vsel %vm6643_vm6, %v4923_v59, %v1243_v33  ;;  %v4940_v33 = vcombine.low %v7291_v27, %v7317_v23 }
  0xd6   : > { %5628 = vmatpush3.bf16.msra.mxu1 %v6912_v7  ;;  %5599 = vmatprep.mubr.msk.bf16.mxu1 %vm668_vm3, %v4936_v32  ;;  %v6197_v7 = vld [vmem:[%s6362_s24 + $0x60] sm:$0xf]  ;;  %8417 = vst [vmem:[#allocation16_spill] sm:$0xff] %v7332_v17  ;;  %v7354_v59 = vsel %vm6643_vm6, %v1245_v31, %v1246_v3  ;;  %v7365_v40 = vrot.slane %v3481_v62, 4  ;;  %v8420_v62 = vcombine.low %v7167_v36, %v7172_v13 }
  0xd7   : > { %v3504_v55 = vrot.slane %v8415_v63, 5  ;;  %5751 = vmatprep.mubr.msk.bf16.mxu0 %vm668_vm3, %v8416_v16  ;;  %v4924_v32 = vrot.slane %v6197_v7, 9  ;;  %5831 = vmatprep.subr.bf16.mxu1 %v7332_v17  ;;  %v3491_v63 = vor.u32 %v3490_v47, %v7293_v58  ;;  %v3494_v16 = vshll.u32 %v7309_v56, 16  ;;  %v6200_v7 = vld [vmem:[%s6362_s24 + $0x6c] sm:$0xf] }
  0xd8   : > { %v4925_v34 = vrot.slane %v6200_v7, 9  ;;  %v3514_v17 = vrot.slane %v8418_v26, 4  ;;  %v1264_v7 = vrot.slane %v6678_v15, 5  ;;  %v3532_v26 = vshll.u32 %v6998_v2, 16 }
  0xd9   : > { %v3505_v47 = vor.u32 %v3504_v55, %v3501_v14  ;;  %v7359_v57 = vsel %vm6643_vm6, %v4924_v32, %v1250_v11  ;;  %v7368_v27 = vrot.slane %v3491_v63, 4  ;;  %v7370_v3 = vrot.slane %v3494_v16, 5  ;;  %v6202_v32 = vld [vmem:[%s6362_s24 + $0x78] sm:$0xf]  ;;  %v6203_v63 = vld [vmem:[%s6362_s24 + $0x80] sm:$0x1] }
  0xda   : > { %v7374_v15 = vsel %vm6643_vm6, %v4925_v34, %v1257_v37  ;;  %v3518_v11 = vshll.u32 %v7344_v0, 16  ;;  %v7387_v23 = vsel %vm6643_vm6, %v1259_v52, %v1260_v61  ;;  %v3515_v34 = vor.u32 %v3514_v17, %v7346_v18  ;;  %v7405_v61 = vld [vmem:[%s6362_s24 + $0x38] sm:$0x1] }
  0xdb   : > { %v8421_v37 = vshrl.u32 %v6995_v48, 16  ;;  %v8422_v14 = vshll.u32 %v6995_v48, 16  ;;  %v3506_v52 = vrot.slane %v3505_v47, 4  ;;  %v4926_v5 = vrot.slane %v6202_v32, 9  ;;  %8425 = vst [vmem:[#allocation17_spill] sm:$0xff] %v7405_v61 }
  0xdc   : > { %v1266_v17 = vrot.slane %v1264_v7, 4  ;;  %v1267_v16 = vrot.slane %v6203_v63, 5  ;;  %v7411_v25 = vrot.slane %v3532_v26, 5  ;;  %v3487_v47 = vsel %vm6386_vm2, %v7365_v40, %v7293_v58  ;;  %v6207_v48 = vld [vmem:[%s6362_s24 + $0x90] sm:$0xf] }
  0xdd   : > { %5600 = vmatmul.mubr.msk.bf16.gmra.mrb[4].mxu1 %vm668_vm3, %v8419_v38  ;;  %5752 = vmatmul.mubr.msk.bf16.gmra.mrb[20].mxu0 %vm668_vm3, %v8420_v62  ;;  %v3525_v31 = vrot.slane %v8421_v37, 4  ;;  %v3528_v55 = vrot.slane %v8422_v14, 5  ;;  %v8426_v38 = vshrl.u32 %v6998_v2, 16  ;;  %v3497_v37 = vsel %vm6386_vm2, %v7368_v27, %v7370_v3 }
  0xde   : > { %5603 = vmatprep.mubr.msk.bf16.mxu1 %vm668_vm3, %v8423_v8  ;;  %5755 = vmatprep.mubr.msk.bf16.mxu0 %vm668_vm3, %v8424_v42  ;;  %v3556_v26 = vshll.u32 %v7021_v1, 16  ;;  %v3516_v8 = vrot.slane %v3515_v34, 4  ;;  %v3520_v2 = vrot.slane %v3518_v11, 5  ;;  %v3542_v32 = vshll.u32 %v7405_v61, 16  ;;  %v6204_v11 = vld [vmem:[%s6362_s24 + $0x88] sm:$0xf] }
  0xdf   : > { %v3538_v62 = vrot.slane %v8426_v38, 4  ;;  %v3529_v42 = vor.u32 %v3528_v55, %v3525_v31  ;;  %v3511_v58 = vsel %vm6386_vm2, %v3506_v52, %v7346_v18  ;;  %v7432_v40 = vsel %vm6643_vm6, %v4926_v5, %v1264_v7  ;;  %v6205_v38 = vld [vmem:[%s6362_s24 + $0x84] sm:$0xf] }
  0xe0   : > { %v7436_v27 = vsel %vm6643_vm6, %v1266_v17, %v1267_v16  ;;  %v3580_v3 = vshll.u32 %v7028_v10, 16  ;;  %v1271_v31 = vrot.slane %v6204_v11, 5  ;;  %v8427_v55 = vshrl.u32 %v7018_v39, 16  ;;  %v7447_v5 = vld [vmem:[%s6362_s24 + $0x44] sm:$0x1] }
  0xe1   : > { %v3539_v34 = vor.u32 %v3538_v62, %v7411_v25  ;;  %v8428_v18 = vshll.u32 %v7018_v39, 16  ;;  %v4927_v7 = vrot.slane %v6205_v38, 9  ;;  %v7449_v14 = vrot.slane %v3556_v26, 5 }
  0xe2   : > { %v3549_v63 = vrot.slane %v8427_v55, 4  ;;  %v8429_v17 = vshrl.u32 %v7021_v1, 16  ;;  %v1278_v62 = vrot.slane %v6736_v45, 5  ;;  %v8430_v11 = vcombine.low %v7264_v53, %v7268_v19 }
  0xe3   : > { %v3552_v52 = vrot.slane %v8428_v18, 5  ;;  %v8431_v39 = vcombine.low %v7211_v35, %v7225_v20  ;;  %v3521_v26 = vsel %vm6386_vm2, %v3516_v8, %v3520_v2  ;;  %v3530_v55 = vrot.slane %v3529_v42, 4  ;;  %v6206_v18 = vld [vmem:[%s6362_s24 + $0x8c] sm:$0x1] }
  0xe4   : > { %v3562_v16 = vrot.slane %v8429_v17, 4  ;;  %v3544_v1 = vrot.slane %v3542_v32, 5  ;;  %v1274_v38 = vrot.slane %v6206_v18, 5  ;;  %v8432_v45 = vcombine.low %v7250_v6, %v7253_v60 }
  0xe5   : > { %5604 = vmatmul.mubr.msk.bf16.gmra.mrb[8].mxu1 %vm668_vm3, %v8430_v11  ;;  %5756 = vmatmul.mubr.msk.bf16.gmra.mrb[24].mxu0 %vm668_vm3, %v8431_v39  ;;  %v8433_v53 = vshrl.u32 %v7025_v50, 16  ;;  %v8434_v17 = vshll.u32 %v7025_v50, 16  ;;  %v7474_v39 = vrot.slane %v3580_v3, 5  ;;  %v8435_v8 = vshrl.u32 %v7028_v10, 16 }
  0xe6   : > { %5607 = vmatprep.mubr.msk.bf16.mxu1 %vm668_vm3, %v4940_v33  ;;  %5759 = vmatprep.mubr.msk.bf16.mxu0 %vm668_vm3, %v8432_v45  ;;  %v3540_v42 = vrot.slane %v3539_v34, 4  ;;  %v1273_v32 = vrot.slane %v1271_v31, 4  ;;  %v3553_v18 = vor.u32 %v3552_v52, %v3549_v63  ;;  %v3566_v33 = vshll.u32 %v7447_v5, 16 }
  0xe7   : > { %v3573_v19 = vrot.slane %v8433_v53, 4  ;;  %v3576_v11 = vrot.slane %v8434_v17, 5  ;;  %v3586_v2 = vrot.slane %v8435_v8, 4  ;;  %v3563_v45 = vor.u32 %v3562_v16, %v7449_v14 }
  0xe8   : > { %v4928_v61 = vrot.slane %v6207_v48, 9  ;;  %v1280_v53 = vrot.slane %v1278_v62, 4  ;;  %v1281_v50 = vrot.slane %v6744_v22, 5  ;;  %v5221_v17 = vcombine.low %v3487_v47, %v3497_v37 }
  0xe9   : > { %v5222_v3 = vcombine.low %v3511_v58, %v3521_v26  ;;  %v4944_v10 = vcombine.low %v7432_v40, %v7436_v27  ;;  %v3604_v34 = vshll.u32 %v7057_v43, 16  ;;  %v7490_v63 = vsel %vm6643_vm6, %v4927_v7, %v1271_v31 }
  0xea   : > { %v3577_v52 = vor.u32 %v3576_v11, %v3573_v19  ;;  %v3587_v16 = vor.u32 %v3586_v2, %v7474_v39  ;;  %v3590_v48 = vshll.u32 %v7480_v30, 16  ;;  %v3535_v22 = vsel %vm6386_vm2, %v3530_v55, %v7411_v25  ;;  %v7520_v55 = vld [vmem:[%s6362_s24 + $0x5c] sm:$0x1] }
  0xeb   : > { %v3545_v47 = vsel %vm6386_vm2, %v3540_v42, %v3544_v1  ;;  %v7501_v37 = vsel %vm6643_vm6, %v1273_v32, %v1274_v38  ;;  %v3554_v58 = vrot.slane %v3553_v18, 4  ;;  %v3564_v40 = vrot.slane %v3563_v45, 4  ;;  %v6208_v32 = vld [vmem:[%s6362_s24 + $0xa0] sm:$0xf] }
  0xec   : > { %v3568_v27 = vrot.slane %v3566_v33, 5  ;;  %v7505_v31 = vsel %vm6643_vm6, %v4928_v61, %v1278_v62  ;;  %v7509_v7 = vsel %vm6643_vm6, %v1280_v53, %v1281_v50  ;;  %v8436_v25 = vcombine.low %v7337_v54, %v7354_v59  ;;  %v6209_v53 = vld [vmem:[%s6362_s24 + $0x9c] sm:$0xf] }
  0xed   : > { %v8437_v26 = vcombine.low %v7272_v51, %v7279_v28  ;;  %v8438_v1 = vshrl.u32 %v7050_v49, 16  ;;  %v8439_v62 = vshll.u32 %v7050_v49, 16  ;;  %v7526_v19 = vrot.slane %v3604_v34, 5 }
  0xee   : > { %5608 = vmatmul.mubr.msk.bf16.gmra.mrb[12].mxu1 %vm668_vm3, %v8436_v25  ;;  %v8440_v54 = vshrl.u32 %v7057_v43, 16  ;;  %v8441_v11 = vcombine.low %v7359_v57, %v7363_v41  ;;  %v3578_v8 = vrot.slane %v3577_v52, 4  ;;  %v3588_v2 = vrot.slane %v3587_v16, 4 }
  0xef   : > { %5760 = vmatmul.mubr.msk.bf16.gmra.mrb[28].mxu0 %vm668_vm3, %v8437_v26  ;;  %v3597_v61 = vrot.slane %v8438_v1, 4  ;;  %v3600_v38 = vrot.slane %v8439_v62, 5  ;;  %v3592_v42 = vrot.slane %v3590_v48, 5  ;;  %v1285_v18 = vrot.slane %v6208_v32, 5 }
  0xf0   : > { %v3610_v59 = vrot.slane %v8440_v54, 4  ;;  %5611 = vmatprep.mubr.msk.bf16.mxu1 %vm668_vm3, %v8441_v11  ;;  %5765 = vmatprep.mubr.msk.bf16.mxu0 %vm668_vm3, %v5221_v17  ;;  %v5223_v49 = vcombine.low %v3535_v22, %v3545_v47  ;;  %v4945_v33 = vcombine.low %v7490_v63, %v7501_v37  ;;  %v3559_v43 = vsel %vm6386_vm2, %v3554_v58, %v7449_v14  ;;  %v7570_v54 = vld [vmem:[%s6362_s24 + $0x68] sm:$0x1] }
  0xf1   : > { %v3628_v45 = vshll.u32 %v7072_v21, 16  ;;  %v3569_v57 = vsel %vm6386_vm2, %v3564_v40, %v3568_v27  ;;  %v4946_v41 = vcombine.low %v7505_v31, %v7509_v7  ;;  %v4929_v50 = vrot.slane %v6209_v53, 9  ;;  %v8442_v40 = vld [vmem:[#allocation7_spill] sm:$0xff] }
  0xf2   : > { %v3614_v17 = vshll.u32 %v7520_v55, 16  ;;  %v1288_v34 = vrot.slane %v6771_v12, 5  ;;  %v3601_v52 = vor.u32 %v3600_v38, %v3597_v61  ;;  %v3611_v16 = vor.u32 %v3610_v59, %v7526_v19  ;;  %v8463_v7 = vld [vmem:[#allocation15_spill] sm:$0xff] }
  0xf3   : > { %v1292_v14 = vrot.slane %v6790_v44, 5  ;;  %v3583_v48 = vsel %vm6386_vm2, %v3578_v8, %v7474_v39  ;;  %v3593_v22 = vsel %vm6386_vm2, %v3588_v2, %v3592_v42  ;;  %v1287_v47 = vrot.slane %v1285_v18, 4  ;;  %v8448_v42 = vld [vmem:[#allocation2_spill] sm:$0xff] }
  0xf4   : > { %v4930_v58 = vrot.slane %v6787_v24, 9  ;;  %v8443_v27 = vshrl.u32 %v8442_v40, 16  ;;  %v8444_v12 = vshll.u32 %v8442_v40, 16  ;;  %v7561_v1 = vrot.slane %v3628_v45, 5  ;;  %v8446_v24 = vld [vmem:[#allocation9_spill] sm:$0xff] }
  0xf5   : > { %v8445_v44 = vshrl.u32 %v7072_v21, 16  ;;  %v5224_v62 = vcombine.low %v3559_v43, %v3569_v57  ;;  %v7567_v39 = vsel %vm6643_vm6, %v4929_v50, %v1285_v18  ;;  %v3616_v38 = vrot.slane %v3614_v17, 5  ;;  %v8449_v43 = vld [vmem:[#allocation6_spill] sm:$0xff] }
  0xf6   : > { %v3621_v25 = vrot.slane %v8443_v27, 4  ;;  %v3624_v26 = vrot.slane %v8444_v12, 5  ;;  %v3652_v59 = vshll.u32 %v8446_v24, 16  ;;  %v8447_v11 = vcombine.low %v7374_v15, %v7387_v23  ;;  %v8450_v23 = vld [vmem:[#allocation11_spill] sm:$0xff] }
  0xf7   : > { %v3634_v61 = vrot.slane %v8445_v44, 4  ;;  %5766 = vmatmul.mubr.msk.bf16.vlgmr.msra.gmra.mrb[0].mxu0 %vm668_vm3, %v5222_v3  ;;  %v3602_v8 = vrot.slane %v3601_v52, 4  ;;  %v3612_v21 = vrot.slane %v3611_v16, 4  ;;  %v1294_v2 = vrot.slane %v1292_v14, 4  ;;  %v8452_v52 = vld [vmem:[#allocation8_spill] sm:$0xff]  ;;  %v8457_v44 = vld [vmem:[#allocation10_spill] sm:$0xff] }
  0xf8   : > { %5612 = vmatmul.mubr.msk.bf16.gmra.mrb[16].mxu1 %vm668_vm3, %v8447_v11  ;;  %v1295_v32 = vrot.slane %v8448_v42, 5  ;;  %5798 = vmatpush3.bf16.msra.mxu0 %v8449_v43  ;;  %v5225_v18 = vcombine.low %v3583_v48, %v3593_v22  ;;  %v7583_v45 = vsel %vm6643_vm6, %v1287_v47, %v1288_v34  ;;  %v7587_v15 = vsel %vm6643_vm6, %v4930_v58, %v1292_v14 }
  0xf9   : > { %5615 = vmatprep.mubr.msk.bf16.mxu1 %vm668_vm3, %v4944_v10  ;;  %v3676_v3 = vshll.u32 %v8450_v23, 16  ;;  %5769 = vmatprep.mubr.msk.bf16.mxu0 %vm668_vm3, %v5223_v49  ;;  %v3625_v57 = vor.u32 %v3624_v26, %v3621_v25  ;;  %v3635_v53 = vor.u32 %v3634_v61, %v7561_v1  ;;  %v3638_v50 = vshll.u32 %v7570_v54, 16  ;;  %v8451_v10 = vld [vmem:[#allocation4_spill] sm:$0xff]  ;;  %v8456_v25 = vld [vmem:[#allocation3_spill] sm:$0xff] }
  0xfa   : > { %v1299_v17 = vrot.slane %v8451_v10, 5  ;;  %v8453_v16 = vshrl.u32 %v8452_v52, 16  ;;  %v8454_v48 = vshll.u32 %v8452_v52, 16  ;;  %v7598_v14 = vrot.slane %v3652_v59, 5  ;;  %v7613_v26 = vld [vmem:[%s6362_s24 + $0x74] sm:$0x1] }
  0xfb   : > { %v8455_v47 = vshrl.u32 %v8446_v24, 16  ;;  %v3607_v49 = vsel %vm6386_vm2, %v3602_v8, %v7526_v19  ;;  %v3617_v40 = vsel %vm6386_vm2, %v3612_v21, %v3616_v38  ;;  %v7609_v27 = vsel %vm6643_vm6, %v1294_v2, %v1295_v32  ;;  %v8461_v2 = vld [vmem:[#allocation5_spill] sm:$0xff]  ;;  %v7625_v10 = vld [vmem:[%s6362_s24 + $0x80] sm:$0x1] }
  0xfc   : > { %v3645_v34 = vrot.slane %v8453_v16, 4  ;;  %v3648_v22 = vrot.slane %v8454_v48, 5  ;;  %v4931_v12 = vrot.slane %v8456_v25, 9  ;;  %v8458_v61 = vshrl.u32 %v8457_v44, 16 }
  0xfd   : > { %v3658_v58 = vrot.slane %v8455_v47, 4  ;;  %v8459_v24 = vshll.u32 %v8457_v44, 16  ;;  %v7619_v42 = vrot.slane %v3676_v3, 5  ;;  %v8460_v19 = vshrl.u32 %v8450_v23, 16 }
  0xfe   : > { %v3669_v59 = vrot.slane %v8458_v61, 4  ;;  %v3626_v38 = vrot.slane %v3625_v57, 4  ;;  %v3636_v21 = vrot.slane %v3635_v53, 4  ;;  %v3640_v43 = vrot.slane %v3638_v50, 5  ;;  %v8462_v57 = vld [vmem:[#allocation13_spill] sm:$0xff] }
  0xff   : > { %v3672_v11 = vrot.slane %v8459_v24, 5  ;;  %v3682_v8 = vrot.slane %v8460_v19, 4  ;;  %v1302_v32 = vrot.slane %v8461_v2, 5  ;;  %v1301_v52 = vrot.slane %v1299_v17, 4  ;;  %5770 = vmatmul.mubr.msk.bf16.gmra.mrb[4].mxu0 %vm668_vm3, %v5224_v62  ;;  %v8468_v19 = vld [vmem:[#allocation14_spill] sm:$0xff] }
 0x100   : > { %v3649_v16 = vor.u32 %v3648_v22, %v3645_v34  ;;  %v3659_v48 = vor.u32 %v3658_v58, %v7598_v14  ;;  %v3662_v47 = vshll.u32 %v7613_v26, 16  ;;  %v3790_v25 = vshll.u32 %v7211_v35, 16  ;;  %5616 = vmatmul.mubr.msk.bf16.gmra.mrb[20].mxu1 %vm668_vm3, %v4945_v33  ;;  %5773 = vmatprep.mubr.msk.bf16.mxu0 %vm668_vm3, %v5225_v18  ;;  %v8464_v22 = vld [vmem:[#allocation12_spill] sm:$0xff] }
 0x101   : > { %v4947_v23 = vcombine.low %v7567_v39, %v7583_v45  ;;  %v4948_v3 = vcombine.low %v7587_v15, %v7609_v27  ;;  %v3700_v53 = vshll.u32 %v8462_v57, 16  ;;  %5619 = vmatprep.mubr.msk.bf16.mxu1 %vm668_vm3, %v4946_v41  ;;  %v5226_v63 = vcombine.low %v3607_v49, %v3617_v40 }
 0x102   : > { %v3673_v37 = vor.u32 %v3672_v11, %v3669_v59  ;;  %v3683_v33 = vor.u32 %v3682_v8, %v7619_v42  ;;  %v3686_v62 = vshll.u32 %v7625_v10, 16  ;;  %v3631_v39 = vsel %vm6386_vm2, %v3626_v38, %v7561_v1  ;;  %v7670_v11 = vld [vmem:[%s6362_s24 + $0x8c] sm:$0x1] }
 0x103   : > { %v3641_v45 = vsel %vm6386_vm2, %v3636_v21, %v3640_v43  ;;  %v7654_v31 = vsel %vm6643_vm6, %v4931_v12, %v1299_v17  ;;  %v3724_v41 = vshll.u32 %v8463_v7, 16  ;;  %v7659_v18 = vsel %vm6643_vm6, %v1301_v52, %v1302_v32 }
 0x104   : > { %v3650_v15 = vrot.slane %v3649_v16, 4  ;;  %v3660_v50 = vrot.slane %v3659_v48, 4  ;;  %v3664_v34 = vrot.slane %v3662_v47, 5  ;;  %v8465_v58 = vshrl.u32 %v8464_v22, 16 }
 0x105   : > { %v8466_v49 = vshll.u32 %v8464_v22, 16  ;;  %v7665_v27 = vrot.slane %v3700_v53, 5  ;;  %v8467_v17 = vshrl.u32 %v8462_v57, 16  ;;  %v5227_v44 = vcombine.low %v3631_v39, %v3641_v45  ;;  %v7687_v57 = vld [vmem:[%s6362_s24 + $0x98] sm:$0x1] }
 0x106   : > { %v3693_v1 = vrot.slane %v8465_v58, 4  ;;  %v3674_v61 = vrot.slane %v3673_v37, 4  ;;  %v3684_v59 = vrot.slane %v3683_v33, 4  ;;  %v3688_v24 = vrot.slane %v3686_v62, 5  ;;  %v6210_v37 = vld [vmem:[%s6362_s24 + $0xc] sm:$0xf] }
 0x107   : > { %v3696_v40 = vrot.slane %v8466_v49, 5  ;;  %v3706_v12 = vrot.slane %v8467_v17, 4  ;;  %v8469_v8 = vshrl.u32 %v8468_v19, 16  ;;  %v8470_v21 = vshll.u32 %v8468_v19, 16  ;;  %5774 = vmatmul.mubr.msk.bf16.gmra.mrb[8].mxu0 %vm668_vm3, %v5226_v63  ;;  %v6211_v33 = vld [vmem:[%s6362_s24 + $0x10] sm:$0xf] }
 0x108   : > { %v7676_v2 = vrot.slane %v3724_v41, 5  ;;  %v8471_v32 = vshrl.u32 %v8463_v7, 16  ;;  %v3800_v16 = vshrl.u32 %v7225_v20, 16  ;;  %v3655_v48 = vsel %vm6386_vm2, %v3650_v15, %v7598_v14  ;;  %5620 = vmatmul.mubr.msk.bf16.gmra.mrb[24].mxu1 %vm668_vm3, %v4947_v23  ;;  %5777 = vmatprep.mubr.msk.bf16.mxu0 %vm668_vm3, %v5227_v44 }
 0x109   : > { %v3717_v38 = vrot.slane %v8469_v8, 4  ;;  %v3720_v43 = vrot.slane %v8470_v21, 5  ;;  %v3665_v47 = vsel %vm6386_vm2, %v3660_v50, %v3664_v34  ;;  %v3748_v53 = vshll.u32 %v7172_v13, 16  ;;  %5623 = vmatprep.mubr.msk.bf16.mxu1 %vm668_vm3, %v4948_v3 }
 0x10a   : > { %v3730_v52 = vrot.slane %v8471_v32, 4  ;;  %v5017_v62 = vcombine.low %v6210_v37, %v6211_v33  ;;  %v3697_v39 = vor.u32 %v3696_v40, %v3693_v1  ;;  %v3707_v45 = vor.u32 %v3706_v12, %v7665_v27 }
 0x10b   : > { %v3710_v7 = vshll.u32 %v7670_v11, 16  ;;  %v4949_v14 = vcombine.low %v7654_v31, %v7659_v18  ;;  %v3679_v23 = vsel %vm6386_vm2, %v3674_v61, %v7619_v42  ;;  %v3689_v63 = vsel %vm6386_vm2, %v3684_v59, %v3688_v24  ;;  %v7717_v61 = vld [vmem:[%s6362_s24 + $0xa4] sm:$0x1] }
 0x10c   : > { %v3772_v41 = vshll.u32 %v7208_v46, 16  ;;  %v5228_v15 = vcombine.low %v3655_v48, %v3665_v47  ;;  %v3721_v50 = vor.u32 %v3720_v43, %v3717_v38  ;;  %v3731_v34 = vor.u32 %v3730_v52, %v7676_v2  ;;  %v7729_v48 = vld [vmem:[%s6362_s24 + $0xb0] sm:$0x1] }
 0x10d   : > { %v3734_v3 = vshll.u32 %v7687_v57, 16  ;;  %v8472_v22 = vshrl.u32 %v7167_v36, 16  ;;  %v8473_v31 = vshll.u32 %v7167_v36, 16  ;;  %v7712_v1 = vrot.slane %v3748_v53, 5 }
 0x10e   : > { %v8474_v42 = vshrl.u32 %v7172_v13, 16  ;;  %v5229_v40 = vcombine.low %v3679_v23, %v3689_v63  ;;  %v3698_v17 = vrot.slane %v3697_v39, 4  ;;  %v3708_v12 = vrot.slane %v3707_v45, 4  ;;  %v6212_v45 = vld [vmem:[%s6362_s24 + $0x18] sm:$0xf] }
 0x10f   : > { %v3741_v58 = vrot.slane %v8472_v22, 4  ;;  %v3744_v18 = vrot.slane %v8473_v31, 5  ;;  %v3712_v44 = vrot.slane %v3710_v7, 5  ;;  %v8475_v59 = vshrl.u32 %v7195_v4, 16  ;;  %5778 = vmatmul.mubr.msk.bf16.gmra.mrb[12].mxu0 %vm668_vm3, %v5228_v15  ;;  %v6213_v7 = vld [vmem:[%s6362_s24 + $0x1c] sm:$0xf] }
 0x110   : > { %v3754_v49 = vrot.slane %v8474_v42, 4  ;;  %v8476_v19 = vshll.u32 %v7195_v4, 16  ;;  %v7723_v36 = vrot.slane %v3772_v41, 5  ;;  %v8477_v38 = vshrl.u32 %v7208_v46, 16  ;;  %5624 = vmatmul.mubr.msk.bf16.gmra.mrb[28].mxu1 %vm668_vm3, %v4949_v14  ;;  %5781 = vmatprep.mubr.msk.bf16.mxu0 %vm668_vm3, %v5229_v40  ;;  %v6214_v15 = vld [vmem:[%s6362_s24 + $0x24] sm:$0xf] }
 0x111   : > { %v3765_v24 = vrot.slane %v8475_v59, 4  ;;  %v3811_v13 = vshrl.u32 %v7250_v6, 16  ;;  %v3722_v43 = vrot.slane %v3721_v50, 4  ;;  %v3732_v32 = vrot.slane %v3731_v34, 4  ;;  %5629 = vmatprep.mubr.msk.bf16.mxu1 %vm668_vm3, %v5017_v62  ;;  %v7758_v42 = vld [vmem:[%s6362_s24 + $0xbc] sm:$0x1] }
 0x112   : > { %v3768_v8 = vrot.slane %v8476_v19, 5  ;;  %v3778_v21 = vrot.slane %v8477_v38, 4  ;;  %v3736_v52 = vrot.slane %v3734_v3, 5  ;;  %v3814_v47 = vshll.u32 %v7250_v6, 16 }
 0x113   : > { %v3745_v53 = vor.u32 %v3744_v18, %v3741_v58  ;;  %v3755_v4 = vor.u32 %v3754_v49, %v7712_v1  ;;  %v3758_v37 = vshll.u32 %v7717_v61, 16  ;;  %v3824_v46 = vshrl.u32 %v7253_v60, 16 }
 0x114   : > { %v3703_v33 = vsel %vm6386_vm2, %v3698_v17, %v7665_v27  ;;  %v3713_v6 = vsel %vm6386_vm2, %v3708_v12, %v3712_v44  ;;  %v3796_v39 = vshll.u32 %v7225_v20, 16  ;;  %v5018_v23 = vcombine.low %v6212_v45, %v6213_v7  ;;  %v6215_v27 = vld [vmem:[%s6362_s24 + $0x28] sm:$0xf] }
 0x115   : > { %v3769_v14 = vor.u32 %v3768_v8, %v3765_v24  ;;  %v3779_v63 = vor.u32 %v3778_v21, %v7723_v36  ;;  %v3782_v41 = vshll.u32 %v7729_v48, 16  ;;  %v5019_v50 = vcombine.low %v6214_v15, %v6215_v27  ;;  %v6219_v15 = vld [vmem:[%s6362_s24 + $0x40] sm:$0xf] }
 0x116   : > { %v3727_v34 = vsel %vm6386_vm2, %v3722_v43, %v7676_v2  ;;  %v3737_v62 = vsel %vm6386_vm2, %v3732_v32, %v3736_v52  ;;  %v3820_v3 = vshll.u32 %v7253_v60, 16  ;;  %v5230_v22 = vcombine.low %v3703_v33, %v3713_v6  ;;  %v7776_v32 = vld [vmem:[%s6362_s24 + $0xc8] sm:$0x1]  ;;  %v6216_v6 = vld [vmem:[%s6362_s24 + $0x30] sm:$0xf] }
 0x117   : > { %v3746_v58 = vrot.slane %v3745_v53, 4  ;;  %v3756_v31 = vrot.slane %v3755_v4, 4  ;;  %v3760_v18 = vrot.slane %v3758_v37, 5  ;;  %v8478_v49 = vshrl.u32 %v7211_v35, 16 }
 0x118   : > { %v3792_v17 = vrot.slane %v3790_v25, 5  ;;  %v7764_v12 = vrot.slane %v3796_v39, 5  ;;  %v3802_v2 = vrot.slane %v3800_v16, 4  ;;  %v5231_v44 = vcombine.low %v3727_v34, %v3737_v62  ;;  %5630 = vmatmul.mubr.msk.bf16.vlgmr.msra.gmra.mrb[0].mxu1 %vm668_vm3, %v5018_v23  ;;  %5782 = vmatmul.mubr.msk.bf16.gmra.mrb[16].mxu0 %vm668_vm3, %v5230_v22  ;;  %v6217_v39 = vld [vmem:[%s6362_s24 + $0x34] sm:$0xf] }
 0x119   : > { %v3789_v40 = vrot.slane %v8478_v49, 4  ;;  %v3770_v60 = vrot.slane %v3769_v14, 4  ;;  %v3780_v59 = vrot.slane %v3779_v63, 4  ;;  %v3784_v24 = vrot.slane %v3782_v41, 5  ;;  %5633 = vmatprep.mubr.msk.bf16.mxu1 %vm668_vm3, %v5019_v50  ;;  %v6218_v41 = vld [vmem:[%s6362_s24 + $0x3c] sm:$0xf] }
 0x11a   : > { %v3813_v19 = vrot.slane %v3811_v13, 4  ;;  %v3816_v8 = vrot.slane %v3814_v47, 5  ;;  %v7768_v38 = vrot.slane %v3820_v3, 5  ;;  %v3826_v21 = vrot.slane %v3824_v46, 4  ;;  %v8479_v47 = vld [vmem:[#allocation16_spill] sm:$0xff]  ;;  %5785 = vmatprep.mubr.msk.bf16.mxu0 %vm668_vm3, %v5231_v44 }
 0x11b   : > { %v3835_v43 = vshrl.u32 %v7272_v51, 16  ;;  %v3751_v35 = vsel %vm6386_vm2, %v3746_v58, %v7712_v1  ;;  %v3806_v25 = vshll.u32 %v7758_v42, 16  ;;  %v3838_v20 = vshll.u32 %v7272_v51, 16  ;;  %5832 = vmatpush3.bf16.msra.mxu1 %v8479_v47  ;;  %v7814_v44 = vld [vmem:[%s6362_s24 + $0x78] sm:$0xf] }
 0x11c   : > { %v3761_v16 = vsel %vm6386_vm2, %v3756_v31, %v3760_v18  ;;  %v3793_v13 = vor.u32 %v3792_v17, %v3789_v40  ;;  %v3803_v52 = vor.u32 %v3802_v2, %v7764_v12  ;;  %v3848_v1 = vshrl.u32 %v7279_v28, 16  ;;  %v7803_v31 = vld [vmem:[%s6362_s24 + $0xd4] sm:$0x1]  ;;  %v6220_v17 = vld [vmem:[%s6362_s24 + $0x1c] sm:$0xf] }
 0x11d   : > { %v3775_v51 = vsel %vm6386_vm2, %v3770_v60, %v7723_v36  ;;  %v3844_v53 = vshll.u32 %v7279_v28, 16  ;;  %v3785_v4 = vsel %vm6386_vm2, %v3780_v59, %v3784_v24  ;;  %v3817_v37 = vor.u32 %v3816_v8, %v3813_v19  ;;  %v7823_v19 = vld [vmem:[%s6362_s24 + $0x7c] sm:$0xf]  ;;  %v6227_v47 = vld [vmem:[%s6362_s24 + $0x28] sm:$0xf] }
 0x11e   : > { %v3827_v46 = vor.u32 %v3826_v21, %v7768_v38  ;;  %v3830_v33 = vshll.u32 %v7776_v32, 16  ;;  %v5020_v45 = vcombine.low %v6216_v6, %v6217_v39  ;;  %v5232_v7 = vcombine.low %v3751_v35, %v3761_v16  ;;  %v6223_v35 = vld [vmem:[%s6362_s24 + $0x48] sm:$0xf] }
 0x11f   : > { %v3808_v36 = vrot.slane %v3806_v25, 5  ;;  %v3794_v23 = vrot.slane %v3793_v13, 4  ;;  %v3804_v14 = vrot.slane %v3803_v52, 4  ;;  %v3837_v28 = vrot.slane %v3835_v43, 4  ;;  %v6224_v25 = vld [vmem:[%s6362_s24 + $0x4c] sm:$0xf] }
 0x120   : > { %v3840_v63 = vrot.slane %v3838_v20, 5  ;;  %v5021_v27 = vcombine.low %v6218_v41, %v6219_v15  ;;  %v5233_v50 = vcombine.low %v3775_v51, %v3785_v4  ;;  %v7800_v34 = vrot.slane %v3844_v53, 5  ;;  %5634 = vmatmul.mubr.msk.bf16.gmra.mrb[4].mxu1 %vm668_vm3, %v5020_v45  ;;  %5786 = vmatmul.mubr.msk.bf16.gmra.mrb[20].mxu0 %vm668_vm3, %v5232_v7  ;;  %v6225_v13 = vld [vmem:[%s6362_s24 + $0x54] sm:$0xf]  ;;  %v6226_v52 = vld [vmem:[%s6362_s24 + $0x58] sm:$0xf] }
 0x121   : > { %v3850_v62 = vrot.slane %v3848_v1, 4  ;;  %v3818_v3 = vrot.slane %v3817_v37, 4  ;;  %v3828_v22 = vrot.slane %v3827_v46, 4  ;;  %v3832_v58 = vrot.slane %v3830_v33, 5  ;;  %v6228_v4 = vld [vmem:[%s6362_s24 + $0x18] sm:$0xf] }
 0x122   : > { %v3799_v18 = vsel %vm6386_vm2, %v3794_v23, %v7764_v12  ;;  %v3809_v49 = vsel %vm6386_vm2, %v3804_v14, %v3808_v36  ;;  %v3841_v40 = vor.u32 %v3840_v63, %v3837_v28  ;;  %v4174_v2 = vrot.slane %v6220_v17, 5  ;;  %5637 = vmatprep.mubr.msk.bf16.mxu1 %vm668_vm3, %v5021_v27  ;;  %5789 = vmatprep.mubr.msk.bf16.mxu0 %vm668_vm3, %v5233_v50  ;;  %v6229_v45 = vld [vmem:[%s6362_s24 + $0x34] sm:$0xf]  ;;  %v6230_v63 = vld [vmem:[%s6362_s24 + $0x24] sm:$0xf] }
 0x123   : > { %v2201_v60 = vshrl.u32 %v7814_v44, 16  ;;  %v3851_v12 = vor.u32 %v3850_v62, %v7800_v34  ;;  %v3854_v59 = vshll.u32 %v7803_v31, 16  ;;  %v2204_v24 = vshll.u32 %v7814_v44, 16 }
 0x124   : > { %v2210_v8 = vshll.u32 %v7823_v19, 16  ;;  %v3823_v21 = vsel %vm6386_vm2, %v3818_v3, %v7768_v38  ;;  %v3833_v43 = vsel %vm6386_vm2, %v3828_v22, %v3832_v58  ;;  %v5022_v20 = vcombine.low %v6223_v35, %v6224_v25  ;;  %v6231_v3 = vld [vmem:[%s6362_s24 + $0x30] sm:$0xf] }
 0x125   : > { %v5234_v16 = vcombine.low %v3799_v18, %v3809_v49  ;;  %v5023_v1 = vcombine.low %v6225_v13, %v6226_v52  ;;  %v4181_v51 = vrot.slane %v6227_v47, 5  ;;  %v3842_v53 = vrot.slane %v3841_v40, 4  ;;  %v6232_v49 = vld [vmem:[%s6362_s24 + $0x40] sm:$0xf]  ;;  %v7891_v13 = vld [vmem:[%s6362_s24 + $0x88] sm:$0xf] }
 0x126   : > { %v5254_v37 = vrot.slane %v6228_v4, 9  ;;  %v4176_v46 = vrot.slane %v4174_v2, 4  ;;  %v4177_v38 = vrot.slane %v7309_v56, 5  ;;  %v5235_v33 = vcombine.low %v3823_v21, %v3833_v43  ;;  %v7874_v21 = vld [vmem:[%s6362_s24 + $0x70] sm:$0xf] }
 0x127   : > { %v3852_v6 = vrot.slane %v3851_v12, 4  ;;  %v3856_v39 = vrot.slane %v3854_v59, 5  ;;  %v4188_v7 = vrot.slane %v6229_v45, 5  ;;  %v7839_v36 = vrot.slane %v2201_v60, 4  ;;  %v6234_v12 = vld [vmem:[%s6362_s24 + $0x60] sm:$0xf] }
 0x128   : > { %v7841_v23 = vrot.slane %v2204_v24, 5  ;;  %v2214_v14 = vshrl.u32 %v7823_v19, 16  ;;  %v7844_v28 = vrot.slane %v2210_v8, 5  ;;  %v5255_v41 = vrot.slane %v6230_v63, 9  ;;  %5638 = vmatmul.mubr.msk.bf16.gmra.mrb[8].mxu1 %vm668_vm3, %v5022_v20  ;;  %5790 = vmatmul.mubr.msk.bf16.gmra.mrb[24].mxu0 %vm668_vm3, %v5234_v16  ;;  %v6235_v59 = vld [vmem:[%s6362_s24 + $0x64] sm:$0xf] }
 0x129   : > { %v4183_v15 = vrot.slane %v4181_v51, 4  ;;  %v4184_v56 = vrot.slane %v7344_v0, 5  ;;  %v3847_v27 = vsel %vm6386_vm2, %v3842_v53, %v7800_v34  ;;  %v4175_v50 = vsel %vm6643_vm6, %v5254_v37, %v4174_v2  ;;  %5641 = vmatprep.mubr.msk.bf16.mxu1 %vm668_vm3, %v5023_v1  ;;  %5793 = vmatprep.mubr.msk.bf16.mxu0 %vm668_vm3, %v5235_v33  ;;  %v8480_v34 = vld [vmem:[#allocation17_spill] sm:$0xff]  ;;  %v7867_v2 = vld [vmem:[%s6362_s24 + $0x80] sm:$0x1] }
 0x12a   : > { %v4178_v62 = vsel %vm6643_vm6, %v4176_v46, %v4177_v38  ;;  %v5256_v0 = vrot.slane %v6231_v3, 9  ;;  %v3857_v22 = vsel %vm6386_vm2, %v3852_v6, %v3856_v39  ;;  %v4190_v58 = vrot.slane %v4188_v7, 4  ;;  %v6236_v8 = vld [vmem:[%s6362_s24 + $0x6c] sm:$0xf]  ;;  %v7888_v16 = vld [vmem:[%s6362_s24 + $0x84] sm:$0xf] }
 0x12b   : > { %v4191_v18 = vrot.slane %v8480_v34, 5  ;;  %v4195_v40 = vrot.slane %v6232_v49, 5  ;;  %v7864_v17 = vrot.slane %v2214_v14, 4  ;;  %v2220_v60 = vshll.u32 %v7867_v2, 16  ;;  %v6240_v53 = vld [vmem:[%s6362_s24 + $0x3c] sm:$0xf] }
 0x12c   : > { %v5024_v24 = vcombine.low %v6234_v12, %v6235_v59  ;;  %v5025_v43 = vcombine.low %v6236_v8, %v7874_v21  ;;  %v5026_v35 = vcombine.low %v7814_v44, %v7823_v19  ;;  %v7881_v25 = vsel %vm6643_vm6, %v5255_v41, %v4181_v51  ;;  %v7905_v46 = vld [vmem:[%s6362_s24 + $0x90] sm:$0xf]  ;;  %v7908_v38 = vld [vmem:[%s6362_s24 + $0x94] sm:$0xf]  ;;  %v6247_v3 = vld [vmem:[%s6362_s24 + $0x58] sm:$0xf] }
 0x12d   : > { %v7885_v20 = vsel %vm6643_vm6, %v4183_v15, %v4184_v56  ;;  %v5027_v52 = vcombine.low %v7888_v16, %v7891_v13  ;;  %v5236_v1 = vcombine.low %v3847_v27, %v3857_v22  ;;  %v5272_v47 = vcombine.low %v4175_v50, %v4178_v62  ;;  %v7917_v15 = vld [vmem:[%s6362_s24 + $0xa0] sm:$0xf]  ;;  %v7920_v56 = vld [vmem:[%s6362_s24 + $0x9c] sm:$0xf]  ;;  %v6246_v50 = vld [vmem:[%s6362_s24 + $0x48] sm:$0xf] }
 0x12e   : > { %v7897_v51 = vsel %vm6643_vm6, %v5256_v0, %v4188_v7  ;;  %v5257_v4 = vrot.slane %v6240_v53, 9  ;;  %v7902_v37 = vsel %vm6643_vm6, %v4190_v58, %v4191_v18  ;;  %v5028_v33 = vcombine.low %v7905_v46, %v7908_v38  ;;  %v6243_v7 = vld [vmem:[%s6362_s24 + $0x4c] sm:$0xf]  ;;  %v6248_v0 = vld [vmem:[%s6362_s24 + $0x64] sm:$0xf] }
 0x12f   : > { %v4197_v6 = vrot.slane %v4195_v40, 4  ;;  %v4198_v39 = vrot.slane %v7447_v5, 5  ;;  %v5273_v45 = vcombine.low %v7881_v25, %v7885_v20  ;;  %v4202_v14 = vrot.slane %v6243_v7, 5  ;;  %v6249_v49 = vld [vmem:[%s6362_s24 + $0x70] sm:$0xf] }
 0x130   : > { %v2177_v63 = vshrl.u32 %v6236_v8, 16  ;;  %v2180_v41 = vshll.u32 %v6236_v8, 16  ;;  %v5029_v27 = vcombine.low %v7920_v56, %v7917_v15  ;;  %v5258_v62 = vrot.slane %v6246_v50, 9  ;;  %5642 = vmatmul.mubr.msk.bf16.gmra.mrb[12].mxu1 %vm668_vm3, %v5024_v24  ;;  %5794 = vmatmul.mubr.msk.bf16.gmra.mrb[28].mxu0 %vm668_vm3, %v5236_v1  ;;  %v6250_v24 = vld [vmem:[%s6362_s24 + $0x54] sm:$0xf] }
 0x131   : > { %v4209_v5 = vrot.slane %v6247_v3, 5  ;;  %v4216_v22 = vrot.slane %v6248_v0, 5  ;;  %v5274_v58 = vcombine.low %v7897_v51, %v7902_v37  ;;  %v7933_v34 = vsel %vm6643_vm6, %v5257_v4, %v4195_v40  ;;  %5645 = vmatprep.mubr.msk.bf16.mxu1 %vm668_vm3, %v5025_v43  ;;  %5799 = vmatprep.mubr.msk.bf16.mxu0 %vm668_vm3, %v5272_v47  ;;  %v6251_v53 = vld [vmem:[%s6362_s24 + $0x60] sm:$0xf]  ;;  %v6254_v7 = vld [vmem:[%s6362_s24 + $0x6c] sm:$0xf] }
 0x132   : > { %v4205_v18 = vrot.slane %v7480_v30, 5  ;;  %v4223_v12 = vrot.slane %v6249_v49, 5  ;;  %v7941_v59 = vsel %vm6643_vm6, %v4197_v6, %v4198_v39  ;;  %v5259_v8 = vrot.slane %v6250_v24, 9  ;;  %v7950_v6 = vld [vmem:[%s6362_s24 + $0xac] sm:$0xf] }
 0x133   : > { %v2186_v40 = vshll.u32 %v7874_v21, 16  ;;  %v2190_v25 = vshrl.u32 %v7874_v21, 16  ;;  %v4204_v30 = vrot.slane %v4202_v14, 4  ;;  %v4212_v20 = vrot.slane %v7520_v55, 5  ;;  %v7953_v39 = vld [vmem:[%s6362_s24 + $0xa8] sm:$0xf] }
 0x134   : > { %v2179_v1 = vrot.slane %v2177_v63, 4  ;;  %v2182_v43 = vrot.slane %v2180_v41, 5  ;;  %v4211_v51 = vrot.slane %v4209_v5, 4  ;;  %v5260_v47 = vrot.slane %v6251_v53, 9  ;;  %v7977_v53 = vld [vmem:[%s6362_s24 + $0xb4] sm:$0xf] }
 0x135   : > { %v4218_v4 = vrot.slane %v4216_v22, 4  ;;  %v4219_v37 = vrot.slane %v7570_v54, 5  ;;  %v5030_v21 = vcombine.low %v7953_v39, %v7950_v6  ;;  %v5261_v50 = vrot.slane %v6254_v7, 9  ;;  %v8020_v19 = vld [vmem:[%s6362_s24 + $0xc4] sm:$0xf] }
 0x136   : > { %v4225_v55 = vrot.slane %v4223_v12, 4  ;;  %v4226_v63 = vrot.slane %v7613_v26, 5  ;;  %v5275_v41 = vcombine.low %v7933_v34, %v7941_v59  ;;  %v7963_v3 = vsel %vm6643_vm6, %v5258_v62, %v4202_v14  ;;  %v7974_v26 = vld [vmem:[%s6362_s24 + $0xb8] sm:$0xf]  ;;  %v6257_v59 = vld [vmem:[%s6362_s24 + $0x7c] sm:$0xf] }
 0x137   : > { %v7965_v54 = vrot.slane %v2186_v40, 5  ;;  %v2192_v0 = vrot.slane %v2190_v25, 4  ;;  %v4206_v49 = vsel %vm6643_vm6, %v4204_v30, %v4205_v18  ;;  %v7971_v24 = vsel %vm6643_vm6, %v5259_v8, %v4209_v5  ;;  %v6258_v25 = vld [vmem:[%s6362_s24 + $0x74] sm:$0x1] }
 0x138   : > { %v5031_v14 = vcombine.low %v7977_v53, %v7974_v26  ;;  %v2183_v62 = vor.u32 %v2182_v43, %v2179_v1  ;;  %v7983_v34 = vsel %vm6643_vm6, %v4211_v51, %v4212_v20  ;;  %v7987_v18 = vsel %vm6643_vm6, %v5260_v47, %v4216_v22  ;;  %5646 = vmatmul.mubr.msk.bf16.gmra.mrb[16].mxu1 %vm668_vm3, %v5026_v35  ;;  %v6259_v20 = vld [vmem:[%s6362_s24 + $0x78] sm:$0xf]  ;;  %v8023_v35 = vld [vmem:[%s6362_s24 + $0xc0] sm:$0xf] }
 0x139   : > { %v7991_v5 = vsel %vm6643_vm6, %v4218_v4, %v4219_v37  ;;  %v4230_v8 = vrot.slane %v6257_v59, 5  ;;  %5800 = vmatmul.mubr.msk.bf16.vlgmr.msra.gmra.mrb[0].mxu0 %vm668_vm3, %v5273_v45  ;;  %v8001_v40 = vsel %vm6643_vm6, %v5261_v50, %v4223_v12  ;;  %v8005_v22 = vsel %vm6643_vm6, %v4225_v55, %v4226_v63  ;;  %5649 = vmatprep.mubr.msk.bf16.mxu1 %vm668_vm3, %v5027_v52  ;;  %v6262_v55 = vld [vmem:[%s6362_s24 + $0x84] sm:$0xf]  ;;  %v6263_v59 = vld [vmem:[%s6362_s24 + $0x88] sm:$0xf] }
 0x13a   : > { %v2196_v30 = vshll.u32 %v6258_v25, 16  ;;  %v5262_v1 = vrot.slane %v6259_v20, 9  ;;  %v8011_v43 = vrot.slane %v2220_v60, 5  ;;  %5803 = vmatprep.mubr.msk.bf16.mxu0 %vm668_vm3, %v5274_v58  ;;  %v5276_v44 = vcombine.low %v7963_v3, %v4206_v49  ;;  %v6264_v25 = vld [vmem:[%s6362_s24 + $0x94] sm:$0xf] }
 0x13b   : > { %v5032_v45 = vcombine.low %v8023_v35, %v8020_v19  ;;  %v2193_v2 = vor.u32 %v2192_v0, %v7965_v54  ;;  %v5277_v60 = vcombine.low %v7971_v24, %v7983_v34  ;;  %v8030_v12 = vrot.slane %v2183_v62, 4 }
 0x13c   : > { %v2207_v52 = vor.u32 %v7841_v23, %v7839_v36  ;;  %v2217_v58 = vor.u32 %v7864_v17, %v7844_v28  ;;  %v5278_v51 = vcombine.low %v7987_v18, %v7991_v5  ;;  %v5279_v47 = vcombine.low %v8001_v40, %v8005_v22 }
 0x13d   : > { %v4232_v4 = vrot.slane %v4230_v8, 4  ;;  %v4233_v37 = vrot.slane %v7625_v10, 5  ;;  %v8041_v7 = vrot.slane %v2196_v30, 5  ;;  %v8045_v50 = vsel %vm6643_vm6, %v5262_v1, %v4230_v8 }
 0x13e   : > { %v2225_v36 = vshrl.u32 %v7888_v16, 16  ;;  %v2228_v23 = vshll.u32 %v7888_v16, 16  ;;  %v8049_v17 = vrot.slane %v2193_v2, 4  ;;  %v5263_v63 = vrot.slane %v6262_v55, 9 }
 0x13f   : > { %v2234_v3 = vshll.u32 %v7891_v13, 16  ;;  %v2238_v0 = vshrl.u32 %v7891_v13, 16  ;;  %v2189_v10 = vsel %vm6386_vm2, %v8030_v12, %v7965_v54  ;;  %v8058_v49 = vrot.slane %v2207_v52, 4 }
 0x140   : > { %v8060_v62 = vrot.slane %v2217_v58, 4  ;;  %v4237_v8 = vrot.slane %v6263_v59, 5  ;;  %v8065_v16 = vsel %vm6643_vm6, %v4232_v4, %v4233_v37  ;;  %v4244_v30 = vrot.slane %v6264_v25, 5  ;;  %5650 = vmatmul.mubr.msk.bf16.gmra.mrb[20].mxu1 %vm668_vm3, %v5028_v33  ;;  %v6265_v37 = vld [vmem:[%s6362_s24 + $0x8c] sm:$0x1] }
 0x141   : > { %v2249_v20 = vshrl.u32 %v7905_v46, 16  ;;  %v2252_v13 = vshll.u32 %v7905_v46, 16  ;;  %5804 = vmatmul.mubr.msk.bf16.gmra.mrb[4].mxu0 %vm668_vm3, %v5275_v41  ;;  %v2227_v1 = vrot.slane %v2225_v36, 4  ;;  %v2230_v2 = vrot.slane %v2228_v23, 5  ;;  %5653 = vmatprep.mubr.msk.bf16.mxu1 %vm668_vm3, %v5029_v27  ;;  %v6266_v23 = vld [vmem:[%s6362_s24 + $0x90] sm:$0xf] }
 0x142   : > { %v2258_v52 = vshll.u32 %v7908_v38, 16  ;;  %v2262_v58 = vshrl.u32 %v7908_v38, 16  ;;  %5807 = vmatprep.mubr.msk.bf16.mxu0 %vm668_vm3, %v5276_v44  ;;  %v2199_v46 = vsel %vm6386_vm2, %v8049_v17, %v8041_v7  ;;  %v4240_v33 = vrot.slane %v7670_v11, 5 }
 0x143   : > { %v8087_v41 = vrot.slane %v2234_v3, 5  ;;  %v2240_v4 = vrot.slane %v2238_v0, 4  ;;  %v5280_v38 = vcombine.low %v8045_v50, %v8065_v16  ;;  %v2213_v27 = vsel %vm6386_vm2, %v8058_v49, %v7844_v28 }
 0x144   : > { %v4239_v44 = vrot.slane %v4237_v8, 4  ;;  %v2244_v36 = vshll.u32 %v6265_v37, 16  ;;  %v5264_v55 = vrot.slane %v6266_v23, 9  ;;  %v4246_v7 = vrot.slane %v4244_v30, 4 }
 0x145   : > { %v2251_v17 = vrot.slane %v2249_v20, 4  ;;  %v2254_v11 = vrot.slane %v2252_v13, 5  ;;  %v2231_v3 = vor.u32 %v2230_v2, %v2227_v1  ;;  %v4247_v0 = vrot.slane %v7687_v57, 5  ;;  %v6267_v20 = vld [vmem:[%s6362_s24 + $0xa0] sm:$0xf] }
 0x146   : > { %v8098_v59 = vrot.slane %v2258_v52, 5  ;;  %v2264_v25 = vrot.slane %v2262_v58, 4  ;;  %v2223_v28 = vsel %vm6386_vm2, %v8060_v62, %v8011_v43  ;;  %v8106_v49 = vsel %vm6643_vm6, %v5263_v63, %v4237_v8 }
 0x147   : > { %v2241_v37 = vor.u32 %v2240_v4, %v8087_v41  ;;  %v4251_v13 = vrot.slane %v6267_v20, 5  ;;  %v8112_v57 = vsel %vm6643_vm6, %v4239_v44, %v4240_v33  ;;  %v2246_v1 = vrot.slane %v2244_v36, 5  ;;  %v6268_v33 = vld [vmem:[%s6362_s24 + $0x98] sm:$0x1] }
 0x148   : > { %v2273_v2 = vshrl.u32 %v7920_v56, 16  ;;  %v2276_v52 = vshll.u32 %v7920_v56, 16  ;;  %v8118_v43 = vsel %vm6643_vm6, %v5264_v55, %v4244_v30  ;;  %v2255_v63 = vor.u32 %v2254_v11, %v2251_v17  ;;  %5654 = vmatmul.mubr.msk.bf16.gmra.mrb[24].mxu1 %vm668_vm3, %v5030_v21  ;;  %v6269_v21 = vld [vmem:[%s6362_s24 + $0x9c] sm:$0xf]  ;;  %v6270_v17 = vld [vmem:[%s6362_s24 + $0xac] sm:$0xf] }
 0x149   : > { %v2282_v62 = vshll.u32 %v7917_v15, 16  ;;  %v2286_v8 = vshrl.u32 %v7917_v15, 16  ;;  %5808 = vmatmul.mubr.msk.bf16.gmra.mrb[8].mxu0 %vm668_vm3, %v5277_v60  ;;  %v2232_v56 = vrot.slane %v2231_v3, 4  ;;  %v8132_v30 = vsel %vm6643_vm6, %v4246_v7, %v4247_v0  ;;  %5657 = vmatprep.mubr.msk.bf16.mxu1 %vm668_vm3, %v5031_v14  ;;  %v6271_v3 = vld [vmem:[%s6362_s24 + $0xa4] sm:$0x1] }
 0x14a   : > { %v2265_v58 = vor.u32 %v2264_v25, %v8098_v59  ;;  %v2268_v4 = vshll.u32 %v6268_v33, 16  ;;  %5811 = vmatprep.mubr.msk.bf16.mxu0 %vm668_vm3, %v5278_v51  ;;  %v2242_v15 = vrot.slane %v2241_v37, 4  ;;  %v5265_v24 = vrot.slane %v6269_v21, 9 }
 0x14b   : > { %v4253_v34 = vrot.slane %v4251_v13, 4  ;;  %v4254_v60 = vrot.slane %v7717_v61, 5  ;;  %v5060_v44 = vcombine.low %v2189_v10, %v2199_v46  ;;  %v8151_v36 = vcombine.low %v2213_v27, %v2223_v28 }
 0x14c   : > { %v2275_v14 = vrot.slane %v2273_v2, 4  ;;  %v2278_v18 = vrot.slane %v2276_v52, 5  ;;  %v5281_v5 = vcombine.low %v8106_v49, %v8112_v57  ;;  %v2256_v51 = vrot.slane %v2255_v63, 4 }
 0x14d   : > { %v8155_v23 = vrot.slane %v2282_v62, 5  ;;  %v2288_v55 = vrot.slane %v2286_v8, 4  ;;  %v2237_v61 = vsel %vm6386_vm2, %v2232_v56, %v8087_v41  ;;  %v5282_v54 = vcombine.low %v8118_v43, %v8132_v30 }
 0x14e   : > { %v2266_v12 = vrot.slane %v2265_v58, 4  ;;  %v2270_v10 = vrot.slane %v2268_v4, 5  ;;  %v2247_v46 = vsel %vm6386_vm2, %v2242_v15, %v2246_v1  ;;  %v8166_v27 = vsel %vm6643_vm6, %v5265_v24, %v4251_v13 }
 0x14f   : > { %v8170_v7 = vsel %vm6643_vm6, %v4253_v34, %v4254_v60  ;;  %v4258_v11 = vrot.slane %v6270_v17, 5  ;;  %v2279_v41 = vor.u32 %v2278_v18, %v2275_v14  ;;  %v2292_v0 = vshll.u32 %v6271_v3, 16  ;;  %v6274_v18 = vld [vmem:[%s6362_s24 + $0xb4] sm:$0xf]  ;;  %v6277_v17 = vld [vmem:[%s6362_s24 + $0xc4] sm:$0xf] }
 0x150   : > { %v2297_v25 = vshrl.u32 %v7953_v39, 16  ;;  %v2300_v28 = vshll.u32 %v7953_v39, 16  ;;  %v2261_v37 = vsel %vm6386_vm2, %v2256_v51, %v8098_v59  ;;  %v2289_v20 = vor.u32 %v2288_v55, %v8155_v23  ;;  %5658 = vmatmul.mubr.msk.bf16.gmra.mrb[28].mxu1 %vm668_vm3, %v5032_v45  ;;  %v6272_v59 = vld [vmem:[%s6362_s24 + $0xa8] sm:$0xf] }
 0x151   : > { %v2306_v13 = vshll.u32 %v7950_v6, 16  ;;  %v2310_v1 = vshrl.u32 %v7950_v6, 16  ;;  %5812 = vmatmul.mubr.msk.bf16.gmra.mrb[12].mxu0 %vm668_vm3, %v5279_v47  ;;  %v2271_v39 = vsel %vm6386_vm2, %v2266_v12, %v2270_v10  ;;  %v5266_v2 = vrot.slane %v6272_v59, 9  ;;  %5679 = vmatprep.mubr.msk.bf16.mxu1 %vm668_vm3, %v5060_v44  ;;  %v6273_v44 = vld [vmem:[%s6362_s24 + $0xb0] sm:$0x1] }
 0x152   : > { %v2321_v52 = vshrl.u32 %v7977_v53, 16  ;;  %v2324_v63 = vshll.u32 %v7977_v53, 16  ;;  %5815 = vmatprep.mubr.msk.bf16.mxu0 %vm668_vm3, %v5280_v38  ;;  %v4260_v6 = vrot.slane %v4258_v11, 4  ;;  %v4261_v40 = vrot.slane %v7729_v48, 5  ;;  %v6275_v12 = vld [vmem:[%s6362_s24 + $0xb8] sm:$0xf] }
 0x153   : > { %v2330_v22 = vshll.u32 %v7974_v26, 16  ;;  %v2334_v45 = vshrl.u32 %v7974_v26, 16  ;;  %v5062_v47 = vcombine.low %v2237_v61, %v2247_v46  ;;  %v2280_v62 = vrot.slane %v2279_v41, 4  ;;  %v6276_v46 = vld [vmem:[%s6362_s24 + $0xbc] sm:$0x1] }
 0x154   : > { %v2299_v8 = vrot.slane %v2297_v25, 4  ;;  %v2302_v56 = vrot.slane %v2300_v28, 5  ;;  %v2290_v53 = vrot.slane %v2289_v20, 4  ;;  %v2294_v58 = vrot.slane %v2292_v0, 5 }
 0x155   : > { %v8203_v33 = vrot.slane %v2306_v13, 5  ;;  %v2312_v50 = vrot.slane %v2310_v1, 4  ;;  %v5063_v16 = vcombine.low %v2261_v37, %v2271_v39  ;;  %v5283_v48 = vcombine.low %v8166_v27, %v8170_v7  ;;  %v6278_v1 = vld [vmem:[%s6362_s24 + $0xc0] sm:$0xf] }
 0x156   : > { %v2323_v38 = vrot.slane %v2321_v52, 4  ;;  %v2326_v4 = vrot.slane %v2324_v63, 5  ;;  %v4259_v26 = vsel %vm6643_vm6, %v5266_v2, %v4258_v11  ;;  %v4262_v15 = vsel %vm6643_vm6, %v4260_v6, %v4261_v40 }
 0x157   : > { %v8211_v21 = vrot.slane %v2330_v22, 5  ;;  %v2336_v24 = vrot.slane %v2334_v45, 4  ;;  %v2285_v34 = vsel %vm6386_vm2, %v2280_v62, %v8155_v23  ;;  %v2303_v60 = vor.u32 %v2302_v56, %v2299_v8 }
 0x158   : > { %v2316_v14 = vshll.u32 %v6273_v44, 16  ;;  %v5267_v51 = vrot.slane %v6274_v18, 9  ;;  %v2295_v55 = vsel %vm6386_vm2, %v2290_v53, %v2294_v58  ;;  %v2313_v61 = vor.u32 %v2312_v50, %v8203_v33  ;;  %5680 = vmatmul.mubr.msk.bf16.vlgmr.msra.gmra.mrb[16].mxu1 %vm668_vm3, %v8151_v36  ;;  %v6280_v58 = vld [vmem:[%s6362_s24 + $0xd0] sm:$0xf] }
 0x159   : > { %v4265_v10 = vrot.slane %v6275_v12, 5  ;;  %v2340_v27 = vshll.u32 %v6276_v46, 16  ;;  %5816 = vmatmul.mubr.msk.bf16.gmra.mrb[16].mxu0 %vm668_vm3, %v5281_v5  ;;  %v5284_v23 = vcombine.low %v4259_v26, %v4262_v15  ;;  %v2327_v7 = vor.u32 %v2326_v4, %v2323_v38  ;;  %5683 = vmatprep.mubr.msk.bf16.mxu1 %vm668_vm3, %v5062_v47  ;;  %v6279_v47 = vld [vmem:[%s6362_s24 + $0xc8] sm:$0x1]  ;;  %v6281_v26 = vld [vmem:[%s6362_s24 + $0xcc] sm:$0xf] }
 0x15a   : > { %v4272_v11 = vrot.slane %v6277_v17, 5  ;;  %v2345_v41 = vshrl.u32 %v8023_v35, 16  ;;  %5819 = vmatprep.mubr.msk.bf16.mxu0 %vm668_vm3, %v5282_v54  ;;  %v2337_v36 = vor.u32 %v2336_v24, %v8211_v21  ;;  %v2348_v49 = vshll.u32 %v8023_v35, 16 }
 0x15b   : > { %v2354_v57 = vshll.u32 %v8020_v19, 16  ;;  %v2358_v5 = vshrl.u32 %v8020_v19, 16  ;;  %v5064_v3 = vcombine.low %v2285_v34, %v2295_v55  ;;  %v2304_v0 = vrot.slane %v2303_v60, 4 }
 0x15c   : > { %v2318_v25 = vrot.slane %v2316_v14, 5  ;;  %v4268_v28 = vrot.slane %v7758_v42, 5  ;;  %v2314_v37 = vrot.slane %v2313_v61, 4  ;;  %v4267_v20 = vrot.slane %v4265_v10, 4 }
 0x15d   : > { %v2342_v13 = vrot.slane %v2340_v27, 5  ;;  %v5268_v43 = vrot.slane %v6278_v1, 9  ;;  %v2328_v30 = vrot.slane %v2327_v7, 4  ;;  %v4274_v54 = vrot.slane %v4272_v11, 4 }
 0x15e   : > { %v4275_v39 = vrot.slane %v7776_v32, 5  ;;  %v2347_v35 = vrot.slane %v2345_v41, 4  ;;  %v2338_v59 = vrot.slane %v2337_v36, 4  ;;  %v2350_v2 = vrot.slane %v2348_v49, 5 }
 0x15f   : > { %v2356_v52 = vrot.slane %v2354_v57, 5  ;;  %v2360_v19 = vrot.slane %v2358_v5, 4  ;;  %v2309_v63 = vsel %vm6386_vm2, %v2304_v0, %v8203_v33  ;;  %v2319_v42 = vsel %vm6386_vm2, %v2314_v37, %v2318_v25 }
 0x160   : > { %v4266_v6 = vsel %vm6643_vm6, %v5267_v51, %v4265_v10  ;;  %v4269_v40 = vsel %vm6643_vm6, %v4267_v20, %v4268_v28  ;;  %5684 = vmatmul.mubr.msk.bf16.gmra.mrb[20].mxu1 %vm668_vm3, %v5063_v16  ;;  %v2333_v32 = vsel %vm6386_vm2, %v2328_v30, %v8211_v21  ;;  %v4273_v22 = vsel %vm6643_vm6, %v5268_v43, %v4272_v11 }
 0x161   : > { %5820 = vmatmul.mubr.msk.bf16.gmra.mrb[20].mxu0 %vm668_vm3, %v5283_v48  ;;  %v4276_v45 = vsel %vm6643_vm6, %v4274_v54, %v4275_v39  ;;  %v2364_v62 = vshll.u32 %v6279_v47, 16  ;;  %5687 = vmatprep.mubr.msk.bf16.mxu1 %vm668_vm3, %v5064_v3  ;;  %v2343_v8 = vsel %vm6386_vm2, %v2338_v59, %v2342_v13  ;;  %v2351_v56 = vor.u32 %v2350_v2, %v2347_v35 }
 0x162   : > { %5823 = vmatprep.mubr.msk.bf16.mxu0 %vm668_vm3, %v5284_v23  ;;  %v2361_v53 = vor.u32 %v2360_v19, %v2356_v52  ;;  %v4279_v33 = vrot.slane %v6280_v58, 5  ;;  %v5065_v50 = vcombine.low %v2309_v63, %v2319_v42  ;;  %v5285_v16 = vcombine.low %v4266_v6, %v4269_v40 }
 0x163   : > { %v5066_v48 = vcombine.low %v2333_v32, %v2343_v8  ;;  %v5286_v38 = vcombine.low %v4273_v22, %v4276_v45  ;;  %v2366_v4 = vrot.slane %v2364_v62, 5  ;;  %v5269_v15 = vrot.slane %v6281_v26, 9 }
 0x164   : > { %v2352_v21 = vrot.slane %v2351_v56, 4  ;;  %v2362_v24 = vrot.slane %v2361_v53, 4  ;;  %v4281_v34 = vrot.slane %v4279_v33, 4  ;;  %v4282_v60 = vrot.slane %v7803_v31, 5 }
 0x165   : > { %v4280_v44 = vsel %vm6643_vm6, %v5269_v15, %v4279_v33 }
 0x166   : > { %v2357_v14 = vsel %vm6386_vm2, %v2352_v21, %v2356_v52  ;;  %v2367_v18 = vsel %vm6386_vm2, %v2362_v24, %v2366_v4  ;;  %v4283_v31 = vsel %vm6643_vm6, %v4281_v34, %v4282_v60 }
 0x167   : > { %v5067_v51 = vcombine.low %v2357_v14, %v2367_v18  ;;  %v5287_v55 = vcombine.low %v4280_v44, %v4283_v31 }
 0x168   : > { %5688 = vmatmul.mubr.msk.bf16.gmra.mrb[24].mxu1 %vm668_vm3, %v5065_v50 }
 0x169   : > { %5824 = vmatmul.mubr.msk.bf16.gmra.mrb[24].mxu0 %vm668_vm3, %v5285_v16  ;;  %5691 = vmatprep.mubr.msk.bf16.mxu1 %vm668_vm3, %v5066_v48 }
 0x16a   : > { %5827 = vmatprep.mubr.msk.bf16.mxu0 %vm668_vm3, %v5286_v38 }
 0x170   : > { %5692 = vmatmul.mubr.msk.bf16.gmra.mrb[28].mxu1 %vm668_vm3, %v5067_v51 }
 0x171   : > { %5828 = vmatmul.mubr.msk.bf16.gmra.mrb[28].mxu0 %vm668_vm3, %v5287_v55 }
 0x1eb   : > { %v5631_v61 = vpop.f32.mrb[0].mxu1 }
 0x1ec   : > { %v1825_v12 = vpop.f32.mrb[1].mxu1 }
 0x1ed   : > { %v5632_v10 = vpop.f32.mrb[2].mxu1 }
 0x1ee   : > { %v1828_v46 = vpop.f32.mrb[3].mxu1 }
 0x1f3   : > { %v5635_v27 = vpop.f32.mrb[4].mxu1 }
 0x1f4   : > { %v1841_v23 = vpop.f32.mrb[5].mxu1 }
 0x1f5   : > { %v5636_v7 = vpop.f32.mrb[6].mxu1 }
 0x1f6   : > { %v1844_v17 = vpop.f32.mrb[7].mxu1 }
 0x1fb   : > { %v5639_v29 = vpop.f32.mrb[8].mxu1 }
 0x1fc   : > { %v1857_v11 = vpop.f32.mrb[9].mxu1 }
 0x1fd   : > { %v5640_v41 = vpop.f32.mrb[10].mxu1 }
 0x1fe   : > { %v1860_v9 = vpop.f32.mrb[11].mxu1 }
 0x203   : > { %v5643_v36 = vpop.f32.mrb[12].mxu1 }
 0x204   : > { %v1873_v49 = vpop.f32.mrb[13].mxu1 }
 0x205   : > { %v5644_v57 = vpop.f32.mrb[14].mxu1 }
 0x206   : > { %v1876_v5 = vpop.f32.mrb[15].mxu1 }
 0x20c   : > { %v5801_v3 = vpop.f32.mrb[0].mxu0 }
 0x20d   : > { %v5833_v0 = vadd.f32 %v5801_v3, %v5631_v61  ;;  %v4423_v25 = vpop.f32.mrb[1].mxu0 }
 0x20e   : > { %v5834_v28 = vadd.f32 %v4423_v25, %v1825_v12  ;;  %v5802_v37 = vpop.f32.mrb[2].mxu0 }
 0x20f   : > { %v5342_v20 = vpack.c.bf16 %v5833_v0, %v5833_v0  ;;  %v5835_v13 = vadd.f32 %v5802_v37, %v5632_v10  ;;  %v4426_v1 = vpop.f32.mrb[3].mxu0 }
 0x210   : > { %v5340_v43 = vpack.c.bf16 %v5834_v28, %v5834_v28  ;;  %v5836_v30 = vadd.f32 %v4426_v1, %v1828_v46 }
 0x211   : > { %4713 = vst.msk [vmem:[%s8287_s18 + $0x8] sm:$0xf] %vm4710_vm7, %v5342_v20  ;;  %v5343_v54 = vpack.c.bf16 %v5835_v13, %v5835_v13 }
 0x212   : > { %4711 = vst.msk [vmem:[%s8287_s18] sm:$0xf] %vm4710_vm7, %v5340_v43  ;;  %v5341_v39 = vpack.c.bf16 %v5836_v30, %v5836_v30 }
 0x213   : > { %4714 = vst.msk [vmem:[%s8287_s18 + $0xc] sm:$0xf] %vm4710_vm7, %v5343_v54 }
 0x214   : > { %4712 = vst.msk [vmem:[%s8287_s18 + $0x4] sm:$0xf] %vm4710_vm7, %v5341_v39  ;;  %v5805_v35 = vpop.f32.mrb[4].mxu0 }
 0x215   : > { %v5837_v59 = vadd.f32 %v5805_v35, %v5635_v27  ;;  %v4439_v2 = vpop.f32.mrb[5].mxu0 }
 0x216   : > { %v5838_v52 = vadd.f32 %v4439_v2, %v1841_v23  ;;  %v5806_v19 = vpop.f32.mrb[6].mxu0 }
 0x217   : > { %v5346_v63 = vpack.c.bf16 %v5837_v59, %v5837_v59  ;;  %v5839_v42 = vadd.f32 %v5806_v19, %v5636_v7  ;;  %v4442_v6 = vpop.f32.mrb[7].mxu0 }
 0x218   : > { %v5344_v40 = vpack.c.bf16 %v5838_v52, %v5838_v52  ;;  %v5840_v32 = vadd.f32 %v4442_v6, %v1844_v17 }
 0x219   : > { %4717 = vst.msk [vmem:[%s8287_s18 + $0x18] sm:$0xf] %vm4710_vm7, %v5346_v63  ;;  %v5347_v22 = vpack.c.bf16 %v5839_v42, %v5839_v42 }
 0x21a   : > { %4715 = vst.msk [vmem:[%s8287_s18 + $0x10] sm:$0xf] %vm4710_vm7, %v5344_v40  ;;  %v5345_v45 = vpack.c.bf16 %v5840_v32, %v5840_v32 }
 0x21b   : > { %4718 = vst.msk [vmem:[%s8287_s18 + $0x1c] sm:$0xf] %vm4710_vm7, %v5347_v22 }
 0x21c   : > { %4716 = vst.msk [vmem:[%s8287_s18 + $0x14] sm:$0xf] %vm4710_vm7, %v5345_v45  ;;  %v5809_v47 = vpop.f32.mrb[8].mxu0 }
 0x21d   : > { %v5841_v62 = vadd.f32 %v5809_v47, %v5639_v29  ;;  %v4455_v8 = vpop.f32.mrb[9].mxu0 }
 0x21e   : > { %v5842_v56 = vadd.f32 %v4455_v8, %v1857_v11  ;;  %v5810_v53 = vpop.f32.mrb[10].mxu0 }
 0x21f   : > { %v5350_v58 = vpack.c.bf16 %v5841_v62, %v5841_v62  ;;  %v5843_v33 = vadd.f32 %v5810_v53, %v5640_v41  ;;  %v4458_v50 = vpop.f32.mrb[11].mxu0 }
 0x220   : > { %v5348_v16 = vpack.c.bf16 %v5842_v56, %v5842_v56  ;;  %v5844_v48 = vadd.f32 %v4458_v50, %v1860_v9 }
 0x221   : > { %4721 = vst.msk [vmem:[%s8287_s18 + $0x28] sm:$0xf] %vm4710_vm7, %v5350_v58  ;;  %v5351_v38 = vpack.c.bf16 %v5843_v33, %v5843_v33 }
 0x222   : > { %4719 = vst.msk [vmem:[%s8287_s18 + $0x20] sm:$0xf] %vm4710_vm7, %v5348_v16  ;;  %v5349_v4 = vpack.c.bf16 %v5844_v48, %v5844_v48 }
 0x223   : > { %4722 = vst.msk [vmem:[%s8287_s18 + $0x2c] sm:$0xf] %vm4710_vm7, %v5351_v38 }
 0x224   : > { %4720 = vst.msk [vmem:[%s8287_s18 + $0x24] sm:$0xf] %vm4710_vm7, %v5349_v4  ;;  %v5813_v26 = vpop.f32.mrb[12].mxu0 }
 0x225   : > { %v5845_v15 = vadd.f32 %v5813_v26, %v5643_v36  ;;  %v4471_v21 = vpop.f32.mrb[13].mxu0 }
 0x226   : > { %v5846_v24 = vadd.f32 %v4471_v21, %v1873_v49  ;;  %v5814_v34 = vpop.f32.mrb[14].mxu0 }
 0x227   : > { %v5354_v60 = vpack.c.bf16 %v5845_v15, %v5845_v15  ;;  %v5847_v44 = vadd.f32 %v5814_v34, %v5644_v57  ;;  %v4474_v14 = vpop.f32.mrb[15].mxu0 }
 0x228   : > { %v5352_v18 = vpack.c.bf16 %v5846_v24, %v5846_v24  ;;  %v5848_v31 = vadd.f32 %v4474_v14, %v1876_v5 }
 0x229   : > { %4725 = vst.msk [vmem:[%s8287_s18 + $0x38] sm:$0xf] %vm4710_vm7, %v5354_v60  ;;  %v5355_v51 = vpack.c.bf16 %v5847_v44, %v5847_v44 }
 0x22a   : > { %4723 = vst.msk [vmem:[%s8287_s18 + $0x30] sm:$0xf] %vm4710_vm7, %v5352_v18  ;;  %v5353_v55 = vpack.c.bf16 %v5848_v31, %v5848_v31 }
 0x22b   : > { %4726 = vst.msk [vmem:[%s8287_s18 + $0x3c] sm:$0xf] %vm4710_vm7, %v5355_v51  ;;  %v5681_v61 = vpop.f32.mrb[16].mxu1 }
 0x22c   : > { %4724 = vst.msk [vmem:[%s8287_s18 + $0x34] sm:$0xf] %vm4710_vm7, %v5353_v55  ;;  %v5817_v12 = vpop.f32.mrb[16].mxu0  ;;  %v2571_v46 = vpop.f32.mrb[17].mxu1 }
 0x22d   : > { %v5849_v10 = vadd.f32 %v5817_v12, %v5681_v61  ;;  %v4487_v27 = vpop.f32.mrb[17].mxu0  ;;  %v5682_v7 = vpop.f32.mrb[18].mxu1 }
 0x22e   : > { %v5850_v23 = vadd.f32 %v4487_v27, %v2571_v46  ;;  %v5818_v17 = vpop.f32.mrb[18].mxu0  ;;  %v2574_v41 = vpop.f32.mrb[19].mxu1 }
 0x22f   : > { %v5358_v29 = vpack.c.bf16 %v5849_v10, %v5849_v10  ;;  %v5851_v11 = vadd.f32 %v5818_v17, %v5682_v7  ;;  %v4490_v9 = vpop.f32.mrb[19].mxu0 }
 0x230   : > { %v5356_v36 = vpack.c.bf16 %v5850_v23, %v5850_v23  ;;  %v5852_v49 = vadd.f32 %v4490_v9, %v2574_v41 }
 0x231   : > { %4729 = vst.msk [vmem:[%s8287_s18 + $0x48] sm:$0xf] %vm4710_vm7, %v5358_v29  ;;  %v5359_v57 = vpack.c.bf16 %v5851_v11, %v5851_v11 }
 0x232   : > { %4727 = vst.msk [vmem:[%s8287_s18 + $0x40] sm:$0xf] %vm4710_vm7, %v5356_v36  ;;  %v5357_v5 = vpack.c.bf16 %v5852_v49, %v5852_v49 }
 0x233   : > { %4730 = vst.msk [vmem:[%s8287_s18 + $0x4c] sm:$0xf] %vm4710_vm7, %v5359_v57  ;;  %v5685_v3 = vpop.f32.mrb[20].mxu1 }
 0x234   : > { %4728 = vst.msk [vmem:[%s8287_s18 + $0x44] sm:$0xf] %vm4710_vm7, %v5357_v5  ;;  %v5821_v0 = vpop.f32.mrb[20].mxu0  ;;  %v2587_v28 = vpop.f32.mrb[21].mxu1 }
 0x235   : > { %v5853_v25 = vadd.f32 %v5821_v0, %v5685_v3  ;;  %v4503_v37 = vpop.f32.mrb[21].mxu0  ;;  %v5686_v13 = vpop.f32.mrb[22].mxu1 }
 0x236   : > { %v5854_v20 = vadd.f32 %v4503_v37, %v2587_v28  ;;  %v5822_v1 = vpop.f32.mrb[22].mxu0  ;;  %v2590_v54 = vpop.f32.mrb[23].mxu1 }
 0x237   : > { %v5362_v43 = vpack.c.bf16 %v5853_v25, %v5853_v25  ;;  %v5855_v30 = vadd.f32 %v5822_v1, %v5686_v13  ;;  %v4506_v39 = vpop.f32.mrb[23].mxu0 }
 0x238   : > { %v5360_v35 = vpack.c.bf16 %v5854_v20, %v5854_v20  ;;  %v5856_v59 = vadd.f32 %v4506_v39, %v2590_v54 }
 0x239   : > { %4733 = vst.msk [vmem:[%s8287_s18 + $0x58] sm:$0xf] %vm4710_vm7, %v5362_v43  ;;  %v5363_v2 = vpack.c.bf16 %v5855_v30, %v5855_v30 }
 0x23a   : > { %4731 = vst.msk [vmem:[%s8287_s18 + $0x50] sm:$0xf] %vm4710_vm7, %v5360_v35  ;;  %v5361_v52 = vpack.c.bf16 %v5856_v59, %v5856_v59 }
 0x23b   : > { %4734 = vst.msk [vmem:[%s8287_s18 + $0x5c] sm:$0xf] %vm4710_vm7, %v5363_v2  ;;  %v5689_v19 = vpop.f32.mrb[24].mxu1 }
 0x23c   : > { %4732 = vst.msk [vmem:[%s8287_s18 + $0x54] sm:$0xf] %vm4710_vm7, %v5361_v52  ;;  %v5825_v63 = vpop.f32.mrb[24].mxu0  ;;  %v2603_v6 = vpop.f32.mrb[25].mxu1 }
 0x23d   : > { %v5857_v42 = vadd.f32 %v5825_v63, %v5689_v19  ;;  %v4519_v40 = vpop.f32.mrb[25].mxu0  ;;  %v5690_v22 = vpop.f32.mrb[26].mxu1 }
 0x23e   : > { %v5858_v32 = vadd.f32 %v4519_v40, %v2603_v6  ;;  %v5826_v45 = vpop.f32.mrb[26].mxu0  ;;  %v2606_v8 = vpop.f32.mrb[27].mxu1 }
 0x23f   : > { %v5366_v47 = vpack.c.bf16 %v5857_v42, %v5857_v42  ;;  %v5859_v62 = vadd.f32 %v5826_v45, %v5690_v22  ;;  %v4522_v56 = vpop.f32.mrb[27].mxu0 }
 0x240   : > { %v5364_v53 = vpack.c.bf16 %v5858_v32, %v5858_v32  ;;  %v5860_v58 = vadd.f32 %v4522_v56, %v2606_v8 }
 0x241   : > { %4737 = vst.msk [vmem:[%s8287_s18 + $0x68] sm:$0xf] %vm4710_vm7, %v5366_v47  ;;  %v5367_v33 = vpack.c.bf16 %v5859_v62, %v5859_v62 }
 0x242   : > { %4735 = vst.msk [vmem:[%s8287_s18 + $0x60] sm:$0xf] %vm4710_vm7, %v5364_v53  ;;  %v5365_v50 = vpack.c.bf16 %v5860_v58, %v5860_v58 }
 0x243   : > { %4738 = vst.msk [vmem:[%s8287_s18 + $0x6c] sm:$0xf] %vm4710_vm7, %v5367_v33  ;;  %v5693_v16 = vpop.f32.mrb[28].mxu1 }
 0x244   : > { %4736 = vst.msk [vmem:[%s8287_s18 + $0x64] sm:$0xf] %vm4710_vm7, %v5365_v50  ;;  %v5829_v48 = vpop.f32.mrb[28].mxu0  ;;  %v2619_v4 = vpop.f32.mrb[29].mxu1 }
 0x245   : > { %v5861_v38 = vadd.f32 %v5829_v48, %v5693_v16  ;;  %v4535_v26 = vpop.f32.mrb[29].mxu0  ;;  %v5694_v21 = vpop.f32.mrb[30].mxu1 }
 0x246   : > { %v5862_v15 = vadd.f32 %v4535_v26, %v2619_v4  ;;  %v5830_v24 = vpop.f32.mrb[30].mxu0  ;;  %v2622_v44 = vpop.f32.mrb[31].mxu1 }
 0x247   : > { %v5370_v34 = vpack.c.bf16 %v5861_v38, %v5861_v38  ;;  %v5863_v60 = vadd.f32 %v5830_v24, %v5694_v21  ;;  %v4538_v14 = vpop.f32.mrb[31].mxu0 }
 0x248   : > { %v5368_v18 = vpack.c.bf16 %v5862_v15, %v5862_v15  ;;  %v5864_v31 = vadd.f32 %v4538_v14, %v2622_v44 }
 0x249   : > { %4741 = vst.msk [vmem:[%s8287_s18 + $0x78] sm:$0xf] %vm4710_vm7, %v5370_v34  ;;  %v5371_v51 = vpack.c.bf16 %v5863_v60, %v5863_v60 }
 0x24a   : > { %4739 = vst.msk [vmem:[%s8287_s18 + $0x70] sm:$0xf] %vm4710_vm7, %v5368_v18  ;;  %v5369_v55 = vpack.c.bf16 %v5864_v31, %v5864_v31 }
 0x24b   : > { %4742 = vst.msk [vmem:[%s8287_s18 + $0x7c] sm:$0xf] %vm4710_vm7, %v5371_v51 }
 0x24c   : > { %4740 = vst.msk [vmem:[%s8287_s18 + $0x74] sm:$0xf] %vm4710_vm7, %v5369_v55 }
 0x24d PF: > { %s12_s11 = sadd.s32 1, %s6304_s11   ;;  %s8481_s9 = smov %s6300_s10 }
 0x24e   : > { %p9_p5 = scmp.ge.s32.totalorder %s12_s11, 4   ;;  %s8482_s10 = smov %s8484_s12 }
 0x250   :  { %11 = sbr.rel (!%p9_p5) target bundleno = 2 (0x2), region = 69 }

</bundles_post_ra>
